<compile_context>
chip_gen: v7x
topology: tpu7x:2x2x1
jax: 0.10.0
libtpu: 0.0.40
codegen_flags: <defaults>
</compile_context>

<pallas_src>
import functools

import jax
import jax.numpy as jnp
from jax import lax
from jax.experimental import pallas as pl
from jax.experimental.pallas import tpu as pltpu


def _round_up(x, m):
    return ((x + m - 1) // m) * m


def _vmem_capacity_bytes():
    # Generation-aware VMEM: 128 MiB on v5e/v6e, 64 MiB per TensorCore on v7x.
    try:
        return int(pltpu.get_tpu_info().vmem_capacity_bytes)
    except Exception:
        return 64 * 1024 * 1024  # conservative fallback: assume the smallest


def _bahdanau_kernel(q_ref, k_ref,
                     wa_w_ref, wa_b_ref,
                     ua_w_ref, ua_b_ref,
                     va_w_ref,
                     ctx_ref, w_ref, *, s_valid):
    # Per-grid-step views (TB batch rows per step):
    #   q_ref:     (TB, H)      bf16 stream
    #   k_ref:     (TB, Sp, H)  bf16 stream (Sp = S padded to the sublane tile)
    #   wa_w/ua_w: (H, H)       bf16 (PyTorch Linear weight, y = x @ W^T + b)
    #   wa_b/ua_b/va_w: (1, H)  f32
    #   ctx_ref:   (TB, H) f32, w_ref: (TB, Sp) f32   (lane-dense 2-D outputs)
    tb, sp, h = k_ref.shape

    q = q_ref[...]                      # (TB, H)   bf16
    k = k_ref[...]                      # (TB, Sp, H) bf16

    # ---- Wa(query): (TB,H) @ (H,H)^T on the MXU, f32 accumulation.
    qW = lax.dot_general(q, wa_w_ref[...], (((1,), (1,)), ((), ())),
                         preferred_element_type=jnp.float32) + wa_b_ref[...]

    # ---- Ua(keys): one tall flattened (TB*Sp, H) @ (H, H)^T bf16 MXU matmul.
    # Sp is padded to the bf16 sublane tile in the wrapper, so this leading-dim
    # flatten / unflatten is layout-preserving (no VMEM relayout copy).
    kU = lax.dot_general(k.reshape(tb * sp, h), ua_w_ref[...],
                         (((1,), (1,)), ((), ())),
                         preferred_element_type=jnp.float32) + ua_b_ref[...]
    kU = kU.reshape(tb, sp, h)

    # tanh(Wa(q) + Ua(k)) in f32 (EUP): (TB,1,H) + (TB,Sp,H) -> (TB,Sp,H)
    t = jnp.tanh(qW[:, None, :] + kU)

    # ---- Va scoring on the VPU + XLU lane reduce: (TB,Sp,H)*(1,H) sum_H.
    # The Va bias is softmax-invariant (scores never leave the kernel), so it
    # is omitted — context/weights are identical to the PyTorch forward.
    scores = jnp.sum(t * va_w_ref[...], axis=-1)          # (TB, Sp) f32

    if sp > s_valid:  # static: mask padded key positions out of the softmax
        col = lax.broadcasted_iota(jnp.int32, (tb, sp), 1)
        scores = jnp.where(col < s_valid, scores, -jnp.inf)

    # softmax over the key axis (lane dim) with an exact normalization.
    m = jnp.max(scores, axis=-1, keepdims=True)
    e = jnp.exp(scores - m)
    weights = e / jnp.sum(e, axis=-1, keepdims=True)       # (TB, Sp) f32

    # ---- context = sum_s weights * keys: VPU multiply + sublane reduce,
    # f32 accumulation (padded rows contribute exactly 0).
    context = jnp.sum(weights[:, :, None] * k, axis=1)     # (TB, H) f32

    ctx_ref[...] = context.astype(ctx_ref.dtype)
    w_ref[...] = weights.astype(w_ref.dtype)


def bahdanau_attention(query, keys, params, *, max_block_b=128,
                       stream_dtype=jnp.bfloat16):
    """query: (B, 1, H), keys: (B, S, H) -> (context (B,1,H), weights (B,1,S))."""
    B, one, H = query.shape
    assert one == 1
    Bk, S, Hk = keys.shape
    assert Bk == B and Hk == H

    wa_w, wa_b, ua_w, ua_b, va_w, va_b = params
    del va_b  # softmax-invariant: never changes the module's outputs
    wa_w = wa_w.astype(stream_dtype)
    ua_w = ua_w.astype(stream_dtype)
    wa_b = wa_b.reshape(1, H).astype(jnp.float32)
    ua_b = ua_b.reshape(1, H).astype(jnp.float32)
    va_w = va_w.reshape(1, H).astype(jnp.float32)

    itemsize_in = jnp.dtype(stream_dtype).itemsize
    # Pad S to the streamed dtype's sublane tile so the in-kernel flatten is
    # tile-preserving (16 rows for 2-byte packing, 8 for f32).
    s_tile = 16 if itemsize_in == 2 else 8
    b_tile = s_tile
    Sp = _round_up(S, s_tile)

    # ---- generation-aware batch block TB against the real VMEM capacity.
    vmem_cap = _vmem_capacity_bytes()
    budget = int(0.45 * vmem_cap)                 # headroom for Mosaic scratch
    per_row = (2 * Sp * H * itemsize_in           # keys stream, double-buffered
               + 3 * Sp * H * 4                   # live f32: kU, tanh, w*k prod
               + 2 * H * itemsize_in + 2 * H * 4  # query in, context out
               + 2 * Sp * 4)                      # weights out
    fixed = 2 * (2 * H * H * itemsize_in) + 6 * H * 4 + (64 << 10)
    tb = max(b_tile, min(max_block_b, (budget - fixed) // max(per_row, 1)))
    tb = max(b_tile, (tb // b_tile) * b_tile)
    tb = min(tb, _round_up(B, b_tile))
    if B > b_tile:
        # Keep >= 2 grid steps so dimension_semantics=("parallel",) can shard
        # across v7x's 2 TensorCores; ~0.35us extra step on single-TC v5e/v6e.
        tb = min(tb, _round_up(pl.cdiv(B, 2), b_tile))

    Bp = _round_up(B, tb)
    q2 = query.reshape(B, H).astype(stream_dtype)
    keys_s = keys.astype(stream_dtype)
    if Bp != B or Sp != S:                        # zero-pad ragged batch / seq
        q2 = jnp.pad(q2, ((0, Bp - B), (0, 0)))
        keys_s = jnp.pad(keys_s, ((0, Bp - B), (0, Sp - S), (0, 0)))

    out_dtype = query.dtype
    grid = (Bp // tb,)

    # VMEM footprint estimate now includes the live f32 intermediates.
    vmem_est = fixed + tb * per_row
    vmem_limit = int(min(vmem_cap, max(32 << 20, 2 * vmem_est)))

    cost = pl.CostEstimate(
        flops=2 * Bp * Sp * H * H + 2 * Bp * H * H + 4 * Bp * Sp * H,
        transcendentals=Bp * Sp * H + Bp * Sp,
        bytes_accessed=(q2.size * itemsize_in + keys_s.size * itemsize_in
                        + 2 * 2 * H * H * itemsize_in
                        + Bp * H * 4 + Bp * Sp * 4),
    )

    kernel = functools.partial(_bahdanau_kernel, s_valid=S)

    def _call(single_buffer_weights):
        # Constant-index weight/bias blocks: single buffer (they never change
        # block index), halving their VMEM footprint — matters most on v7x.
        kw = {"pipeline_mode": pl.Buffered(1)} if single_buffer_weights else {}
        c2 = lambda b: (0, 0)
        grid_spec = pltpu.PrefetchScalarGridSpec(
            num_scalar_prefetch=0,
            grid=grid,
            in_specs=[
                pl.BlockSpec((tb, H), lambda b: (b, 0)),        # query
                pl.BlockSpec((tb, Sp, H), lambda b: (b, 0, 0)),  # keys
                pl.BlockSpec((H, H), c2, **kw),                  # Wa weight
                pl.BlockSpec((1, H), c2, **kw),                  # Wa bias
                pl.BlockSpec((H, H), c2, **kw),                  # Ua weight
                pl.BlockSpec((1, H), c2, **kw),                  # Ua bias
                pl.BlockSpec((1, H), c2, **kw),                  # Va weight
            ],
            out_specs=[
                pl.BlockSpec((tb, H), lambda b: (b, 0)),         # context
                pl.BlockSpec((tb, Sp), lambda b: (b, 0)),        # weights
            ],
        )
        return pl.pallas_call(
            kernel,
            out_shape=(jax.ShapeDtypeStruct((Bp, H), out_dtype),
                       jax.ShapeDtypeStruct((Bp, Sp), out_dtype)),
            grid_spec=grid_spec,
            compiler_params=pltpu.CompilerParams(
                dimension_semantics=("parallel",),
                vmem_limit_bytes=vmem_limit),
            cost_estimate=cost,
        )(q2, keys_s, wa_w, wa_b, ua_w, ua_b, va_w)

    try:
        ctx2, w2 = _call(True)
    except Exception:
        # JAX build without BlockSpec pipeline_mode / Buffered(1): fall back to
        # default double-buffered weight blocks (tiny extra VMEM, same result).
        ctx2, w2 = _call(False)

    context = ctx2[:B].reshape(B, 1, H)
    weights = w2[:B, :S].reshape(B, 1, S)
    return context, weights


def _reference(query, keys, params):
    wa_w, wa_b, ua_w, ua_b, va_w, va_b = params
    qW = query @ wa_w.T + wa_b                                   # (B, 1, H)
    kU = keys @ ua_w.T + ua_b                                    # (B, S, H)
    scores = jnp.tanh(qW + kU) @ va_w.reshape(1, -1).T + va_b    # (B, S, 1)
    scores = jnp.transpose(scores, (0, 2, 1))                    # (B, 1, S)
    weights = jax.nn.softmax(scores, axis=-1)
    context = jnp.einsum("bis,bsh->bih", weights, keys)
    return context, weights


if __name__ == "__main__":
    B, S, H = 2, 8, 32
    key = jax.random.PRNGKey(0)
    kq, kk, k1, k2, k3, k4, k5, k6 = jax.random.split(key, 8)

    query = jax.random.normal(kq, (B, 1, H), dtype=jnp.float32)
    keys = jax.random.normal(kk, (B, S, H), dtype=jnp.float32)

    # nn.Linear conventions: weight (out, in), bias (out,)
    scale = 1.0 / jnp.sqrt(H)
    wa_w = jax.random.uniform(k1, (H, H), jnp.float32, -scale, scale)
    wa_b = jax.random.uniform(k2, (H,), jnp.float32, -scale, scale)
    ua_w = jax.random.uniform(k3, (H, H), jnp.float32, -scale, scale)
    ua_b = jax.random.uniform(k4, (H,), jnp.float32, -scale, scale)
    va_w = jax.random.uniform(k5, (1, H), jnp.float32, -scale, scale)
    va_b = jax.random.uniform(k6, (1,), jnp.float32, -scale, scale)
    params = (wa_w, wa_b, ua_w, ua_b, va_w, va_b)

    ctx, wts = bahdanau_attention(query, keys, params)
    jax.block_until_ready((ctx, wts))

    ctx_ref, wts_ref = _reference(query, keys, params)
    assert ctx.shape == (B, 1, H) and wts.shape == (B, 1, S)
    # bf16 streaming of query/keys/weights -> ~1e-2 absolute error budget vs
    # the f32 reference; the softmax itself is normalized exactly.
    assert jnp.allclose(wts, wts_ref, atol=1e-2, rtol=1e-2)
    assert jnp.allclose(ctx, ctx_ref, atol=1e-2, rtol=1e-2)
    assert jnp.allclose(jnp.sum(wts, axis=-1), 1.0, atol=1e-5)

    print("KERNEL_OK")
</pallas_src>

<mosaic_0001>
module attributes {stable_mosaic.version = 11 : i64} {
  func.func @_bahdanau_kernel(%arg0: i32, %arg1: memref<16x32xbf16, #tpu.memory_space<vmem>>, %arg2: memref<16x16x32xbf16, #tpu.memory_space<vmem>>, %arg3: memref<32x32xbf16, #tpu.memory_space<vmem>>, %arg4: memref<1x32xf32, #tpu.memory_space<vmem>>, %arg5: memref<32x32xbf16, #tpu.memory_space<vmem>>, %arg6: memref<1x32xf32, #tpu.memory_space<vmem>>, %arg7: memref<1x32xf32, #tpu.memory_space<vmem>>, %arg8: memref<16x32xf32, #tpu.memory_space<vmem>>, %arg9: memref<16x16xf32, #tpu.memory_space<vmem>>) attributes {dimension_semantics = [#tpu.dimension_semantics<parallel>], iteration_bounds = array<i64: 1>, scalar_prefetch = 0 : i64, scratch_operands = 0 : i64, tpu.core_type = #tpu.core_type<tc>, window_params = [{transform_indices = @transform_0, window_bounds = array<i64: 16, 32>}, {transform_indices = @transform_1, window_bounds = array<i64: 16, 16, 32>}, {pipeline_mode = #tpu.pipeline_mode<synchronous>, transform_indices = @transform_2, window_bounds = array<i64: 32, 32>}, {pipeline_mode = #tpu.pipeline_mode<synchronous>, transform_indices = @transform_3, window_bounds = array<i64: 1, 32>}, {pipeline_mode = #tpu.pipeline_mode<synchronous>, transform_indices = @transform_4, window_bounds = array<i64: 32, 32>}, {pipeline_mode = #tpu.pipeline_mode<synchronous>, transform_indices = @transform_5, window_bounds = array<i64: 1, 32>}, {pipeline_mode = #tpu.pipeline_mode<synchronous>, transform_indices = @transform_6, window_bounds = array<i64: 1, 32>}, {transform_indices = @transform_7, window_bounds = array<i64: 16, 32>}, {transform_indices = @transform_8, window_bounds = array<i64: 16, 16>}]} {
    %c0 = arith.constant 0 : index
    %c0_0 = arith.constant 0 : index
    %0 = vector.load %arg1[%c0, %c0_0] : memref<16x32xbf16, #tpu.memory_space<vmem>>, vector<16x32xbf16>
    %c0_1 = arith.constant 0 : index
    %c0_2 = arith.constant 0 : index
    %c0_3 = arith.constant 0 : index
    %1 = vector.load %arg2[%c0_1, %c0_2, %c0_3] : memref<16x16x32xbf16, #tpu.memory_space<vmem>>, vector<16x16x32xbf16>
    %c0_4 = arith.constant 0 : index
    %c0_5 = arith.constant 0 : index
    %2 = vector.load %arg3[%c0_4, %c0_5] : memref<32x32xbf16, #tpu.memory_space<vmem>>, vector<32x32xbf16>
    %cst = arith.constant dense<0.000000e+00> : vector<16x32xf32>
    %3 = tpu.matmul %0, %2, %cst {dimension_numbers = #tpu.dot_dimension_numbers<[1], [1], [0], [0], [0, 0, 1, 0], [], []>} : vector<16x32xbf16>, vector<32x32xbf16>, vector<16x32xf32> -> vector<16x32xf32>
    %c0_6 = arith.constant 0 : index
    %c0_7 = arith.constant 0 : index
    %4 = vector.load %arg4[%c0_6, %c0_7] : memref<1x32xf32, #tpu.memory_space<vmem>>, vector<1x32xf32>
    %5 = vector.broadcast %4 : vector<1x32xf32> to vector<16x32xf32>
    %6 = arith.addf %3, %5 : vector<16x32xf32>
    %7 = vector.shape_cast %1 : vector<16x16x32xbf16> to vector<256x32xbf16>
    %c0_8 = arith.constant 0 : index
    %c0_9 = arith.constant 0 : index
    %8 = vector.load %arg5[%c0_8, %c0_9] : memref<32x32xbf16, #tpu.memory_space<vmem>>, vector<32x32xbf16>
    %cst_10 = arith.constant dense<0.000000e+00> : vector<256x32xf32>
    %9 = tpu.matmul %7, %8, %cst_10 {dimension_numbers = #tpu.dot_dimension_numbers<[1], [1], [0], [0], [0, 0, 1, 0], [], []>} : vector<256x32xbf16>, vector<32x32xbf16>, vector<256x32xf32> -> vector<256x32xf32>
    %c0_11 = arith.constant 0 : index
    %c0_12 = arith.constant 0 : index
    %10 = vector.load %arg6[%c0_11, %c0_12] : memref<1x32xf32, #tpu.memory_space<vmem>>, vector<1x32xf32>
    %11 = vector.broadcast %10 : vector<1x32xf32> to vector<256x32xf32>
    %12 = arith.addf %9, %11 : vector<256x32xf32>
    %13 = vector.shape_cast %12 : vector<256x32xf32> to vector<16x16x32xf32>
    %14 = vector.shape_cast %6 : vector<16x32xf32> to vector<16x1x32xf32>
    %15 = vector.broadcast %14 : vector<16x1x32xf32> to vector<16x16x32xf32>
    %16 = arith.addf %15, %13 : vector<16x16x32xf32>
    %17 = math.tanh %16 : vector<16x16x32xf32>
    %c0_13 = arith.constant 0 : index
    %c0_14 = arith.constant 0 : index
    %18 = vector.load %arg7[%c0_13, %c0_14] : memref<1x32xf32, #tpu.memory_space<vmem>>, vector<1x32xf32>
    %19 = vector.shape_cast %18 : vector<1x32xf32> to vector<1x1x32xf32>
    %20 = vector.broadcast %19 : vector<1x1x32xf32> to vector<16x16x32xf32>
    %21 = arith.mulf %17, %20 : vector<16x16x32xf32>
    %cst_15 = arith.constant dense<0.000000e+00> : vector<16x16xf32>
    %22 = vector.multi_reduction <add>, %21, %cst_15 [2] : vector<16x16x32xf32> to vector<16x16xf32>
    %23 = tpu.iota {dimensions = array<i32: 1>} : vector<16x16xi32>
    %c8_i32 = arith.constant 8 : i32
    %24 = vector.broadcast %c8_i32 : i32 to vector<16x16xi32>
    %25 = arith.cmpi slt, %23, %24 : vector<16x16xi32>
    %cst_16 = arith.constant 0xFF800000 : f32
    %26 = vector.broadcast %cst_16 : f32 to vector<16x16xf32>
    %27 = arith.select %25, %22, %26 : vector<16x16xi1>, vector<16x16xf32>
    %cst_17 = arith.constant dense<0xFF800000> : vector<16xf32>
    %28 = vector.multi_reduction <maximumf>, %27, %cst_17 [1] : vector<16x16xf32> to vector<16xf32>
    %29 = vector.shape_cast %28 : vector<16xf32> to vector<16x1xf32>
    %30 = vector.broadcast %29 : vector<16x1xf32> to vector<16x16xf32>
    %31 = arith.subf %27, %30 : vector<16x16xf32>
    %32 = math.exp %31 : vector<16x16xf32>
    %cst_18 = arith.constant dense<0.000000e+00> : vector<16xf32>
    %33 = vector.multi_reduction <add>, %32, %cst_18 [1] : vector<16x16xf32> to vector<16xf32>
    %34 = vector.shape_cast %33 : vector<16xf32> to vector<16x1xf32>
    %35 = vector.broadcast %34 : vector<16x1xf32> to vector<16x16xf32>
    %36 = arith.divf %32, %35 : vector<16x16xf32>
    %37 = vector.shape_cast %36 : vector<16x16xf32> to vector<16x16x1xf32>
    %38 = arith.extf %1 : vector<16x16x32xbf16> to vector<16x16x32xf32>
    %39 = vector.broadcast %37 : vector<16x16x1xf32> to vector<16x16x32xf32>
    %40 = arith.mulf %39, %38 : vector<16x16x32xf32>
    %cst_19 = arith.constant dense<0.000000e+00> : vector<16x32xf32>
    %41 = vector.multi_reduction <add>, %40, %cst_19 [1] : vector<16x16x32xf32> to vector<16x32xf32>
    %c0_20 = arith.constant 0 : index
    %c0_21 = arith.constant 0 : index
    %42 = vector.load %arg8[%c0_20, %c0_21] : memref<16x32xf32, #tpu.memory_space<vmem>>, vector<16x32xf32>
    tpu.vector_store %arg8[%c0_20, %c0_21], %41 {strides = array<i32>} : memref<16x32xf32, #tpu.memory_space<vmem>>, vector<16x32xf32>,
    %c0_22 = arith.constant 0 : index
    %c0_23 = arith.constant 0 : index
    %43 = vector.load %arg9[%c0_22, %c0_23] : memref<16x16xf32, #tpu.memory_space<vmem>>, vector<16x16xf32>
    tpu.vector_store %arg9[%c0_22, %c0_23], %36 {strides = array<i32>} : memref<16x16xf32, #tpu.memory_space<vmem>>, vector<16x16xf32>,
    return
  }
  func.func @transform_0(%arg0: i32) -> (i32, i32) {
    %c0_i32 = arith.constant 0 : i32
    %c0_i32_0 = arith.constant 0 : i32
    return %arg0, %c0_i32 : i32, i32
  }
  func.func @transform_1(%arg0: i32) -> (i32, i32, i32) {
    %c0_i32 = arith.constant 0 : i32
    %c0_i32_0 = arith.constant 0 : i32
    %c0_i32_1 = arith.constant 0 : i32
    return %arg0, %c0_i32, %c0_i32_0 : i32, i32, i32
  }
  func.func @transform_2(%arg0: i32) -> (i32, i32) {
    %c0_i32 = arith.constant 0 : i32
    %c0_i32_0 = arith.constant 0 : i32
    %c0_i32_1 = arith.constant 0 : i32
    return %c0_i32, %c0_i32_0 : i32, i32
  }
  func.func @transform_3(%arg0: i32) -> (i32, i32) {
    %c0_i32 = arith.constant 0 : i32
    %c0_i32_0 = arith.constant 0 : i32
    %c0_i32_1 = arith.constant 0 : i32
    return %c0_i32, %c0_i32_0 : i32, i32
  }
  func.func @transform_4(%arg0: i32) -> (i32, i32) {
    %c0_i32 = arith.constant 0 : i32
    %c0_i32_0 = arith.constant 0 : i32
    %c0_i32_1 = arith.constant 0 : i32
    return %c0_i32, %c0_i32_0 : i32, i32
  }
  func.func @transform_5(%arg0: i32) -> (i32, i32) {
    %c0_i32 = arith.constant 0 : i32
    %c0_i32_0 = arith.constant 0 : i32
    %c0_i32_1 = arith.constant 0 : i32
    return %c0_i32, %c0_i32_0 : i32, i32
  }
  func.func @transform_6(%arg0: i32) -> (i32, i32) {
    %c0_i32 = arith.constant 0 : i32
    %c0_i32_0 = arith.constant 0 : i32
    %c0_i32_1 = arith.constant 0 : i32
    return %c0_i32, %c0_i32_0 : i32, i32
  }
  func.func @transform_7(%arg0: i32) -> (i32, i32) {
    %c0_i32 = arith.constant 0 : i32
    %c0_i32_0 = arith.constant 0 : i32
    return %arg0, %c0_i32 : i32, i32
  }
  func.func @transform_8(%arg0: i32) -> (i32, i32) {
    %c0_i32 = arith.constant 0 : i32
    %c0_i32_0 = arith.constant 0 : i32
    return %arg0, %c0_i32 : i32, i32
  }
}

module attributes {stable_mosaic.version = 11 : i64} {
  func.func @_bahdanau_kernel(%arg0: i32, %arg1: memref<16x32xbf16, #tpu.memory_space<vmem>>, %arg2: memref<16x16x32xbf16, #tpu.memory_space<vmem>>, %arg3: memref<32x32xbf16, #tpu.memory_space<vmem>>, %arg4: memref<1x32xf32, #tpu.memory_space<vmem>>, %arg5: memref<32x32xbf16, #tpu.memory_space<vmem>>, %arg6: memref<1x32xf32, #tpu.memory_space<vmem>>, %arg7: memref<1x32xf32, #tpu.memory_space<vmem>>, %arg8: memref<16x32xf32, #tpu.memory_space<vmem>>, %arg9: memref<16x16xf32, #tpu.memory_space<vmem>>) attributes {dimension_semantics = [#tpu.dimension_semantics<parallel>], iteration_bounds = array<i64: 1>, scalar_prefetch = 0 : i64, scratch_operands = 0 : i64, tpu.core_type = #tpu.core_type<tc>, window_params = [{transform_indices = @transform_0, window_bounds = array<i64: 16, 32>}, {transform_indices = @transform_1, window_bounds = array<i64: 16, 16, 32>}, {pipeline_mode = #tpu.pipeline_mode<synchronous>, transform_indices = @transform_2, window_bounds = array<i64: 32, 32>}, {pipeline_mode = #tpu.pipeline_mode<synchronous>, transform_indices = @transform_3, window_bounds = array<i64: 1, 32>}, {pipeline_mode = #tpu.pipeline_mode<synchronous>, transform_indices = @transform_4, window_bounds = array<i64: 32, 32>}, {pipeline_mode = #tpu.pipeline_mode<synchronous>, transform_indices = @transform_5, window_bounds = array<i64: 1, 32>}, {pipeline_mode = #tpu.pipeline_mode<synchronous>, transform_indices = @transform_6, window_bounds = array<i64: 1, 32>}, {transform_indices = @transform_7, window_bounds = array<i64: 16, 32>}, {transform_indices = @transform_8, window_bounds = array<i64: 16, 16>}]} {
    %c0 = arith.constant 0 : index
    %c0_0 = arith.constant 0 : index
    %0 = vector.load %arg1[%c0, %c0_0] : memref<16x32xbf16, #tpu.memory_space<vmem>>, vector<16x32xbf16>
    %c0_1 = arith.constant 0 : index
    %c0_2 = arith.constant 0 : index
    %c0_3 = arith.constant 0 : index
    %1 = vector.load %arg2[%c0_1, %c0_2, %c0_3] : memref<16x16x32xbf16, #tpu.memory_space<vmem>>, vector<16x16x32xbf16>
    %c0_4 = arith.constant 0 : index
    %c0_5 = arith.constant 0 : index
    %2 = vector.load %arg3[%c0_4, %c0_5] : memref<32x32xbf16, #tpu.memory_space<vmem>>, vector<32x32xbf16>
    %cst = arith.constant dense<0.000000e+00> : vector<16x32xf32>
    %3 = tpu.matmul %0, %2, %cst {dimension_numbers = #tpu.dot_dimension_numbers<[1], [1], [0], [0], [0, 0, 1, 0], [], []>} : vector<16x32xbf16>, vector<32x32xbf16>, vector<16x32xf32> -> vector<16x32xf32>
    %c0_6 = arith.constant 0 : index
    %c0_7 = arith.constant 0 : index
    %4 = vector.load %arg4[%c0_6, %c0_7] : memref<1x32xf32, #tpu.memory_space<vmem>>, vector<1x32xf32>
    %5 = vector.broadcast %4 : vector<1x32xf32> to vector<16x32xf32>
    %6 = arith.addf %3, %5 : vector<16x32xf32>
    %7 = vector.shape_cast %1 : vector<16x16x32xbf16> to vector<256x32xbf16>
    %c0_8 = arith.constant 0 : index
    %c0_9 = arith.constant 0 : index
    %8 = vector.load %arg5[%c0_8, %c0_9] : memref<32x32xbf16, #tpu.memory_space<vmem>>, vector<32x32xbf16>
    %cst_10 = arith.constant dense<0.000000e+00> : vector<256x32xf32>
    %9 = tpu.matmul %7, %8, %cst_10 {dimension_numbers = #tpu.dot_dimension_numbers<[1], [1], [0], [0], [0, 0, 1, 0], [], []>} : vector<256x32xbf16>, vector<32x32xbf16>, vector<256x32xf32> -> vector<256x32xf32>
    %c0_11 = arith.constant 0 : index
    %c0_12 = arith.constant 0 : index
    %10 = vector.load %arg6[%c0_11, %c0_12] : memref<1x32xf32, #tpu.memory_space<vmem>>, vector<1x32xf32>
    %11 = vector.broadcast %10 : vector<1x32xf32> to vector<256x32xf32>
    %12 = arith.addf %9, %11 : vector<256x32xf32>
    %13 = vector.shape_cast %12 : vector<256x32xf32> to vector<16x16x32xf32>
    %14 = vector.shape_cast %6 : vector<16x32xf32> to vector<16x1x32xf32>
    %15 = vector.broadcast %14 : vector<16x1x32xf32> to vector<16x16x32xf32>
    %16 = arith.addf %15, %13 : vector<16x16x32xf32>
    %17 = math.tanh %16 : vector<16x16x32xf32>
    %c0_13 = arith.constant 0 : index
    %c0_14 = arith.constant 0 : index
    %18 = vector.load %arg7[%c0_13, %c0_14] : memref<1x32xf32, #tpu.memory_space<vmem>>, vector<1x32xf32>
    %19 = vector.shape_cast %18 : vector<1x32xf32> to vector<1x1x32xf32>
    %20 = vector.broadcast %19 : vector<1x1x32xf32> to vector<16x16x32xf32>
    %21 = arith.mulf %17, %20 : vector<16x16x32xf32>
    %cst_15 = arith.constant dense<0.000000e+00> : vector<16x16xf32>
    %22 = vector.multi_reduction <add>, %21, %cst_15 [2] : vector<16x16x32xf32> to vector<16x16xf32>
    %23 = tpu.iota {dimensions = array<i32: 1>} : vector<16x16xi32>
    %c8_i32 = arith.constant 8 : i32
    %24 = vector.broadcast %c8_i32 : i32 to vector<16x16xi32>
    %25 = arith.cmpi slt, %23, %24 : vector<16x16xi32>
    %cst_16 = arith.constant 0xFF800000 : f32
    %26 = vector.broadcast %cst_16 : f32 to vector<16x16xf32>
    %27 = arith.select %25, %22, %26 : vector<16x16xi1>, vector<16x16xf32>
    %cst_17 = arith.constant dense<0xFF800000> : vector<16xf32>
    %28 = vector.multi_reduction <maximumf>, %27, %cst_17 [1] : vector<16x16xf32> to vector<16xf32>
    %29 = vector.shape_cast %28 : vector<16xf32> to vector<16x1xf32>
    %30 = vector.broadcast %29 : vector<16x1xf32> to vector<16x16xf32>
    %31 = arith.subf %27, %30 : vector<16x16xf32>
    %32 = math.exp %31 : vector<16x16xf32>
    %cst_18 = arith.constant dense<0.000000e+00> : vector<16xf32>
    %33 = vector.multi_reduction <add>, %32, %cst_18 [1] : vector<16x16xf32> to vector<16xf32>
    %34 = vector.shape_cast %33 : vector<16xf32> to vector<16x1xf32>
    %35 = vector.broadcast %34 : vector<16x1xf32> to vector<16x16xf32>
    %36 = arith.divf %32, %35 : vector<16x16xf32>
    %37 = vector.shape_cast %36 : vector<16x16xf32> to vector<16x16x1xf32>
    %38 = arith.extf %1 : vector<16x16x32xbf16> to vector<16x16x32xf32>
    %39 = vector.broadcast %37 : vector<16x16x1xf32> to vector<16x16x32xf32>
    %40 = arith.mulf %39, %38 : vector<16x16x32xf32>
    %cst_19 = arith.constant dense<0.000000e+00> : vector<16x32xf32>
    %41 = vector.multi_reduction <add>, %40, %cst_19 [1] : vector<16x16x32xf32> to vector<16x32xf32>
    %c0_20 = arith.constant 0 : index
    %c0_21 = arith.constant 0 : index
    %42 = vector.load %arg8[%c0_20, %c0_21] : memref<16x32xf32, #tpu.memory_space<vmem>>, vector<16x32xf32>
    tpu.vector_store %arg8[%c0_20, %c0_21], %41 {strides = array<i32>} : memref<16x32xf32, #tpu.memory_space<vmem>>, vector<16x32xf32>,
    %c0_22 = arith.constant 0 : index
    %c0_23 = arith.constant 0 : index
    %43 = vector.load %arg9[%c0_22, %c0_23] : memref<16x16xf32, #tpu.memory_space<vmem>>, vector<16x16xf32>
    tpu.vector_store %arg9[%c0_22, %c0_23], %36 {strides = array<i32>} : memref<16x16xf32, #tpu.memory_space<vmem>>, vector<16x16xf32>,
    return
  }
  func.func @transform_0(%arg0: i32) -> (i32, i32) {
    %c0_i32 = arith.constant 0 : i32
    %c0_i32_0 = arith.constant 0 : i32
    return %arg0, %c0_i32 : i32, i32
  }
  func.func @transform_1(%arg0: i32) -> (i32, i32, i32) {
    %c0_i32 = arith.constant 0 : i32
    %c0_i32_0 = arith.constant 0 : i32
    %c0_i32_1 = arith.constant 0 : i32
    return %arg0, %c0_i32, %c0_i32_0 : i32, i32, i32
  }
  func.func @transform_2(%arg0: i32) -> (i32, i32) {
    %c0_i32 = arith.constant 0 : i32
    %c0_i32_0 = arith.constant 0 : i32
    %c0_i32_1 = arith.constant 0 : i32
    return %c0_i32, %c0_i32_0 : i32, i32
  }
  func.func @transform_3(%arg0: i32) -> (i32, i32) {
    %c0_i32 = arith.constant 0 : i32
    %c0_i32_0 = arith.constant 0 : i32
    %c0_i32_1 = arith.constant 0 : i32
    return %c0_i32, %c0_i32_0 : i32, i32
  }
  func.func @transform_4(%arg0: i32) -> (i32, i32) {
    %c0_i32 = arith.constant 0 : i32
    %c0_i32_0 = arith.constant 0 : i32
    %c0_i32_1 = arith.constant 0 : i32
    return %c0_i32, %c0_i32_0 : i32, i32
  }
  func.func @transform_5(%arg0: i32) -> (i32, i32) {
    %c0_i32 = arith.constant 0 : i32
    %c0_i32_0 = arith.constant 0 : i32
    %c0_i32_1 = arith.constant 0 : i32
    return %c0_i32, %c0_i32_0 : i32, i32
  }
  func.func @transform_6(%arg0: i32) -> (i32, i32) {
    %c0_i32 = arith.constant 0 : i32
    %c0_i32_0 = arith.constant 0 : i32
    %c0_i32_1 = arith.constant 0 : i32
    return %c0_i32, %c0_i32_0 : i32, i32
  }
  func.func @transform_7(%arg0: i32) -> (i32, i32) {
    %c0_i32 = arith.constant 0 : i32
    %c0_i32_0 = arith.constant 0 : i32
    return %arg0, %c0_i32 : i32, i32
  }
  func.func @transform_8(%arg0: i32) -> (i32, i32) {
    %c0_i32 = arith.constant 0 : i32
    %c0_i32_0 = arith.constant 0 : i32
    return %arg0, %c0_i32 : i32, i32
  }
}

</mosaic_0001>

<bundles_post_ra>
// kernel: tpu_custom_call.1
= control target key start
LH: loop header
LB: loop body
LE: loop exit
PB: predicated region body
PF: predicated region fallthrough
CT: control target
= control target key end

     0   :  { %14 = vsyncpa [#allocation3], 0  ;;  %s2657_s0 = inlined_call_operand.hbm [shape: bf16[16,32], index: 0, kind: input, shape index: {}]   ;;  %s2658_s1 = inlined_call_operand.hbm [shape: bf16[16,16,32], index: 1, kind: input, shape index: {}]   ;;  %s2659_s2 = inlined_call_operand.hbm [shape: bf16[32,32], index: 2, kind: input, shape index: {}]   ;;  %s2660_s3 = inlined_call_operand.vmem [shape: f32[1,32], index: 3, kind: input, shape index: {}]   ;;  %s2661_s4 = inlined_call_operand.hbm [shape: bf16[32,32], index: 4, kind: input, shape index: {}]   ;;  %s2662_s5 = inlined_call_operand.vmem [shape: f32[1,32], index: 5, kind: input, shape index: {}]   ;;  %s2663_s6 = inlined_call_operand.vmem [shape: f32[1,32], index: 6, kind: input, shape index: {}]   ;;  %s2664_s7 = inlined_call_operand.hbm [shape: f32[16,32], index: 7, kind: output, shape index: {0}]   ;;  %s2665_s8 = inlined_call_operand.hbm [shape: f32[16,16], index: 8, kind: output, shape index: {1}]  }
   0x1   :  { %15 = vsyncpa [#allocation6], 0 }
   0x2   :  { %16 = vsyncpa [#allocation9], 0 }
   0x3   :  { %17 = vsyncpa [#allocation4], 0 }
   0x4   :  { %18 = vsyncpa [#allocation12], 0  ;;  %s1970_s27 = smov [#allocation5]   ;;  %s1971_s29 = smov [#allocation2]  }
   0x5   :  { %s36_s28 = sshll.u32 %s1970_s27, 4  ;;  %s24_s30 = sshll.u32 %s1971_s29, 4  ;;  %s37_s28 = int_to_ptr.vmem [resolvable:$true] %s36_s28  ;;  %s2028_s30 = int_to_ptr.vmem [resolvable:$true] %s24_s30 }
   0x6   :  { %s1828_s11 = scalar_lea.hbm %s2658_s1, 2048 }
   0x7   :  { %p1829_p0 = scmp.ne.s32.totalorder %s2658_s1, %s1828_s11  ;;  %p1832_p1 = scmp.lt.u32.totalorder %s1828_s11, %s2658_s1 }
   0x9   :  { %p1834_p2 = pnand %p1832_p1, %p1829_p0 }
   0xb   :  { %1837 = shalt.err (!%p1834_p2)
}
   0xc   :  { %s1838_s16 = scalar_lea.vmem %s37_s28, 2048  ;;  %p1843_p4 = scmp.lt.s32.totalorder %s37_s28, %s37_s28 }
   0xd   :  { %p1839_p3 = scmp.ne.s32.totalorder %s37_s28, %s1838_s16  ;;  %p1844_p5 = scmp.lt.s32.totalorder %s1838_s16, %s1838_s16 }
   0xf   :  { %p1845_p6 = por %p1844_p5, %p1843_p4 }
  0x11   :  { %p1846_p7 = pnand %p1845_p6, %p1839_p3 }
  0x13   :  { %1849 = shalt.err (!%p1846_p7)
}
  0x14   :  { %s1972_s17 = smov 64   ;;  %s1973_s18 = smov 4  }
  0x15   :  { %42 = dma.hbm_to_vmem [thread:$0]  %s2658_s1, 2048, %s37_s28, [#allocation6], %s1972_s17, %s1972_s17, %s1973_s18  }
  0x16   :  { %s1850_s23 = scalar_lea.hbm %s2657_s0, 128 }
  0x17   :  { %p1851_p8 = scmp.ne.s32.totalorder %s2657_s0, %s1850_s23  ;;  %p1854_p9 = scmp.lt.u32.totalorder %s1850_s23, %s2657_s0 }
  0x19   :  { %p1856_p10 = pnand %p1854_p9, %p1851_p8 }
  0x1b   :  { %1859 = shalt.err (!%p1856_p10)
}
  0x1c   :  { %s1860_s29 = scalar_lea.vmem %s2028_s30, 128  ;;  %p1865_p12 = scmp.lt.s32.totalorder %s2028_s30, %s2028_s30 }
  0x1d   :  { %p1861_p11 = scmp.ne.s32.totalorder %s2028_s30, %s1860_s29  ;;  %p1866_p13 = scmp.lt.s32.totalorder %s1860_s29, %s1860_s29 }
  0x1f   :  { %p1867_p0 = por %p1866_p13, %p1865_p12 }
  0x21   :  { %p1868_p1 = pnand %p1867_p0, %p1861_p11 }
  0x23   :  { %1871 = shalt.err (!%p1868_p1)
}
  0x24   :  { %30 = dma.hbm_to_vmem [thread:$0]  %s2657_s0, 128, %s2028_s30, [#allocation3], %s1972_s17, %s1972_s17, %s1973_s18  }
  0x25   :  { %s1974_s9 = smov [#allocation7]   ;;  %s1975_s11 = smov [#allocation8]  }
  0x26   :  { %s48_s10 = sshll.u32 %s1974_s9, 4  ;;  %s62_s12 = sshll.u32 %s1975_s11, 4  ;;  %s49_s10 = int_to_ptr.vmem [resolvable:$true] %s48_s10  ;;  %s2065_s12 = int_to_ptr.vmem [resolvable:$true] %s62_s12 }
  0x27   :  { %s1872_s15 = scalar_lea.hbm %s2659_s2, 256 }
  0x28   :  { %p1873_p2 = scmp.ne.s32.totalorder %s2659_s2, %s1872_s15  ;;  %p1876_p3 = scmp.lt.u32.totalorder %s1872_s15, %s2659_s2 }
  0x2a   :  { %p1878_p4 = pnand %p1876_p3, %p1873_p2 }
  0x2c   :  { %1881 = shalt.err (!%p1878_p4)
}
  0x2d   :  { %s1882_s0 = scalar_lea.vmem %s49_s10, 256  ;;  %p1887_p6 = scmp.lt.s32.totalorder %s49_s10, %s49_s10 }
  0x2e   :  { %p1883_p5 = scmp.ne.s32.totalorder %s49_s10, %s1882_s0  ;;  %p1888_p7 = scmp.lt.s32.totalorder %s1882_s0, %s1882_s0 }
  0x30   :  { %p1889_p8 = por %p1888_p7, %p1887_p6 }
  0x32   :  { %p1890_p9 = pnand %p1889_p8, %p1883_p5 }
  0x34   :  { %1893 = shalt.err (!%p1890_p9)
}
  0x35   :  { %54 = dma.hbm_to_vmem [thread:$0]  %s2659_s2, 256, %s49_s10, [#allocation6], %s1972_s17, %s1972_s17, %s1973_s18  }
  0x36   :  { %s1894_s25 = scalar_lea.hbm %s2661_s4, 256 }
  0x37   :  { %p1895_p10 = scmp.ne.s32.totalorder %s2661_s4, %s1894_s25  ;;  %p1898_p11 = scmp.lt.u32.totalorder %s1894_s25, %s2661_s4 }
  0x39   :  { %p1900_p12 = pnand %p1898_p11, %p1895_p10 }
  0x3b   :  { %1903 = shalt.err (!%p1900_p12)
}
  0x3c   :  { %s1904_s28 = scalar_lea.vmem %s2065_s12, 256  ;;  %p1909_p0 = scmp.lt.s32.totalorder %s2065_s12, %s2065_s12 }
  0x3d   :  { %p1905_p13 = scmp.ne.s32.totalorder %s2065_s12, %s1904_s28  ;;  %p1910_p1 = scmp.lt.s32.totalorder %s1904_s28, %s1904_s28 }
  0x3f   :  { %p1911_p2 = por %p1910_p1, %p1909_p0 }
  0x41   :  { %p1912_p3 = pnand %p1911_p2, %p1905_p13 }
  0x43   :  { %1915 = shalt.err (!%p1912_p3)
}
  0x44   :  { %68 = dma.hbm_to_vmem [thread:$0]  %s2661_s4, 256, %s2065_s12, [#allocation9], %s1972_s17, %s1972_s17, %s1973_s18  }
  0x45   :  { %1960 = dma.done.wait [#allocation3], 128  }
  0x46   :  { %1961 = vsyncadd [#allocation3], 4294967168 }
  0x47   :  { %1962 = dma.done.wait [#allocation6], 2304  }
  0x48   :  { %1963 = vsyncadd [#allocation6], 4294964992 }
  0x49   :  { %1964 = dma.done.wait [#allocation9], 256  }
  0x4a   :  { %1965 = vsyncadd [#allocation9], 4294967040  ;;  %v1976_v0 = vmov 0.0   ;;  %vm1977_vm0 = vmmov 0   ;;  %vm146_vm1 = vcmask 261120   ;;  %v1703_v1 = vld [vmem:[#allocation8] sm:$0xff]   ;;  %v519_v28 = vlaneseq }
  0x4b   :  { %1638 = vmatprep.subr.bf16.mxu0 %v1976_v0  ;;  %1642 = vmatprep.mubr.msk.bf16.mxu0 %vm1977_vm0, %v1976_v0  ;;  %v1704_v2 = vld [vmem:[#allocation7] sm:$0xff]   ;;  %v347_v3 = vsel %vm146_vm1, %v1703_v1, 0  ;;  %v1705_v4 = vld [vmem:[#allocation8 + $0x8] sm:$0xff]   ;;  %v100_v6 = vld [vmem:[#allocation5 + $0x30] sm:$0xff]   ;;  %v1978_v26 = vmov 1966171168  }
  0x4c   :  { %1687 = vmatprep.subr.msk.bf16.mxu1 %vm146_vm1, %v1703_v1  ;;  %v151_v5 = vsel %vm146_vm1, %v1704_v2, 0  ;;  %v1706_v7 = vld [vmem:[#allocation7 + $0x8] sm:$0xff]   ;;  %1662 = vmatprep.mubr.msk.bf16.mxu1 %vm146_vm1, %v100_v6  ;;  %v350_v8 = vsel %vm146_vm1, %v1705_v4, 0  ;;  %v102_v10 = vld [vmem:[#allocation5 + $0x38] sm:$0xff]   ;;  %v104_v11 = vld [vmem:[#allocation5 + $0x40] sm:$0xff]   ;;  %v517_v27 = vunpack.c.l.s4 %v1978_v26  ;;  %v2128_v30 = vshrl.u32 %v519_v28, 7 }
  0x4d   :  { %1684 = vmatpush3.bf16.xpose.msra.mxu1 %v347_v3  ;;  %1639 = vmatpush3.bf16.xpose.msra.mxu0 %v151_v5  ;;  %v154_v9 = vsel %vm146_vm1, %v1706_v7, 0  ;;  %v88_v12 = vld [vmem:[#allocation5] sm:$0xff]   ;;  %v1708_v13 = vld [vmem:[#allocation2] sm:$0xff]   ;;  %v106_v14 = vld [vmem:[#allocation5 + $0x48] sm:$0xff]   ;;  %vm936_vm2 = vcmask 130112   ;;  %vm1073_vm3 = vcmask 1041409  }
  0x4e   :  { %1689 = vmatprep.subr.msk.bf16.mxu1 %vm146_vm1, %v1705_v4  ;;  %1640 = vmatprep.subr.bf16.mxu0 %v1976_v0  ;;  %v108_v15 = vld [vmem:[#allocation5 + $0x50] sm:$0xff]   ;;  %v110_v16 = vld [vmem:[#allocation5 + $0x58] sm:$0xff]   ;;  %v90_v17 = vld [vmem:[#allocation5 + $0x8] sm:$0xff]   ;;  %v518_v29 = vunpack.c.0.s8 %v517_v27  ;;  %v2145_v50 = vsub.s32 0, %v2128_v30  ;;  %vm1075_vm4 = vcmask 1042434   ;;  %vm1077_vm5 = vcmask 1043459  }
  0x4f   :  { %v112_v18 = vld [vmem:[#allocation5 + $0x60] sm:$0xff]   ;;  %v92_v19 = vld [vmem:[#allocation5 + $0x10] sm:$0xff]   ;;  %v114_v20 = vld [vmem:[#allocation5 + $0x68] sm:$0xff]   ;;  %vm1079_vm6 = vcmask 1044484   ;;  %vm1083_vm7 = vcmask 1046534   ;;  %vm1081_vm8 = vcmask 1045509  }
  0x50   :  { %v94_v21 = vld [vmem:[#allocation5 + $0x18] sm:$0xff]   ;;  %v116_v22 = vld [vmem:[#allocation5 + $0x70] sm:$0xff]   ;;  %v96_v23 = vld [vmem:[#allocation5 + $0x20] sm:$0xff]   ;;  %v2134_v32 = vsub.s32 %v518_v29, %v2128_v30  ;;  %vm1085_vm9 = vcmask 1047559   ;;  %vm1098_vm11 = vcmask 130048  }
  0x51   :  { %v118_v24 = vld [vmem:[#allocation5 + $0x78] sm:$0xff]   ;;  %v98_v25 = vld [vmem:[#allocation5 + $0x28] sm:$0xff]  }
  0x52   :  { %v1576_v31 = vld [vmem:[%s2660_s3] ss:$0 sm:$0xff] }
  0x53   :  { %v2140_v43 = vld [vmem:[%s2662_s5] ss:$0 sm:$0xff] }
  0x55   :  { %1685 = vmatpush3.bf16.xpose.msra.mxu1 %v350_v8  ;;  %1641 = vmatpush3.bf16.xpose.msra.mxu0 %v154_v9 }
  0x56   :  { %1686 = vmatprep.subr.msk.bf16.mxu0 %vm146_vm1, %v1703_v1 }
  0x5c   :  { %1663 = vmatmul.mubr.msk.bf16.vlgmr.msra.gmra.mrb[0].mxu1 %vm146_vm1, %v102_v10  ;;  %1643 = vmatmul.mubr.msk.bf16.vlgmr.msra.gmra.mrb[0].mxu0 %vm146_vm1, %v1708_v13 }
  0x5d   :  { %1666 = vmatprep.mubr.msk.bf16.mxu1 %vm146_vm1, %v104_v11  ;;  %1647 = vmatpush3.bf16.xpose.msra.mxu0 %v347_v3 }
  0x5e   :  { %1650 = vmatprep.mubr.msk.bf16.mxu0 %vm146_vm1, %v88_v12  ;;  %1688 = vmatprep.subr.msk.bf16.mxu0 %vm146_vm1, %v1705_v4 }
  0x64   :  { %1667 = vmatmul.mubr.msk.bf16.gmra.mrb[4].mxu1 %vm146_vm1, %v106_v14 }
  0x65   :  { %1670 = vmatprep.mubr.msk.bf16.mxu1 %vm146_vm1, %v108_v15  ;;  %1649 = vmatpush3.bf16.xpose.msra.mxu0 %v350_v8 }
  0x6c   :  { %1671 = vmatmul.mubr.msk.bf16.gmra.mrb[8].mxu1 %vm146_vm1, %v110_v16  ;;  %1651 = vmatmul.mubr.msk.bf16.vlgmr.msra.gmra.mrb[4].mxu0 %vm146_vm1, %v90_v17 }
  0x6d   :  { %1674 = vmatprep.mubr.msk.bf16.mxu1 %vm146_vm1, %v112_v18  ;;  %1654 = vmatprep.mubr.msk.bf16.mxu0 %vm146_vm1, %v92_v19 }
  0x74   :  { %1675 = vmatmul.mubr.msk.bf16.gmra.mrb[12].mxu1 %vm146_vm1, %v114_v20  ;;  %1655 = vmatmul.mubr.msk.bf16.gmra.mrb[8].mxu0 %vm146_vm1, %v94_v21 }
  0x75   :  { %1678 = vmatprep.mubr.msk.bf16.mxu1 %vm146_vm1, %v116_v22  ;;  %1658 = vmatprep.mubr.msk.bf16.mxu0 %vm146_vm1, %v96_v23 }
  0x7c   :  { %1679 = vmatmul.mubr.msk.bf16.gmra.mrb[16].mxu1 %vm146_vm1, %v118_v24  ;;  %1659 = vmatmul.mubr.msk.bf16.gmra.mrb[12].mxu0 %vm146_vm1, %v98_v25 }
 0x12f   :  { %v1664_v33 = vpop.f32.mrb[0].mxu1  ;;  %v190_v34 = vpop.f32.mrb[0].mxu0 }
 0x130   :  { %v434_v35 = vpop.f32.mrb[1].mxu1  ;;  %v191_v36 = vadd.f32 %v1576_v31, %v190_v34  ;;  %v1644_v37 = vpop.f32.mrb[1].mxu0  ;;  %v443_v49 = vadd.f32 %v1664_v33, %v2140_v43 }
 0x131   :  { %v1665_v38 = vpop.f32.mrb[2].mxu1  ;;  %v193_v39 = vpop.f32.mrb[2].mxu0  ;;  %v435_v54 = vadd.f32 %v2140_v43, %v434_v35 }
 0x132   :  { %v437_v40 = vpop.f32.mrb[3].mxu1  ;;  %v515_v41 = vcombine.high %v191_v36, %v191_v36  ;;  %v522_v42 = vrot.slane %v191_v36, %v2134_v32  ;;  %v194_v44 = vadd.f32 %v1576_v31, %v193_v39  ;;  %v1645_v45 = vpop.f32.mrb[3].mxu0  ;;  %v446_v55 = vadd.f32 %v1665_v38, %v2140_v43 }
 0x133   :  { %v438_v60 = vadd.f32 %v2140_v43, %v437_v40 }
 0x134   :  { %v529_v46 = vrot.slane %v515_v41, %v2134_v32  ;;  %v564_v47 = vcombine.high %v194_v44, %v194_v44  ;;  %v530_v48 = vcombine.high %v522_v42, %v522_v42  ;;  %v571_v51 = vrot.slane %v194_v44, %v2134_v32 }
 0x135   :  { %v2154_v57 = vrot.slane %v522_v42, %v2134_v32 }
 0x136   :  { %v531_v52 = vcombine.high %v529_v46, %v529_v46  ;;  %v2149_v53 = vrot.slane %v529_v46, %v2134_v32  ;;  %v579_v58 = vcombine.high %v571_v51, %v571_v51  ;;  %v587_v59 = vrot.slane %v571_v51, %v2134_v32 }
 0x137   :  { %v1668_v56 = vpop.f32.mrb[4].mxu1  ;;  %v578_v0 = vrot.slane %v564_v47, %v2134_v32  ;;  %v2169_v7 = vrot.slane %v530_v48, %v2134_v32  ;;  %v616_v26 = vrot.slane %v2154_v57, %v2145_v50 }
 0x138   :  { %v450_v61 = vpop.f32.mrb[5].mxu1  ;;  %v2159_v62 = vrot.slane %v531_v52, %v2134_v32  ;;  %v561_v63 = vcombine.high %v2149_v53, %v2149_v53  ;;  %v601_v3 = vrot.slane %v579_v58, %v2134_v32  ;;  %v648_v4 = vrot.slane %v587_v59, %v2145_v50 }
 0x139   :  { %v451_v1 = vadd.f32 %v2140_v43, %v450_v61  ;;  %v1669_v2 = vpop.f32.mrb[6].mxu1  ;;  %v459_v10 = vadd.f32 %v1668_v56, %v2140_v43  ;;  %v609_v15 = vcombine.high %v587_v59, %v587_v59  ;;  %v580_v20 = vcombine.high %v578_v0, %v578_v0 }
 0x13a   :  { %v462_v5 = vadd.f32 %v1669_v2, %v2140_v43  ;;  %v453_v6 = vpop.f32.mrb[7].mxu1  ;;  %v563_v8 = vcombine.high %v2159_v62, %v2159_v62  ;;  %v640_v9 = vrot.slane %v561_v63, %v2145_v50  ;;  %v652_v12 = vrot.slane %v601_v3, %v2145_v50 }
 0x13b   :  { %v454_v11 = vadd.f32 %v2140_v43, %v453_v6  ;;  %v709_v13 = vadd.f32 %v648_v4, %v451_v1  ;;  %v611_v14 = vcombine.high %v601_v3, %v601_v3  ;;  %v620_v29 = vrot.slane %v2169_v7, %v2145_v50  ;;  %v2213_v1 = vld [vmem:[%s2663_s6] ss:$0 sm:$0xff]  ;;  %s1979_s6 = smov [#allocation11]  }
 0x13c   :  { %v644_v16 = vrot.slane %v563_v8, %v2145_v50  ;;  %v705_v17 = vadd.f32 %v640_v9, %v435_v54  ;;  %v706_v18 = vadd.f32 %v640_v9, %v438_v60  ;;  %v711_v21 = vadd.f32 %v652_v12, %v459_v10  ;;  %s1558_s11 = sshll.u32 %s1979_s6, 4  ;;  %s1559_s11 = int_to_ptr.vmem [resolvable:$true] %s1558_s11 }
 0x13d   :  { %v710_v19 = vadd.f32 %v648_v4, %v454_v11  ;;  %1740 = vtanh.f32 %v709_v13  ;;  %v712_v22 = vadd.f32 %v652_v12, %v462_v5  ;;  %v660_v33 = vrot.slane %v611_v14, %v2145_v50  ;;  %s1916_s12 = scalar_lea.vmem %s1559_s11, 256  ;;  %p1921_p5 = scmp.lt.s32.totalorder %s1559_s11, %s1559_s11 }
 0x13e   :  { %v707_v23 = vadd.f32 %v644_v16, %v443_v49  ;;  %v708_v24 = vadd.f32 %v644_v16, %v446_v55  ;;  %v562_v35 = vcombine.high %v2169_v7, %v2169_v7  ;;  %1742 = vtanh.f32 %v706_v18  ;;  %p1917_p4 = scmp.ne.s32.totalorder %s1559_s11, %s1916_s12  ;;  %p1922_p6 = scmp.lt.s32.totalorder %s1916_s12, %s1916_s12 }
 0x13f   :  { %v1672_v25 = vpop.f32.mrb[8].mxu1  ;;  %v1652_v27 = vpop.f32.mrb[4].mxu0  ;;  %v656_v39 = vrot.slane %v609_v15, %v2145_v50  ;;  %v2192_v47 = vrot.slane %v580_v20, %v2134_v32  ;;  %1744 = vtanh.f32 %v711_v21  ;;  %v560_v61 = vcombine.high %v2154_v57, %v2154_v57 }
 0x140   :  { %v475_v31 = vadd.f32 %v1672_v25, %v2140_v43  ;;  %v466_v34 = vpop.f32.mrb[9].mxu1  ;;  %v395_v36 = vadd.f32 %v1652_v27, %v2140_v43  ;;  %v386_v37 = vpop.f32.mrb[5].mxu0  ;;  %1746 = vtanh.f32 %v712_v22  ;;  %v594_v63 = vrot.slane %v578_v0, %v2134_v32  ;;  %p1923_p7 = por %p1922_p6, %p1921_p5 }
 0x141   :  { %v467_v38 = vadd.f32 %v2140_v43, %v466_v34  ;;  %v1673_v40 = vpop.f32.mrb[10].mxu1  ;;  %v387_v42 = vadd.f32 %v2140_v43, %v386_v37  ;;  %v1653_v44 = vpop.f32.mrb[6].mxu0  ;;  %1748 = vtanh.f32 %v705_v17  ;;  %v628_v6 = vrot.slane %v562_v35, %v2145_v50 }
 0x142   :  { %v715_v41 = vadd.f32 %v660_v33, %v475_v31  ;;  %v478_v45 = vadd.f32 %v1673_v40, %v2140_v43  ;;  %v469_v46 = vpop.f32.mrb[11].mxu1  ;;  %v695_v48 = vadd.f32 %v620_v29, %v395_v36  ;;  %v398_v51 = vadd.f32 %v1653_v44, %v2140_v43  ;;  %v389_v52 = vpop.f32.mrb[7].mxu0  ;;  %p1924_p8 = pnand %p1923_p7, %p1917_p4 }
 0x143   :  { %v2194_v49 = vadd.f32 %v656_v39, %v467_v38  ;;  %v2197_v54 = vadd.f32 %v616_v26, %v387_v42  ;;  %v390_v56 = vadd.f32 %v2140_v43, %v389_v52  ;;  %v470_v59 = vadd.f32 %v2140_v43, %v469_v46 }
 0x144   :  { %v2199_v55 = vadd.f32 %v660_v33, %v478_v45  ;;  %v2202_v58 = vadd.f32 %v620_v29, %v398_v51  ;;  %1750 = vtanh.f32 %v707_v23  ;;  %v668_v57 = vrot.slane %v2192_v47, %v2145_v50 }
 0x145   :  { %v2205_v60 = vadd.f32 %v616_v26, %v390_v56  ;;  %1752 = vtanh.f32 %v708_v24  ;;  %v2215_v2 = vadd.f32 %v656_v39, %v470_v59  ;;  %v664_v10 = vrot.slane %v594_v63, %v2145_v50 }
 0x146   :  { %1754 = vtanh.f32 %v710_v19  ;;  %v624_v15 = vrot.slane %v560_v61, %v2145_v50  ;;  %v612_v24 = vcombine.high %v2192_v47, %v2192_v47  ;;  %v610_v29 = vcombine.high %v594_v63, %v594_v63 }
 0x147   :  { %v1676_v3 = vpop.f32.mrb[12].mxu1  ;;  %v1741_v4 = vpop.eup %1740  ;;  %1756 = vtanh.f32 %v715_v41  ;;  %v636_v45 = vrot.slane %v2159_v62, %v2145_v50 }
 0x148   :  { %v1656_v5 = vpop.f32.mrb[8].mxu0  ;;  %v491_v7 = vadd.f32 %v1676_v3, %v2140_v43  ;;  %v482_v32 = vpop.f32.mrb[13].mxu1  ;;  %v780_v12 = vmul.f32 %v1741_v4, %v2213_v1  ;;  %1758 = vtanh.f32 %v695_v48  ;;  %v676_v41 = vrot.slane %v612_v24, %v2145_v50 }
 0x149   :  { %v411_v0 = vadd.f32 %v1656_v5, %v2140_v43  ;;  %v402_v8 = vpop.f32.mrb[9].mxu0  ;;  %v483_v9 = vadd.f32 %v2140_v43, %v482_v32  ;;  %v1677_v11 = vpop.f32.mrb[14].mxu1  ;;  %v672_v59 = vrot.slane %v610_v29, %v2145_v50  ;;  %1760 = vtanh.f32 %v2197_v54 }
 0x14a   :  { %v2225_v13 = vadd.f32 %v668_v57, %v491_v7  ;;  %v403_v14 = vadd.f32 %v2140_v43, %v402_v8  ;;  %v1657_v16 = vpop.f32.mrb[10].mxu0  ;;  %v494_v17 = vadd.f32 %v1677_v11, %v2140_v43  ;;  %v485_v18 = vpop.f32.mrb[15].mxu1  ;;  %v844_v35 = vsel %vm146_vm1, %v780_v12, 0.0 }
 0x14b   :  { %v1743_v19 = vpop.eup %1742  ;;  %v2230_v20 = vadd.f32 %v628_v6, %v411_v0  ;;  %v2232_v21 = vadd.f32 %v664_v10, %v483_v9  ;;  %v414_v22 = vadd.f32 %v1657_v16, %v2140_v43  ;;  %v405_v23 = vpop.f32.mrb[11].mxu0  ;;  %v486_v34 = vadd.f32 %v2140_v43, %v485_v18  ;;  %845 = vadd.xlane.f32.xlu0 %v844_v35 }
 0x14c   :  { %v2237_v25 = vadd.f32 %v624_v15, %v403_v14  ;;  %v2239_v26 = vadd.f32 %v668_v57, %v494_v17  ;;  %v406_v27 = vadd.f32 %v2140_v43, %v405_v23  ;;  %v1745_v31 = vpop.eup %1744  ;;  %v777_v62 = vmul.f32 %v1743_v19, %v2213_v1 }
 0x14d   :  { %v2242_v33 = vadd.f32 %v628_v6, %v414_v22  ;;  %v1747_v36 = vpop.eup %1746  ;;  %v782_v38 = vmul.f32 %v1745_v31, %v2213_v1  ;;  %v2249_v40 = vadd.f32 %v664_v10, %v486_v34  ;;  %v632_v10 = vrot.slane %v2149_v53, %v2145_v50 }
 0x14e   :  { %v2246_v37 = vadd.f32 %v624_v15, %v406_v27  ;;  %v1749_v39 = vpop.eup %1748  ;;  %v783_v42 = vmul.f32 %v1747_v36, %v2213_v1  ;;  %1762 = vtanh.f32 %v2202_v58  ;;  %v835_v15 = vsel %vm146_vm1, %v777_v62, 0.0 }
 0x14f   :  { %v1680_v44 = vpop.f32.mrb[16].mxu1  ;;  %v1751_v46 = vpop.eup %1750  ;;  %v850_v51 = vsel %vm146_vm1, %v782_v38, 0.0  ;;  %v776_v18 = vmul.f32 %v1749_v39, %v2213_v1  ;;  %1764 = vtanh.f32 %v2194_v49 }
 0x150   :  { %v507_v47 = vadd.f32 %v1680_v44, %v2140_v43  ;;  %v1660_v52 = vpop.f32.mrb[12].mxu0  ;;  %v498_v56 = vpop.f32.mrb[17].mxu1  ;;  %v853_v61 = vsel %vm146_vm1, %v783_v42, 0.0  ;;  %851 = vadd.xlane.f32.xlu0 %v850_v51  ;;  %1766 = vtanh.f32 %v2199_v55 }
 0x151   :  { %v1753_v48 = vpop.eup %1752  ;;  %v427_v63 = vadd.f32 %v1660_v52, %v2140_v43  ;;  %v499_v3 = vadd.f32 %v2140_v43, %v498_v56  ;;  %v418_v4 = vpop.f32.mrb[13].mxu0  ;;  %854 = vadd.xlane.f32.xlu1 %v853_v61  ;;  %v832_v23 = vsel %vm146_vm1, %v776_v18, 0.0  ;;  %1768 = vtanh.f32 %v2205_v60 }
 0x152   :  { %v1681_v5 = vpop.f32.mrb[18].mxu1  ;;  %v1755_v6 = vpop.eup %1754  ;;  %v2263_v7 = vadd.f32 %v676_v41, %v507_v47  ;;  %v419_v57 = vadd.f32 %v2140_v43, %v418_v4  ;;  %v779_v31 = vmul.f32 %v1753_v48, %v2213_v1 }
 0x153   :  { %v1661_v32 = vpop.f32.mrb[14].mxu0  ;;  %v501_v0 = vpop.f32.mrb[19].mxu1  ;;  %v2266_v8 = vadd.f32 %v636_v45, %v427_v63  ;;  %v2268_v9 = vadd.f32 %v672_v59, %v499_v3  ;;  %v510_v12 = vadd.f32 %v1681_v5, %v2140_v43  ;;  %v781_v24 = vmul.f32 %v1755_v6, %v2213_v1 }
 0x154   :  { %v421_v11 = vpop.f32.mrb[15].mxu0  ;;  %v430_v54 = vadd.f32 %v1661_v32, %v2140_v43  ;;  %v2277_v16 = vadd.f32 %v632_v10, %v419_v57  ;;  %v502_v17 = vadd.f32 %v2140_v43, %v501_v0  ;;  %v1757_v27 = vpop.eup %1756  ;;  %833 = vadd.xlane.f32.xlu0 %v832_v23  ;;  %v841_v55 = vsel %vm146_vm1, %v779_v31, 0.0 }
 0x155   :  { %v422_v14 = vadd.f32 %v2140_v43, %v421_v11  ;;  %836 = vadd.xlane.f32.xlu1 %v835_v15  ;;  %v724_v58 = vadd.f32 %v676_v41, %v510_v12  ;;  %v778_v43 = vmul.f32 %v1751_v46, %v2213_v1  ;;  %v1759_v29 = vpop.eup %1758  ;;  %v847_v49 = vsel %vm146_vm1, %v781_v24, 0.0 }
 0x156   :  { %v2282_v53 = vadd.f32 %v636_v45, %v430_v54  ;;  %v2286_v22 = vadd.f32 %v672_v59, %v502_v17  ;;  %v786_v35 = vmul.f32 %v1757_v27, %v2213_v1  ;;  %v1761_v36 = vpop.eup %1760  ;;  %v766_v38 = vmul.f32 %v1759_v29, %v2213_v1 }
 0x157   :  { %v2284_v19 = vadd.f32 %v632_v10, %v422_v14  ;;  %1770 = vtanh.f32 %v724_v58  ;;  %v838_v34 = vsel %vm146_vm1, %v778_v43, 0.0  ;;  %v764_v42 = vmul.f32 %v1761_v36, %v2213_v1 }
 0x158   :  { %1772 = vtanh.f32 %v2215_v2  ;;  %839 = vadd.xlane.f32.xlu0 %v838_v34  ;;  %v1763_v39 = vpop.eup %1762  ;;  %v862_v60 = vsel %vm146_vm1, %v786_v35, 0.0  ;;  %v802_v45 = vsel %vm146_vm1, %v766_v38, 0.0 }
 0x159   :  { %848 = vadd.xlane.f32.xlu1 %v847_v49  ;;  %1774 = vtanh.f32 %v2230_v20  ;;  %v1765_v44 = vpop.eup %1764  ;;  %v767_v2 = vmul.f32 %v1763_v39, %v2213_v1  ;;  %v796_v47 = vsel %vm146_vm1, %v764_v42, 0.0 }
 0x15a   :  { %1776 = vtanh.f32 %v2242_v33  ;;  %v1767_v46 = vpop.eup %1766  ;;  %v784_v20 = vmul.f32 %v1765_v44, %v2213_v1 }
 0x15b   :  { %1778 = vtanh.f32 %v2225_v13  ;;  %v1769_v41 = vpop.eup %1768  ;;  %v805_v33 = vsel %vm146_vm1, %v767_v2, 0.0  ;;  %v787_v52 = vmul.f32 %v1767_v46, %v2213_v1 }
 0x15c   :  { %863 = vadd.xlane.f32.xlu0 %v862_v60  ;;  %1780 = vtanh.f32 %v2239_v26  ;;  %v856_v59 = vsel %vm146_vm1, %v784_v20, 0.0  ;;  %v765_v48 = vmul.f32 %v1769_v41, %v2213_v1 }
 0x15d   :  { %842 = vadd.xlane.f32.xlu1 %v841_v55  ;;  %1782 = vtanh.f32 %v2237_v25  ;;  %v865_v26 = vsel %vm146_vm1, %v787_v52, 0.0 }
 0x15e   :  { %1784 = vtanh.f32 %v2246_v37  ;;  %v799_v25 = vsel %vm146_vm1, %v765_v48, 0.0 }
 0x15f   :  { %1786 = vtanh.f32 %v2232_v21 }
 0x160   :  { %797 = vadd.xlane.f32.xlu0 %v796_v47  ;;  %1788 = vtanh.f32 %v2249_v40 }
 0x161   :  { %803 = vadd.xlane.f32.xlu1 %v802_v45  ;;  %v1771_v51 = vpop.eup %1770  ;;  %1790 = vtanh.f32 %v2266_v8 }
 0x162   :  { %v1773_v56 = vpop.eup %1772  ;;  %v2314_v13 = vmul.f32 %v1771_v51, %v2213_v1  ;;  %1792 = vtanh.f32 %v2282_v53 }
 0x163   :  { %v1775_v61 = vpop.eup %1774  ;;  %v785_v63 = vmul.f32 %v1773_v56, %v2213_v1  ;;  %1794 = vtanh.f32 %v2277_v16 }
 0x164   :  { %857 = vadd.xlane.f32.xlu0 %v856_v59  ;;  %v1777_v3 = vpop.eup %1776  ;;  %v770_v62 = vmul.f32 %v1775_v61, %v2213_v1  ;;  %1796 = vtanh.f32 %v2284_v19  ;;  %v889_v46 = vsel %vm146_vm1, %v2314_v13, 0.0 }
 0x165   :  { %806 = vadd.xlane.f32.xlu1 %v805_v33  ;;  %v1779_v4 = vpop.eup %1778  ;;  %v859_v5 = vsel %vm146_vm1, %v785_v63, 0.0  ;;  %v771_v37 = vmul.f32 %v1777_v3, %v2213_v1  ;;  %1798 = vtanh.f32 %v2268_v9 }
 0x166   :  { %v1781_v6 = vpop.eup %1780  ;;  %v814_v57 = vsel %vm146_vm1, %v770_v62, 0.0  ;;  %v790_v21 = vmul.f32 %v1779_v4, %v2213_v1  ;;  %1800 = vtanh.f32 %v2286_v22 }
 0x167   :  { %v1783_v32 = vpop.eup %1782  ;;  %v817_v0 = vsel %vm146_vm1, %v771_v37, 0.0  ;;  %v791_v40 = vmul.f32 %v1781_v6, %v2213_v1  ;;  %1802 = vtanh.f32 %v2263_v7 }
 0x168   :  { %800 = vadd.xlane.f32.xlu0 %v799_v25  ;;  %v1785_v10 = vpop.eup %1784  ;;  %v874_v11 = vsel %vm146_vm1, %v790_v21, 0.0  ;;  %v768_v8 = vmul.f32 %v1783_v32, %v2213_v1 }
 0x169   :  { %866 = vadd.xlane.f32.xlu1 %v865_v26  ;;  %v1787_v54 = vpop.eup %1786  ;;  %v877_v12 = vsel %vm146_vm1, %v791_v40, 0.0  ;;  %v769_v14 = vmul.f32 %v1785_v10, %v2213_v1 }
 0x16a   :  { %v1789_v15 = vpop.eup %1788  ;;  %v808_v17 = vsel %vm146_vm1, %v768_v8, 0.0  ;;  %v788_v16 = vmul.f32 %v1787_v54, %v2213_v1 }
 0x16b   :  { %v1791_v18 = vpop.eup %1790  ;;  %v811_v53 = vsel %vm146_vm1, %v769_v14, 0.0  ;;  %v789_v58 = vmul.f32 %v1789_v15, %v2213_v1 }
 0x16c   :  { %815 = vadd.xlane.f32.xlu0 %v814_v57  ;;  %v1793_v19 = vpop.eup %1792  ;;  %v868_v23 = vsel %vm146_vm1, %v788_v16, 0.0  ;;  %v774_v9 = vmul.f32 %v1791_v18, %v2213_v1 }
 0x16d   :  { %860 = vadd.xlane.f32.xlu1 %v859_v5  ;;  %v1795_v24 = vpop.eup %1794  ;;  %v871_v27 = vsel %vm146_vm1, %v789_v58, 0.0  ;;  %v775_v43 = vmul.f32 %v1793_v19, %v2213_v1  ;;  %v2383_v5 = vand.u32 127, %v519_v28 }
 0x16e   :  { %v1797_v22 = vpop.eup %1796  ;;  %v826_v29 = vsel %vm146_vm1, %v774_v9, 0.0  ;;  %v772_v49 = vmul.f32 %v1795_v24, %v2213_v1 }
 0x16f   :  { %v1799_v31 = vpop.eup %1798  ;;  %v829_v7 = vsel %vm146_vm1, %v775_v43, 0.0  ;;  %v773_v34 = vmul.f32 %v1797_v22, %v2213_v1  ;;  %v931_v57 = vadd.s32 4294967288, %v2383_v5  ;;  %v2395_v10 = vsub.s32 %v2383_v5, %v2128_v30 }
 0x170   :  { %875 = vadd.xlane.f32.xlu0 %v874_v11  ;;  %v1801_v35 = vpop.eup %1800  ;;  %v820_v36 = vsel %vm146_vm1, %v772_v49, 0.0  ;;  %v792_v55 = vmul.f32 %v1799_v31, %v2213_v1  ;;  %vm894_vm10 = vcmp.lt.s32.totalorder %v2383_v5, 8 }
 0x171   :  { %818 = vadd.xlane.f32.xlu1 %v817_v0  ;;  %v1803_v38 = vpop.eup %1802  ;;  %v823_v39 = vsel %vm146_vm1, %v773_v34, 0.0  ;;  %v793_v60 = vmul.f32 %v1801_v35, %v2213_v1  ;;  %v2391_v0 = vsub.s32 %v931_v57, %v2128_v30 }
 0x172   :  { %v880_v42 = vsel %vm146_vm1, %v792_v55, 0.0  ;;  %v794_v44 = vmul.f32 %v1803_v38, %v2213_v1 }
 0x173   :  { %v883_v45 = vsel %vm146_vm1, %v793_v60, 0.0 }
 0x174   :  { %809 = vadd.xlane.f32.xlu0 %v808_v17  ;;  %v886_v2 = vsel %vm146_vm1, %v794_v44, 0.0 }
 0x175   :  { %878 = vadd.xlane.f32.xlu1 %v877_v12 }
 0x178   :  { %869 = vadd.xlane.f32.xlu0 %v868_v23 }
 0x179   :  { %812 = vadd.xlane.f32.xlu1 %v811_v53 }
 0x17c   :  { %827 = vadd.xlane.f32.xlu0 %v826_v29 }
 0x17d   :  { %872 = vadd.xlane.f32.xlu1 %v871_v27 }
 0x180   :  { %821 = vadd.xlane.f32.xlu0 %v820_v36 }
 0x181   :  { %830 = vadd.xlane.f32.xlu1 %v829_v7 }
 0x184   :  { %881 = vadd.xlane.f32.xlu0 %v880_v42 }
 0x185   :  { %824 = vadd.xlane.f32.xlu1 %v823_v39 }
 0x188   :  { %887 = vadd.xlane.f32.xlu0 %v886_v2 }
 0x189   :  { %884 = vadd.xlane.f32.xlu1 %v883_v45 }
 0x18d   :  { %890 = vadd.xlane.f32.xlu1 %v889_v46 }
 0x1d8   :  { %v846_v47 = vpop.xlane.xlu0 %845 }
 0x1d9   :  { %v1004_v16 = vrot.slane %v846_v47, %v2395_v10 }
 0x1dd   :  { %v2366_v41 = vpop.xlane.xlu0 %851 }
 0x1de   :  { %v2364_v20 = vpop.xlane.xlu1 %854  ;;  %v1013_v58 = vrot.slane %v2366_v41, %v2395_v10 }
 0x1df   :  { %v1017_v18 = vrot.slane %v2364_v20, %v2391_v0 }
 0x1e1   :  { %v2370_v33 = vpop.xlane.xlu0 %833  ;;  %v1018_v46 = vsel %vm936_vm2, %v1017_v18, %v1013_v58 }
 0x1e2   :  { %v2368_v51 = vpop.xlane.xlu1 %836  ;;  %v986_v27 = vrot.slane %v2370_v33, %v2395_v10 }
 0x1e3   :  { %v990_v19 = vrot.slane %v2368_v51, %v2391_v0 }
 0x1e5   :  { %v2372_v52 = vpop.xlane.xlu0 %839  ;;  %v991_v47 = vsel %vm936_vm2, %v990_v19, %v986_v27 }
 0x1e6   :  { %v849_v1 = vpop.xlane.xlu1 %848  ;;  %v995_v33 = vrot.slane %v2372_v52, %v2395_v10 }
 0x1e7   :  { %v1008_v8 = vrot.slane %v849_v1, %v2391_v0 }
 0x1e9   :  { %v2376_v59 = vpop.xlane.xlu0 %863  ;;  %v1009_v43 = vsel %vm936_vm2, %v1008_v8, %v1004_v16 }
 0x1ea   :  { %v2374_v56 = vpop.xlane.xlu1 %842  ;;  %v1031_v20 = vrot.slane %v2376_v59, %v2395_v10  ;;  %v1087_v51 = vsel %vm1073_vm3, %v1018_v46, %v1009_v43  ;;  %v1156_v46 = vsub.s32 3, %v2128_v30 }
 0x1eb   :  { %v999_v1 = vrot.slane %v2374_v56, %v2391_v0 }
 0x1ed   :  { %v798_v61 = vpop.xlane.xlu0 %797 }
 0x1ee   :  { %v804_v48 = vpop.xlane.xlu1 %803  ;;  %v930_v14 = vrot.slane %v798_v61, %v2395_v10 }
 0x1ef   :  { %v941_v23 = vrot.slane %v804_v48, %v2395_v10 }
 0x1f1   :  { %v858_v26 = vpop.xlane.xlu0 %857 }
 0x1f2   :  { %v807_v13 = vpop.xlane.xlu1 %806  ;;  %v1022_v22 = vrot.slane %v858_v26, %v2395_v10 }
 0x1f3   :  { %v945_v15 = vrot.slane %v807_v13, %v2391_v0 }
 0x1f5   :  { %v801_v3 = vpop.xlane.xlu0 %800  ;;  %v946_v49 = vsel %vm936_vm2, %v945_v15, %v941_v23 }
 0x1f6   :  { %v2378_v63 = vpop.xlane.xlu1 %866  ;;  %v935_v28 = vrot.slane %v801_v3, %v2391_v0 }
 0x1f7   :  { %v1035_v31 = vrot.slane %v2378_v63, %v2391_v0 }
 0x1f8   :  { %v937_v9 = vsel %vm936_vm2, %v935_v28, %v930_v14 }
 0x1f9   :  { %v2380_v62 = vpop.xlane.xlu0 %815  ;;  %v1074_v36 = vsel %vm1073_vm3, %v946_v49, %v937_v9  ;;  %v1036_v13 = vsel %vm936_vm2, %v1035_v31, %v1031_v20  ;;  %v1167_v20 = vsub.s32 4, %v2128_v30 }
 0x1fa   :  { %v861_v25 = vpop.xlane.xlu1 %860  ;;  %v959_v7 = vrot.slane %v2380_v62, %v2395_v10 }
 0x1fb   :  { %v1026_v53 = vrot.slane %v861_v25, %v2391_v0 }
 0x1fd   :  { %v2385_v37 = vpop.xlane.xlu0 %875  ;;  %v1027_v55 = vsel %vm936_vm2, %v1026_v53, %v1022_v22 }
 0x1fe   :  { %v819_v4 = vpop.xlane.xlu1 %818  ;;  %v1088_v26 = vsel %vm1075_vm4, %v1027_v55, %v1087_v51  ;;  %v1178_v51 = vsub.s32 5, %v2128_v30 }
 0x1ff   :  { %v963_v34 = vrot.slane %v819_v4, %v2391_v0  ;;  %v1049_v4 = vrot.slane %v2385_v37, %v2395_v10 }
 0x201   :  { %v810_v21 = vpop.xlane.xlu0 %809  ;;  %v964_v48 = vsel %vm936_vm2, %v963_v34, %v959_v7 }
 0x202   :  { %v2387_v6 = vpop.xlane.xlu1 %878  ;;  %v950_v54 = vrot.slane %v810_v21, %v2395_v10 }
 0x203   :  { %v1053_v57 = vrot.slane %v2387_v6, %v2391_v0 }
 0x205   :  { %v870_v40 = vpop.xlane.xlu0 %869 }
 0x206   :  { %v813_v32 = vpop.xlane.xlu1 %812  ;;  %v1040_v38 = vrot.slane %v870_v40, %v2395_v10  ;;  %v1089_v40 = vsel %vm1077_vm5, %v1036_v13, %v1088_v26 }
 0x207   :  { %v954_v12 = vrot.slane %v813_v32, %v2391_v0 }
 0x209   :  { %v828_v17 = vpop.xlane.xlu0 %827  ;;  %v955_v29 = vsel %vm936_vm2, %v954_v12, %v950_v54 }
 0x20a   :  { %v873_v11 = vpop.xlane.xlu1 %872  ;;  %v1076_v60 = vsel %vm1075_vm4, %v955_v29, %v1074_v36  ;;  %v977_v44 = vrot.slane %v828_v17, %v2395_v10  ;;  %v1054_v17 = vsel %vm936_vm2, %v1053_v57, %v1049_v4 }
 0x20b   :  { %v1044_v42 = vrot.slane %v873_v11, %v2391_v0  ;;  %v1078_v59 = vsel %vm1077_vm5, %v964_v48, %v1076_v60  ;;  %v1000_v11 = vsel %vm936_vm2, %v999_v1, %v995_v33  ;;  %v1189_v1 = vsub.s32 6, %v2128_v30 }
 0x20d   :  { %v822_v35 = vpop.xlane.xlu0 %821  ;;  %v1045_v3 = vsel %vm936_vm2, %v1044_v42, %v1040_v38  ;;  %v1134_v42 = vsub.s32 1, %v2128_v30 }
 0x20e   :  { %v831_v24 = vpop.xlane.xlu1 %830  ;;  %v968_v39 = vrot.slane %v822_v35, %v2395_v10  ;;  %v1090_v54 = vsel %vm1079_vm6, %v1045_v3, %v1089_v40 }
 0x20f   :  { %v981_v45 = vrot.slane %v831_v24, %v2391_v0  ;;  %v1091_v53 = vsel %vm1081_vm8, %v1054_v17, %v1090_v54 }
 0x211   :  { %v882_v61 = vpop.xlane.xlu0 %881  ;;  %v982_v25 = vsel %vm936_vm2, %v981_v45, %v977_v44  ;;  %v1145_v45 = vsub.s32 2, %v2128_v30 }
 0x212   :  { %v825_v2 = vpop.xlane.xlu1 %824  ;;  %v1058_v62 = vrot.slane %v882_v61, %v2395_v10 }
 0x213   :  { %v972_v41 = vrot.slane %v825_v2, %v2391_v0 }
 0x215   :  { %v973_v63 = vsel %vm936_vm2, %v972_v41, %v968_v39  ;;  %v888_v28 = vpop.xlane.xlu0 %887 }
 0x216   :  { %v1080_v52 = vsel %vm1079_vm6, %v973_v63, %v1078_v59  ;;  %v885_v56 = vpop.xlane.xlu1 %884  ;;  %v1067_v12 = vrot.slane %v888_v28, %v2395_v10 }
 0x217   :  { %v1062_v21 = vrot.slane %v885_v56, %v2391_v0  ;;  %v1082_v32 = vsel %vm1081_vm8, %v982_v25, %v1080_v52  ;;  %v1200_v52 = vsub.s32 7, %v2128_v30 }
 0x218   :  { %v1084_v8 = vsel %vm1083_vm7, %v991_v47, %v1082_v32 }
 0x219   :  { %v1086_v37 = vsel %vm1085_vm9, %v1000_v11, %v1084_v8  ;;  %v1063_v6 = vsel %vm936_vm2, %v1062_v21, %v1058_v62 }
 0x21a   :  { %v891_v14 = vpop.xlane.xlu1 %890  ;;  %v1096_v15 = vsel %vm894_vm10, %v1086_v37, -inf  ;;  %v1092_v10 = vsel %vm1083_vm7, %v1063_v6, %v1091_v53 }
 0x21b   :  { %v1071_v16 = vrot.slane %v891_v14, %v2391_v0  ;;  %v1099_v18 = vsel %vm1098_vm11, %v1096_v15, -inf }
 0x21c   :  { %1100 = vmax.xlane.f32.xlu0 %v1099_v18 }
 0x21d   :  { %v1072_v58 = vsel %vm936_vm2, %v1071_v16, %v1067_v12 }
 0x21e   :  { %v1093_v19 = vsel %vm1085_vm9, %v1072_v58, %v1092_v10 }
 0x21f   :  { %v1097_v23 = vsel %vm894_vm10, %v1093_v19, -inf }
 0x220   :  { %v1102_v9 = vsel %vm1098_vm11, %v1097_v23, -inf }
 0x221   :  { %1103 = vmax.xlane.f32.xlu1 %v1102_v9 }
 0x2a9   :  { %v1101_v24 = vpop.xlane.xlu0 %1100 }
 0x2aa   :  { %v1105_v27 = vsub.f32 %v1096_v15, %v1101_v24 }
 0x2ac   :  { %v1107_v0 = vmul.f32 1.442695, %v1105_v27 }
 0x2ae   :  { %1804 = vpow2.f32 %v1107_v0  ;;  %v1104_v43 = vpop.xlane.xlu1 %1103 }
 0x2af   :  { %v1106_v22 = vsub.f32 %v1097_v23, %v1104_v43 }
 0x2b1   :  { %v1109_v29 = vmul.f32 1.442695, %v1106_v22 }
 0x2b3   :  { %1806 = vpow2.f32 %v1109_v29 }
 0x2b8   :  { %v1805_v49 = vpop.eup %1804 }
 0x2b9   :  { %v1111_v31 = vsel %vm1098_vm11, %v1805_v49, 0.0 }
 0x2ba   :  { %1112 = vadd.xlane.f32.xlu0 %v1111_v31 }
 0x2bd   :  { %v1807_v7 = vpop.eup %1806 }
 0x2be   :  { %v1114_v34 = vsel %vm1098_vm11, %v1807_v7, 0.0 }
 0x2bf   :  { %1115 = vadd.xlane.f32.xlu1 %v1114_v34 }
 0x347   :  { %v1113_v5 = vpop.xlane.xlu0 %1112 }
 0x348   :  { %1808 = vrcp.f32 %v1113_v5 }
 0x34c   :  { %v1116_v35 = vpop.xlane.xlu1 %1115 }
 0x34d   :  { %1810 = vrcp.f32 %v1116_v35 }
 0x352   :  { %v1809_v36 = vpop.eup %1808 }
 0x353   :  { %v1118_v55 = vmul.f32 %v1809_v36, %v1805_v49 }
 0x355   :  { %1539 = vst.msk [vmem:[#allocation11] sm:$0xff] %vm1098_vm11, %v1118_v55  ;;  %v1124_v61 = vrot.slane %v1118_v55, %v2145_v50  ;;  %v1135_v13 = vrot.slane %v1118_v55, %v1134_v42  ;;  %v1146_v26 = vrot.slane %v1118_v55, %v1145_v45  ;;  %v1157_v63 = vrot.slane %v1118_v55, %v1156_v46 }
 0x356   :  { %v1168_v59 = vrot.slane %v1118_v55, %v1167_v20  ;;  %v1179_v3 = vrot.slane %v1118_v55, %v1178_v51  ;;  %v1190_v25 = vrot.slane %v1118_v55, %v1189_v1 }
 0x357   :  { %v1811_v38 = vpop.eup %1810 }
 0x358   :  { %v1120_v39 = vmul.f32 %v1811_v38, %v1807_v7 }
 0x35a   :  { %1540 = vst.msk [vmem:[#allocation11 + $0x8] sm:$0xff] %vm1098_vm11, %v1120_v39  ;;  %v1212_v60 = vrot.slane %v1120_v39, %v2145_v50  ;;  %v1223_v44 = vrot.slane %v1120_v39, %v1134_v42  ;;  %v1234_v2 = vrot.slane %v1120_v39, %v1145_v45  ;;  %v1245_v47 = vrot.slane %v1120_v39, %v1156_v46 }
 0x35b   :  { %v1256_v41 = vrot.slane %v1120_v39, %v1167_v20  ;;  %v1267_v33 = vrot.slane %v1120_v39, %v1178_v51  ;;  %v1278_v48 = vrot.slane %v1120_v39, %v1189_v1  ;;  %v1201_v50 = vrot.slane %v1118_v55, %v1200_v52 }
 0x35c   :  { %1218 = vbcast.lane.b32.xlu1 %v1212_v60, 264  ;;  %1214 = vbcast.lane.b32.xlu0 %v1212_v60, 256  ;;  %v1289_v62 = vrot.slane %v1120_v39, %v1200_v52 }
 0x360   :  { %1229 = vbcast.lane.b32.xlu1 %v1223_v44, 264  ;;  %1225 = vbcast.lane.b32.xlu0 %v1223_v44, 256 }
 0x364   :  { %1240 = vbcast.lane.b32.xlu1 %v1234_v2, 264  ;;  %1236 = vbcast.lane.b32.xlu0 %v1234_v2, 256 }
 0x368   :  { %1251 = vbcast.lane.b32.xlu1 %v1245_v47, 264  ;;  %1247 = vbcast.lane.b32.xlu0 %v1245_v47, 256 }
 0x36c   :  { %1262 = vbcast.lane.b32.xlu1 %v1256_v41, 264  ;;  %1258 = vbcast.lane.b32.xlu0 %v1256_v41, 256 }
 0x370   :  { %1273 = vbcast.lane.b32.xlu1 %v1267_v33, 264  ;;  %1269 = vbcast.lane.b32.xlu0 %v1267_v33, 256 }
 0x374   :  { %1284 = vbcast.lane.b32.xlu1 %v1278_v48, 264  ;;  %1280 = vbcast.lane.b32.xlu0 %v1278_v48, 256 }
 0x378   :  { %1130 = vbcast.lane.b32.xlu1 %v1124_v61, 264  ;;  %1126 = vbcast.lane.b32.xlu0 %v1124_v61, 256 }
 0x37c   :  { %1137 = vbcast.lane.b32.xlu1 %v1135_v13, 256  ;;  %1148 = vbcast.lane.b32.xlu0 %v1146_v26, 256 }
 0x380   :  { %1141 = vbcast.lane.b32.xlu1 %v1135_v13, 264  ;;  %1159 = vbcast.lane.b32.xlu0 %v1157_v63, 256 }
 0x384   :  { %1152 = vbcast.lane.b32.xlu1 %v1146_v26, 264  ;;  %1170 = vbcast.lane.b32.xlu0 %v1168_v59, 256 }
 0x388   :  { %1163 = vbcast.lane.b32.xlu1 %v1157_v63, 264  ;;  %1181 = vbcast.lane.b32.xlu0 %v1179_v3, 256 }
 0x38c   :  { %1174 = vbcast.lane.b32.xlu1 %v1168_v59, 264  ;;  %1192 = vbcast.lane.b32.xlu0 %v1190_v25, 256 }
 0x390   :  { %1185 = vbcast.lane.b32.xlu1 %v1179_v3, 264  ;;  %1203 = vbcast.lane.b32.xlu0 %v1201_v50, 256 }
 0x394   :  { %1196 = vbcast.lane.b32.xlu1 %v1190_v25, 264  ;;  %1291 = vbcast.lane.b32.xlu0 %v1289_v62, 256 }
 0x398   :  { %1207 = vbcast.lane.b32.xlu1 %v1201_v50, 264 }
 0x39c   :  { %1295 = vbcast.lane.b32.xlu1 %v1289_v62, 264 }
 0x39d   :  { %1927 = shalt.err (!%p1924_p8)
}
 0x39e   :  { %s1928_s15 = scalar_lea.hbm %s2665_s8, 256 }
 0x39f   :  { %p1929_p9 = scmp.ne.s32.totalorder %s2665_s8, %s1928_s15  ;;  %p1932_p10 = scmp.lt.u32.totalorder %s1928_s15, %s2665_s8 }
 0x3a1   :  { %p1934_p11 = pnand %p1932_p10, %p1929_p9 }
 0x3a3   :  { %1937 = shalt.err (!%p1934_p11)
}
 0x3a4   :  { %s1980_s0 = smov 128   ;;  %s1981_s30 = smov 8   ;;  %v1812_v40 = vld [vmem:[#allocation5 + $0x40] sm:$0xff]   ;;  %v1813_v16 = vld [vmem:[#allocation5 + $0x48] sm:$0xff]   ;;  %v1814_v24 = vld [vmem:[#allocation5 + $0x50] sm:$0xff]  }
 0x3a5   :  { %1564 = dma.vmem_to_hbm [thread:$0]  %s1559_s11, 256, %s2665_s8, [#allocation12], %s1980_s0, %s1980_s0, %s1981_s30   ;;  %v1314_v28 = vunpack.c.h.bf16 %v1812_v40  ;;  %v1313_v11 = vunpack.c.l.bf16 %v1812_v40  ;;  %v1316_v18 = vunpack.c.h.bf16 %v1813_v16  ;;  %v1315_v53 = vunpack.c.l.bf16 %v1813_v16  ;;  %v1815_v5 = vld [vmem:[#allocation5 + $0x58] sm:$0xff]   ;;  %v1816_v60 = vld [vmem:[#allocation5 + $0x60] sm:$0xff]   ;;  %v2521_v45 = vld [vmem:[#allocation5 + $0x68] sm:$0xff]  }
 0x3a6   :  { %v1318_v27 = vunpack.c.h.bf16 %v1814_v24  ;;  %v1317_v0 = vunpack.c.l.bf16 %v1814_v24  ;;  %v1320_v35 = vunpack.c.h.bf16 %v1815_v5  ;;  %v1319_v36 = vunpack.c.l.bf16 %v1815_v5  ;;  %v2525_v20 = vld [vmem:[#allocation5 + $0x70] sm:$0xff]   ;;  %v1819_v33 = vld [vmem:[#allocation5] sm:$0xff]   ;;  %v1820_v61 = vld [vmem:[#allocation5 + $0x8] sm:$0xff]   ;;  %s1982_s8 = smov [#allocation10]  }
 0x3a7   :  { %v1322_v42 = vunpack.c.h.bf16 %v1816_v60  ;;  %v1321_v44 = vunpack.c.l.bf16 %v1816_v60  ;;  %v1324_v2 = vunpack.c.h.bf16 %v2521_v45  ;;  %v1323_v47 = vunpack.c.l.bf16 %v2521_v45  ;;  %v1821_v26 = vld [vmem:[#allocation5 + $0x10] sm:$0xff]   ;;  %v2531_v40 = vld [vmem:[#allocation5 + $0x20] sm:$0xff]   ;;  %s1546_s24 = sshll.u32 %s1982_s8, 4  ;;  %s1547_s24 = int_to_ptr.vmem [resolvable:$true] %s1546_s24 }
 0x3a8   :  { %v1326_v41 = vunpack.c.h.bf16 %v2525_v20  ;;  %v1325_v51 = vunpack.c.l.bf16 %v2525_v20  ;;  %v1298_v1 = vunpack.c.h.bf16 %v1819_v33  ;;  %v1297_v48 = vunpack.c.l.bf16 %v1819_v33  ;;  %s1938_s25 = scalar_lea.vmem %s1547_s24, 256  ;;  %p1943_p13 = scmp.lt.s32.totalorder %s1547_s24, %s1547_s24 }
 0x3a9   :  { %v1299_v13 = vunpack.c.l.bf16 %v1820_v61  ;;  %v1301_v63 = vunpack.c.l.bf16 %v1821_v26  ;;  %p1939_p12 = scmp.ne.s32.totalorder %s1547_s24, %s1938_s25  ;;  %p1944_p0 = scmp.lt.s32.totalorder %s1938_s25, %s1938_s25 }
 0x3ab   :  { %p1945_p1 = por %p1944_p0, %p1943_p13 }
 0x3ad   :  { %p1946_p2 = pnand %p1945_p1, %p1939_p12 }
 0x3ce   :  { %v1219_v30 = vpop.permute.xlu1 %1218  ;;  %v1215_v56 = vpop.permute.xlu0 %1214 }
 0x3cf   :  { %v1346_v12 = vmul.f32 %v1314_v28, %v1219_v30  ;;  %v1345_v37 = vmul.f32 %v1313_v11, %v1215_v56  ;;  %v1300_v56 = vunpack.c.h.bf16 %v1820_v61  ;;  %v1305_v28 = vunpack.c.l.bf16 %v2531_v40 }
 0x3d1   :  { %v1434_v15 = vsel %vm146_vm1, %v1346_v12, 0.0  ;;  %v1433_v17 = vsel %vm146_vm1, %v1345_v37, 0.0  ;;  %v2534_v12 = vld [vmem:[#allocation5 + $0x28] sm:$0xff]  }
 0x3d2   :  { %v1230_v4 = vpop.permute.xlu1 %1229  ;;  %v1226_v57 = vpop.permute.xlu0 %1225  ;;  %v1435_v19 = vadd.f32 %v1434_v15, %v1433_v17  ;;  %v1307_v37 = vunpack.c.l.bf16 %v2534_v12  ;;  %v1308_v16 = vunpack.c.h.bf16 %v2534_v12 }
 0x3d3   :  { %v1348_v23 = vmul.f32 %v1316_v18, %v1230_v4  ;;  %v1347_v9 = vmul.f32 %v1315_v53, %v1226_v57  ;;  %v1822_v4 = vld [vmem:[#allocation5 + $0x18] sm:$0xff]  }
 0x3d4   :  { %v1436_v29 = vrot.slane %v1435_v19, 4  ;;  %v1303_v57 = vunpack.c.l.bf16 %v1822_v4  ;;  %v1304_v11 = vunpack.c.h.bf16 %v1822_v4 }
 0x3d5   :  { %v1443_v49 = vsel %vm146_vm1, %v1348_v23, 0.0  ;;  %v1442_v31 = vsel %vm146_vm1, %v1347_v9, 0.0  ;;  %v2544_v9 = vld [vmem:[#allocation5 + $0x38] sm:$0xff]  }
 0x3d6   :  { %v1241_v21 = vpop.permute.xlu1 %1240  ;;  %v1237_v32 = vpop.permute.xlu0 %1236  ;;  %v1437_v39 = vadd.f32 %v1436_v29, %v1435_v19  ;;  %v1444_v46 = vadd.f32 %v1443_v49, %v1442_v31  ;;  %v1311_v24 = vunpack.c.l.bf16 %v2544_v9  ;;  %v2548_v31 = vld [vmem:[#allocation5 + $0x78] sm:$0xff]  }
 0x3d7   :  { %v1350_v7 = vmul.f32 %v1318_v27, %v1241_v21  ;;  %v1349_v34 = vmul.f32 %v1317_v0, %v1237_v32  ;;  %v1302_v21 = vunpack.c.h.bf16 %v1821_v26  ;;  %v1328_v61 = vunpack.c.h.bf16 %v2548_v31 }
 0x3d8   :  { %v1438_v30 = vrot.slane %v1437_v39, 2  ;;  %v1445_v32 = vrot.slane %v1444_v46, 4 }
 0x3d9   :  { %v1452_v59 = vsel %vm146_vm1, %v1350_v7, 0.0  ;;  %v1451_v3 = vsel %vm146_vm1, %v1349_v34, 0.0  ;;  %v1327_v7 = vunpack.c.l.bf16 %v2548_v31 }
 0x3da   :  { %v1252_v8 = vpop.permute.xlu1 %1251  ;;  %v1248_v54 = vpop.permute.xlu0 %1247  ;;  %v1453_v15 = vadd.f32 %v1452_v59, %v1451_v3  ;;  %v1439_v0 = vadd.f32 %v1438_v30, %v1437_v39  ;;  %v1446_v34 = vadd.f32 %v1445_v32, %v1444_v46 }
 0x3db   :  { %v1352_v25 = vmul.f32 %v1320_v35, %v1252_v8  ;;  %v1351_v52 = vmul.f32 %v1319_v36, %v1248_v54  ;;  %v1306_v8 = vunpack.c.h.bf16 %v2531_v40  ;;  %v2538_v54 = vld [vmem:[#allocation5 + $0x30] sm:$0xff]   ;;  %v1312_v36 = vunpack.c.h.bf16 %v2544_v9 }
 0x3dc   :  { %v1309_v17 = vunpack.c.l.bf16 %v2538_v54  ;;  %v1310_v27 = vunpack.c.h.bf16 %v2538_v54  ;;  %v1454_v60 = vrot.slane %v1453_v15, 4  ;;  %v1440_v46 = vrot.slane %v1439_v0, 1 }
 0x3dd   :  { %v1461_v18 = vsel %vm146_vm1, %v1352_v25, 0.0  ;;  %v1460_v53 = vsel %vm146_vm1, %v1351_v52, 0.0 }
 0x3de   :  { %v2505_v6 = vpop.permute.xlu1 %1262  ;;  %v2507_v14 = vpop.permute.xlu0 %1258  ;;  %v1462_v45 = vadd.f32 %v1461_v18, %v1460_v53 }
 0x3df   :  { %v1354_v26 = vmul.f32 %v1322_v42, %v2505_v6  ;;  %v1353_v39 = vmul.f32 %v1321_v44, %v2507_v14  ;;  %v1455_v6 = vadd.f32 %v1454_v60, %v1453_v15  ;;  %v2567_v15 = vadd.f32 %v1440_v46, %v1439_v0 }
 0x3e0   :  { %v1463_v42 = vrot.slane %v1462_v45, 4 }
 0x3e1   :  { %v1470_v44 = vsel %vm146_vm1, %v1354_v26, 0.0 }
 0x3e2   :  { %v2511_v58 = vpop.permute.xlu1 %1273  ;;  %v2513_v10 = vpop.permute.xlu0 %1269 }
 0x3e6   :  { %v2515_v43 = vpop.permute.xlu1 %1284  ;;  %v2517_v22 = vpop.permute.xlu0 %1280 }
 0x3e7   :  { %v1357_v18 = vmul.f32 %v1325_v51, %v2517_v22 }
 0x3e9   :  { %v1487_v26 = vsel %vm146_vm1, %v1357_v18, 0.0 }
 0x3ea   :  { %v1131_v55 = vpop.permute.xlu1 %1130  ;;  %v1127_v38 = vpop.permute.xlu0 %1126 }
 0x3eb   :  { %v1330_v5 = vmul.f32 %v1298_v1, %v1131_v55  ;;  %v1329_v35 = vmul.f32 %v1297_v48, %v1127_v38  ;;  %v1355_v55 = vmul.f32 %v1323_v47, %v2513_v10  ;;  %v1447_v48 = vrot.slane %v1446_v34, 2 }
 0x3ed   :  { %v1362_v52 = vsel %vm146_vm1, %v1330_v5, 0.0 }
 0x3ee   :  { %v1138_v50 = vpop.permute.xlu1 %1137  ;;  %v1149_v62 = vpop.permute.xlu0 %1148 }
 0x3ef   :  { %v1331_v29 = vmul.f32 %v1299_v13, %v1138_v50  ;;  %v1356_v13 = vmul.f32 %v1324_v2, %v2511_v58  ;;  %v1333_v59 = vmul.f32 %v1301_v63, %v1149_v62  ;;  %v1361_v50 = vsel %vm146_vm1, %v1329_v35, 0.0 }
 0x3f0   :  { %v1469_v2 = vsel %vm146_vm1, %v1353_v39, 0.0  ;;  %v1363_v4 = vadd.f32 %v1362_v52, %v1361_v50 }
 0x3f1   :  { %v1370_v38 = vsel %vm146_vm1, %v1331_v29, 0.0  ;;  %v1479_v10 = vsel %vm146_vm1, %v1356_v13, 0.0  ;;  %v1379_v47 = vsel %vm146_vm1, %v1333_v59, 0.0  ;;  %v1471_v0 = vadd.f32 %v1470_v44, %v1469_v2 }
 0x3f2   :  { %v1142_v19 = vpop.permute.xlu1 %1141  ;;  %v1160_v23 = vpop.permute.xlu0 %1159 }
 0x3f3   :  { %v1332_v49 = vmul.f32 %v1300_v56, %v1142_v19  ;;  %v1335_v14 = vmul.f32 %v1303_v57, %v1160_v23  ;;  %v1478_v56 = vsel %vm146_vm1, %v1355_v55, 0.0  ;;  %v1358_v57 = vmul.f32 %v1326_v41, %v2515_v43 }
 0x3f4   :  { %v1456_v19 = vrot.slane %v1455_v6, 2  ;;  %v1480_v5 = vadd.f32 %v1479_v10, %v1478_v56  ;;  %v1464_v41 = vadd.f32 %v1463_v42, %v1462_v45 }
 0x3f5   :  { %v1371_v33 = vsel %vm146_vm1, %v1332_v49, 0.0  ;;  %v1388_v23 = vsel %vm146_vm1, %v1335_v14, 0.0  ;;  %v1488_v51 = vsel %vm146_vm1, %v1358_v57, 0.0 }
 0x3f6   :  { %v1153_v3 = vpop.permute.xlu1 %1152  ;;  %v1171_v25 = vpop.permute.xlu0 %1170  ;;  %v1372_v30 = vadd.f32 %v1371_v33, %v1370_v38  ;;  %v1364_v33 = vrot.slane %v1363_v4, 4  ;;  %v2585_v13 = vadd.f32 %v1456_v19, %v1455_v6  ;;  %v1481_v40 = vrot.slane %v1480_v5, 4 }
 0x3f7   :  { %v1334_v1 = vmul.f32 %v1302_v21, %v1153_v3  ;;  %v1337_v29 = vmul.f32 %v1305_v28, %v1171_v25  ;;  %v1472_v25 = vrot.slane %v1471_v0, 4  ;;  %v1489_v55 = vadd.f32 %v1488_v51, %v1487_v26 }
 0x3f8   :  { %v1373_v53 = vrot.slane %v1372_v30, 4  ;;  %v1365_v38 = vadd.f32 %v1364_v33, %v1363_v4  ;;  %v1465_v52 = vrot.slane %v1464_v41, 2  ;;  %v1482_v10 = vadd.f32 %v1481_v40, %v1480_v5 }
 0x3f9   :  { %v1380_v58 = vsel %vm146_vm1, %v1334_v1, 0.0  ;;  %v1473_v2 = vadd.f32 %v1472_v25, %v1471_v0 }
 0x3fa   :  { %v1164_v63 = vpop.permute.xlu1 %1163  ;;  %v1182_v62 = vpop.permute.xlu0 %1181  ;;  %v1381_v21 = vadd.f32 %v1380_v58, %v1379_v47  ;;  %v1374_v28 = vadd.f32 %v1373_v53, %v1372_v30 }
 0x3fb   :  { %v1336_v32 = vmul.f32 %v1304_v11, %v1164_v63  ;;  %v2579_v11 = vadd.f32 %v1447_v48, %v1446_v34  ;;  %v1397_v34 = vsel %vm146_vm1, %v1337_v29, 0.0  ;;  %v1339_v59 = vmul.f32 %v1307_v37, %v1182_v62 }
 0x3fc   :  { %v1382_v20 = vrot.slane %v1381_v21, 4  ;;  %v1375_v50 = vrot.slane %v1374_v28, 2  ;;  %v1458_v37 = vrot.slane %v2585_v13, 1  ;;  %v1366_v62 = vrot.slane %v1365_v38, 2 }
 0x3fd   :  { %v1389_v49 = vsel %vm146_vm1, %v1336_v32, 0.0  ;;  %v1449_v3 = vrot.slane %v2579_v11, 1  ;;  %v1406_v14 = vsel %vm146_vm1, %v1339_v59, 0.0  ;;  %v1474_v29 = vrot.slane %v1473_v2, 2 }
 0x3fe   :  { %v1390_v35 = vadd.f32 %v1389_v49, %v1388_v23  ;;  %v1175_v60 = vpop.permute.xlu1 %1174  ;;  %v1193_v43 = vpop.permute.xlu0 %1192  ;;  %v1383_v1 = vadd.f32 %v1382_v20, %v1381_v21  ;;  %v2601_v21 = vadd.f32 %v1465_v52, %v1464_v41  ;;  %v1376_v32 = vadd.f32 %v1375_v50, %v1374_v28 }
 0x3ff   :  { %v1338_v22 = vmul.f32 %v1306_v8, %v1175_v60  ;;  %v1341_v58 = vmul.f32 %v1309_v17, %v1193_v43  ;;  %v1483_v49 = vrot.slane %v1482_v10, 2  ;;  %v1367_v60 = vadd.f32 %v1366_v62, %v1365_v38 }
 0x400   :  { %v1391_v39 = vrot.slane %v1390_v35, 4  ;;  %v1384_v56 = vrot.slane %v1383_v1, 2  ;;  %v1377_v33 = vrot.slane %v1376_v32, 1 }
 0x401   :  { %v1398_v45 = vsel %vm146_vm1, %v1338_v22, 0.0  ;;  %v1415_v17 = vsel %vm146_vm1, %v1341_v58, 0.0  ;;  %v1368_v9 = vrot.slane %v1367_v60, 1 }
 0x402   :  { %v1399_v8 = vadd.f32 %v1398_v45, %v1397_v34  ;;  %v1186_v46 = vpop.permute.xlu1 %1185  ;;  %v1392_v30 = vadd.f32 %v1391_v39, %v1390_v35  ;;  %v1204_v42 = vpop.permute.xlu0 %1203  ;;  %v1385_v43 = vadd.f32 %v1384_v56, %v1383_v1  ;;  %v1475_v34 = vadd.f32 %v1474_v29, %v1473_v2 }
 0x403   :  { %v1340_v48 = vmul.f32 %v1308_v16, %v1186_v46  ;;  %v1490_v16 = vrot.slane %v1489_v55, 4  ;;  %v1343_v19 = vmul.f32 %v1311_v24, %v1204_v42  ;;  %v1378_v52 = vadd.f32 %v1377_v33, %v1376_v32 }
 0x404   :  { %v1400_v6 = vrot.slane %v1399_v8, 4  ;;  %v1393_v57 = vrot.slane %v1392_v30, 2  ;;  %v1476_v62 = vrot.slane %v1475_v34, 1 }
 0x405   :  { %v1407_v44 = vsel %vm146_vm1, %v1340_v48, 0.0  ;;  %v1424_v24 = vsel %vm146_vm1, %v1343_v19, 0.0 }
 0x406   :  { %v1401_v47 = vadd.f32 %v1400_v6, %v1399_v8  ;;  %v1408_v63 = vadd.f32 %v1407_v44, %v1406_v14  ;;  %v1197_v12 = vpop.permute.xlu1 %1196  ;;  %v1292_v35 = vpop.permute.xlu0 %1291  ;;  %v1394_v20 = vadd.f32 %v1393_v57, %v1392_v30  ;;  %v1467_v44 = vrot.slane %v2601_v21, 1 }
 0x407   :  { %v1342_v4 = vmul.f32 %v1310_v27, %v1197_v12  ;;  %v1491_v27 = vadd.f32 %v1490_v16, %v1489_v55  ;;  %v1359_v28 = vmul.f32 %v1327_v7, %v1292_v35  ;;  %v1484_v55 = vadd.f32 %v1483_v49, %v1482_v10 }
 0x408   :  { %v1409_v18 = vrot.slane %v1408_v63, 4  ;;  %v1402_v53 = vrot.slane %v1401_v47, 2  ;;  %v1395_v38 = vrot.slane %v1394_v20, 1  ;;  %v1450_v16 = vadd.f32 %v1449_v3, %v2579_v11 }
 0x409   :  { %v1416_v23 = vsel %vm146_vm1, %v1342_v4, 0.0  ;;  %v1492_v8 = vrot.slane %v1491_v27, 2  ;;  %v1496_v7 = vsel %vm146_vm1, %v1359_v28, 0.0  ;;  %v1485_v56 = vrot.slane %v1484_v55, 1 }
 0x40a   :  { %v1410_v0 = vadd.f32 %v1409_v18, %v1408_v63  ;;  %v1417_v5 = vadd.f32 %v1416_v23, %v1415_v17  ;;  %v1208_v54 = vpop.permute.xlu1 %1207  ;;  %v1403_v26 = vadd.f32 %v1402_v53, %v1401_v47  ;;  %v1369_v47 = vadd.f32 %v1368_v9, %v1367_v60 }
 0x40b   :  { %v1344_v41 = vmul.f32 %v1312_v36, %v1208_v54  ;;  %v1386_v36 = vrot.slane %v1385_v43, 1  ;;  %v1493_v2 = vadd.f32 %v1492_v8, %v1491_v27  ;;  %v1459_v17 = vadd.f32 %v1458_v37, %v2585_v13 }
 0x40c   :  { %v1411_v22 = vrot.slane %v1410_v0, 2  ;;  %v1418_v51 = vrot.slane %v1417_v5, 4  ;;  %v1404_v50 = vrot.slane %v1403_v26, 1  ;;  %v1521_v32 = vsel %vm1073_vm3, %v1378_v52, %v1369_v47 }
 0x40d   :  { %v1425_v39 = vsel %vm146_vm1, %v1344_v41, 0.0  ;;  %v1387_v31 = vadd.f32 %v1386_v36, %v1385_v43  ;;  %v1494_v19 = vrot.slane %v1493_v2, 1  ;;  %v1468_v49 = vadd.f32 %v1467_v44, %v2601_v21 }
 0x40e   :  { %v1412_v59 = vadd.f32 %v1411_v22, %v1410_v0  ;;  %v1419_v45 = vadd.f32 %v1418_v51, %v1417_v5  ;;  %v1426_v25 = vadd.f32 %v1425_v39, %v1424_v24  ;;  %v1296_v40 = vpop.permute.xlu1 %1295  ;;  %v1405_v4 = vadd.f32 %v1404_v50, %v1403_v26 }
 0x40f   :  { %v1360_v46 = vmul.f32 %v1328_v61, %v1296_v40  ;;  %v1396_v61 = vadd.f32 %v1395_v38, %v1394_v20  ;;  %v1522_v23 = vsel %vm1075_vm4, %v1387_v31, %v1521_v32  ;;  %v1528_v5 = vsel %vm1073_vm3, %v1450_v16, %v2567_v15 }
 0x410   :  { %v1420_v1 = vrot.slane %v1419_v45, 2  ;;  %v1427_v48 = vrot.slane %v1426_v25, 4  ;;  %v1413_v6 = vrot.slane %v1412_v59, 1  ;;  %v1477_v35 = vadd.f32 %v1476_v62, %v1475_v34 }
 0x411   :  { %v1497_v30 = vsel %vm146_vm1, %v1360_v46, 0.0  ;;  %v1523_v11 = vsel %vm1077_vm5, %v1396_v61, %v1522_v23  ;;  %v1486_v27 = vadd.f32 %v1485_v56, %v1484_v55  ;;  %v1529_v43 = vsel %vm1075_vm4, %v1459_v17, %v1528_v5 }
 0x412   :  { %v1421_v42 = vadd.f32 %v1420_v1, %v1419_v45  ;;  %v1428_v14 = vadd.f32 %v1427_v48, %v1426_v25  ;;  %v1498_v58 = vadd.f32 %v1497_v30, %v1496_v7  ;;  %v1414_v57 = vadd.f32 %v1413_v6, %v1412_v59 }
 0x413   :  { %v1524_v54 = vsel %vm1079_vm6, %v1405_v4, %v1523_v11  ;;  %v1495_v41 = vadd.f32 %v1494_v19, %v1493_v2  ;;  %v1530_v33 = vsel %vm1077_vm5, %v1468_v49, %v1529_v43 }
 0x414   :  { %v1422_v10 = vrot.slane %v1421_v42, 1  ;;  %v1429_v63 = vrot.slane %v1428_v14, 2  ;;  %v1499_v12 = vrot.slane %v1498_v58, 4  ;;  %v1525_v60 = vsel %vm1081_vm8, %v1414_v57, %v1524_v54 }
 0x415   :  { %v1531_v15 = vsel %vm1079_vm6, %v1477_v35, %v1530_v33 }
 0x416   :  { %v1430_v18 = vadd.f32 %v1429_v63, %v1428_v14  ;;  %v1500_v53 = vadd.f32 %v1499_v12, %v1498_v58  ;;  %v1423_v29 = vadd.f32 %v1422_v10, %v1421_v42  ;;  %v1532_v51 = vsel %vm1081_vm8, %v1486_v27, %v1531_v15 }
 0x417   :  { %v1533_v24 = vsel %vm1083_vm7, %v1495_v41, %v1532_v51 }
 0x418   :  { %v1431_v3 = vrot.slane %v1430_v18, 1  ;;  %v1501_v0 = vrot.slane %v1500_v53, 2  ;;  %v1526_v21 = vsel %vm1083_vm7, %v1423_v29, %v1525_v60 }
 0x41a   :  { %v1432_v13 = vadd.f32 %v1431_v3, %v1430_v18  ;;  %v1502_v37 = vadd.f32 %v1501_v0, %v1500_v53 }
 0x41c   :  { %v1503_v20 = vrot.slane %v1502_v37, 1  ;;  %v1527_v22 = vsel %vm1085_vm9, %v1432_v13, %v1526_v21 }
 0x41d   :  { %1537 = vst.msk [vmem:[#allocation10] sm:$0xff] %vm146_vm1, %v1527_v22 }
 0x41e   :  { %v1504_v26 = vadd.f32 %v1503_v20, %v1502_v37 }
 0x420   :  { %v1534_v28 = vsel %vm1085_vm9, %v1504_v26, %v1533_v24 }
 0x421   :  { %1538 = vst.msk [vmem:[#allocation10 + $0x8] sm:$0xff] %vm146_vm1, %v1534_v28 }
 0x422   :  { %1949 = shalt.err (!%p1946_p2)
}
 0x423   :  { %s1950_s29 = scalar_lea.hbm %s2664_s7, 256 }
 0x424   :  { %p1951_p3 = scmp.ne.s32.totalorder %s2664_s7, %s1950_s29  ;;  %p1954_p4 = scmp.lt.u32.totalorder %s1950_s29, %s2664_s7 }
 0x426   :  { %p1956_p5 = pnand %p1954_p4, %p1951_p3 }
 0x428   :  { %1959 = shalt.err (!%p1956_p5)
}
 0x429   :  { %1552 = dma.vmem_to_hbm [thread:$0]  %s1547_s24, 256, %s2664_s7, [#allocation4], %s1980_s0, %s1980_s0, %s1981_s30  }
 0x42a   :  { %1966 = dma.done.wait [#allocation4], 256  }
 0x42b   :  { %1967 = vsyncadd [#allocation4], 4294967040 }
 0x42c   :  { %1968 = dma.done.wait [#allocation12], 256  }
 0x42d   :  { %1969 = vsyncadd [#allocation12], 4294967040 }
 0x42e   :  { %1571 = vsyncpa [#allocation3], 1 }
 0x42f   :  { %1572 = vsyncpa [#allocation6], 1 }
 0x430   :  { %1573 = vsyncpa [#allocation9], 1 }
 0x431   :  { %1574 = vsyncpa [#allocation4], 1 }
 0x432   :  { %1575 = vsyncpa [#allocation12], 1 }

// kernel: tpu_custom_call.1
= control target key start
LH: loop header
LB: loop body
LE: loop exit
PB: predicated region body
PF: predicated region fallthrough
CT: control target
= control target key end

     0   :  { %14 = vsyncpa [#allocation3], 0  ;;  %s2657_s0 = inlined_call_operand.hbm [shape: bf16[16,32], index: 0, kind: input, shape index: {}]   ;;  %s2658_s1 = inlined_call_operand.hbm [shape: bf16[16,16,32], index: 1, kind: input, shape index: {}]   ;;  %s2659_s2 = inlined_call_operand.hbm [shape: bf16[32,32], index: 2, kind: input, shape index: {}]   ;;  %s2660_s3 = inlined_call_operand.vmem [shape: f32[1,32], index: 3, kind: input, shape index: {}]   ;;  %s2661_s4 = inlined_call_operand.hbm [shape: bf16[32,32], index: 4, kind: input, shape index: {}]   ;;  %s2662_s5 = inlined_call_operand.vmem [shape: f32[1,32], index: 5, kind: input, shape index: {}]   ;;  %s2663_s6 = inlined_call_operand.vmem [shape: f32[1,32], index: 6, kind: input, shape index: {}]   ;;  %s2664_s7 = inlined_call_operand.hbm [shape: f32[16,32], index: 7, kind: output, shape index: {0}]   ;;  %s2665_s8 = inlined_call_operand.hbm [shape: f32[16,16], index: 8, kind: output, shape index: {1}]  }
   0x1   :  { %15 = vsyncpa [#allocation6], 0 }
   0x2   :  { %16 = vsyncpa [#allocation9], 0 }
   0x3   :  { %17 = vsyncpa [#allocation4], 0 }
   0x4   :  { %18 = vsyncpa [#allocation12], 0  ;;  %s1970_s27 = smov [#allocation5]   ;;  %s1971_s29 = smov [#allocation2]  }
   0x5   :  { %s36_s28 = sshll.u32 %s1970_s27, 4  ;;  %s24_s30 = sshll.u32 %s1971_s29, 4  ;;  %s37_s28 = int_to_ptr.vmem [resolvable:$true] %s36_s28  ;;  %s2028_s30 = int_to_ptr.vmem [resolvable:$true] %s24_s30 }
   0x6   :  { %s1828_s11 = scalar_lea.hbm %s2658_s1, 2048 }
   0x7   :  { %p1829_p0 = scmp.ne.s32.totalorder %s2658_s1, %s1828_s11  ;;  %p1832_p1 = scmp.lt.u32.totalorder %s1828_s11, %s2658_s1 }
   0x9   :  { %p1834_p2 = pnand %p1832_p1, %p1829_p0 }
   0xb   :  { %1837 = shalt.err (!%p1834_p2)
}
   0xc   :  { %s1838_s16 = scalar_lea.vmem %s37_s28, 2048  ;;  %p1843_p4 = scmp.lt.s32.totalorder %s37_s28, %s37_s28 }
   0xd   :  { %p1839_p3 = scmp.ne.s32.totalorder %s37_s28, %s1838_s16  ;;  %p1844_p5 = scmp.lt.s32.totalorder %s1838_s16, %s1838_s16 }
   0xf   :  { %p1845_p6 = por %p1844_p5, %p1843_p4 }
  0x11   :  { %p1846_p7 = pnand %p1845_p6, %p1839_p3 }
  0x13   :  { %1849 = shalt.err (!%p1846_p7)
}
  0x14   :  { %s1972_s17 = smov 64   ;;  %s1973_s18 = smov 4  }
  0x15   :  { %42 = dma.hbm_to_vmem [thread:$0]  %s2658_s1, 2048, %s37_s28, [#allocation6], %s1972_s17, %s1972_s17, %s1973_s18  }
  0x16   :  { %s1850_s23 = scalar_lea.hbm %s2657_s0, 128 }
  0x17   :  { %p1851_p8 = scmp.ne.s32.totalorder %s2657_s0, %s1850_s23  ;;  %p1854_p9 = scmp.lt.u32.totalorder %s1850_s23, %s2657_s0 }
  0x19   :  { %p1856_p10 = pnand %p1854_p9, %p1851_p8 }
  0x1b   :  { %1859 = shalt.err (!%p1856_p10)
}
  0x1c   :  { %s1860_s29 = scalar_lea.vmem %s2028_s30, 128  ;;  %p1865_p12 = scmp.lt.s32.totalorder %s2028_s30, %s2028_s30 }
  0x1d   :  { %p1861_p11 = scmp.ne.s32.totalorder %s2028_s30, %s1860_s29  ;;  %p1866_p13 = scmp.lt.s32.totalorder %s1860_s29, %s1860_s29 }
  0x1f   :  { %p1867_p0 = por %p1866_p13, %p1865_p12 }
  0x21   :  { %p1868_p1 = pnand %p1867_p0, %p1861_p11 }
  0x23   :  { %1871 = shalt.err (!%p1868_p1)
}
  0x24   :  { %30 = dma.hbm_to_vmem [thread:$0]  %s2657_s0, 128, %s2028_s30, [#allocation3], %s1972_s17, %s1972_s17, %s1973_s18  }
  0x25   :  { %s1974_s9 = smov [#allocation7]   ;;  %s1975_s11 = smov [#allocation8]  }
  0x26   :  { %s48_s10 = sshll.u32 %s1974_s9, 4  ;;  %s62_s12 = sshll.u32 %s1975_s11, 4  ;;  %s49_s10 = int_to_ptr.vmem [resolvable:$true] %s48_s10  ;;  %s2065_s12 = int_to_ptr.vmem [resolvable:$true] %s62_s12 }
  0x27   :  { %s1872_s15 = scalar_lea.hbm %s2659_s2, 256 }
  0x28   :  { %p1873_p2 = scmp.ne.s32.totalorder %s2659_s2, %s1872_s15  ;;  %p1876_p3 = scmp.lt.u32.totalorder %s1872_s15, %s2659_s2 }
  0x2a   :  { %p1878_p4 = pnand %p1876_p3, %p1873_p2 }
  0x2c   :  { %1881 = shalt.err (!%p1878_p4)
}
  0x2d   :  { %s1882_s0 = scalar_lea.vmem %s49_s10, 256  ;;  %p1887_p6 = scmp.lt.s32.totalorder %s49_s10, %s49_s10 }
  0x2e   :  { %p1883_p5 = scmp.ne.s32.totalorder %s49_s10, %s1882_s0  ;;  %p1888_p7 = scmp.lt.s32.totalorder %s1882_s0, %s1882_s0 }
  0x30   :  { %p1889_p8 = por %p1888_p7, %p1887_p6 }
  0x32   :  { %p1890_p9 = pnand %p1889_p8, %p1883_p5 }
  0x34   :  { %1893 = shalt.err (!%p1890_p9)
}
  0x35   :  { %54 = dma.hbm_to_vmem [thread:$0]  %s2659_s2, 256, %s49_s10, [#allocation6], %s1972_s17, %s1972_s17, %s1973_s18  }
  0x36   :  { %s1894_s25 = scalar_lea.hbm %s2661_s4, 256 }
  0x37   :  { %p1895_p10 = scmp.ne.s32.totalorder %s2661_s4, %s1894_s25  ;;  %p1898_p11 = scmp.lt.u32.totalorder %s1894_s25, %s2661_s4 }
  0x39   :  { %p1900_p12 = pnand %p1898_p11, %p1895_p10 }
  0x3b   :  { %1903 = shalt.err (!%p1900_p12)
}
  0x3c   :  { %s1904_s28 = scalar_lea.vmem %s2065_s12, 256  ;;  %p1909_p0 = scmp.lt.s32.totalorder %s2065_s12, %s2065_s12 }
  0x3d   :  { %p1905_p13 = scmp.ne.s32.totalorder %s2065_s12, %s1904_s28  ;;  %p1910_p1 = scmp.lt.s32.totalorder %s1904_s28, %s1904_s28 }
  0x3f   :  { %p1911_p2 = por %p1910_p1, %p1909_p0 }
  0x41   :  { %p1912_p3 = pnand %p1911_p2, %p1905_p13 }
  0x43   :  { %1915 = shalt.err (!%p1912_p3)
}
  0x44   :  { %68 = dma.hbm_to_vmem [thread:$0]  %s2661_s4, 256, %s2065_s12, [#allocation9], %s1972_s17, %s1972_s17, %s1973_s18  }
  0x45   :  { %1960 = dma.done.wait [#allocation3], 128  }
  0x46   :  { %1961 = vsyncadd [#allocation3], 4294967168 }
  0x47   :  { %1962 = dma.done.wait [#allocation6], 2304  }
  0x48   :  { %1963 = vsyncadd [#allocation6], 4294964992 }
  0x49   :  { %1964 = dma.done.wait [#allocation9], 256  }
  0x4a   :  { %1965 = vsyncadd [#allocation9], 4294967040  ;;  %v1976_v0 = vmov 0.0   ;;  %vm1977_vm0 = vmmov 0   ;;  %vm146_vm1 = vcmask 261120   ;;  %v1703_v1 = vld [vmem:[#allocation8] sm:$0xff]   ;;  %v519_v28 = vlaneseq }
  0x4b   :  { %1638 = vmatprep.subr.bf16.mxu0 %v1976_v0  ;;  %1642 = vmatprep.mubr.msk.bf16.mxu0 %vm1977_vm0, %v1976_v0  ;;  %v1704_v2 = vld [vmem:[#allocation7] sm:$0xff]   ;;  %v347_v3 = vsel %vm146_vm1, %v1703_v1, 0  ;;  %v1705_v4 = vld [vmem:[#allocation8 + $0x8] sm:$0xff]   ;;  %v100_v6 = vld [vmem:[#allocation5 + $0x30] sm:$0xff]   ;;  %v1978_v26 = vmov 1966171168  }
  0x4c   :  { %1687 = vmatprep.subr.msk.bf16.mxu1 %vm146_vm1, %v1703_v1  ;;  %v151_v5 = vsel %vm146_vm1, %v1704_v2, 0  ;;  %v1706_v7 = vld [vmem:[#allocation7 + $0x8] sm:$0xff]   ;;  %1662 = vmatprep.mubr.msk.bf16.mxu1 %vm146_vm1, %v100_v6  ;;  %v350_v8 = vsel %vm146_vm1, %v1705_v4, 0  ;;  %v102_v10 = vld [vmem:[#allocation5 + $0x38] sm:$0xff]   ;;  %v104_v11 = vld [vmem:[#allocation5 + $0x40] sm:$0xff]   ;;  %v517_v27 = vunpack.c.l.s4 %v1978_v26  ;;  %v2128_v30 = vshrl.u32 %v519_v28, 7 }
  0x4d   :  { %1684 = vmatpush3.bf16.xpose.msra.mxu1 %v347_v3  ;;  %1639 = vmatpush3.bf16.xpose.msra.mxu0 %v151_v5  ;;  %v154_v9 = vsel %vm146_vm1, %v1706_v7, 0  ;;  %v88_v12 = vld [vmem:[#allocation5] sm:$0xff]   ;;  %v1708_v13 = vld [vmem:[#allocation2] sm:$0xff]   ;;  %v106_v14 = vld [vmem:[#allocation5 + $0x48] sm:$0xff]   ;;  %vm936_vm2 = vcmask 130112   ;;  %vm1073_vm3 = vcmask 1041409  }
  0x4e   :  { %1689 = vmatprep.subr.msk.bf16.mxu1 %vm146_vm1, %v1705_v4  ;;  %1640 = vmatprep.subr.bf16.mxu0 %v1976_v0  ;;  %v108_v15 = vld [vmem:[#allocation5 + $0x50] sm:$0xff]   ;;  %v110_v16 = vld [vmem:[#allocation5 + $0x58] sm:$0xff]   ;;  %v90_v17 = vld [vmem:[#allocation5 + $0x8] sm:$0xff]   ;;  %v518_v29 = vunpack.c.0.s8 %v517_v27  ;;  %v2145_v50 = vsub.s32 0, %v2128_v30  ;;  %vm1075_vm4 = vcmask 1042434   ;;  %vm1077_vm5 = vcmask 1043459  }
  0x4f   :  { %v112_v18 = vld [vmem:[#allocation5 + $0x60] sm:$0xff]   ;;  %v92_v19 = vld [vmem:[#allocation5 + $0x10] sm:$0xff]   ;;  %v114_v20 = vld [vmem:[#allocation5 + $0x68] sm:$0xff]   ;;  %vm1079_vm6 = vcmask 1044484   ;;  %vm1083_vm7 = vcmask 1046534   ;;  %vm1081_vm8 = vcmask 1045509  }
  0x50   :  { %v94_v21 = vld [vmem:[#allocation5 + $0x18] sm:$0xff]   ;;  %v116_v22 = vld [vmem:[#allocation5 + $0x70] sm:$0xff]   ;;  %v96_v23 = vld [vmem:[#allocation5 + $0x20] sm:$0xff]   ;;  %v2134_v32 = vsub.s32 %v518_v29, %v2128_v30  ;;  %vm1085_vm9 = vcmask 1047559   ;;  %vm1098_vm11 = vcmask 130048  }
  0x51   :  { %v118_v24 = vld [vmem:[#allocation5 + $0x78] sm:$0xff]   ;;  %v98_v25 = vld [vmem:[#allocation5 + $0x28] sm:$0xff]  }
  0x52   :  { %v1576_v31 = vld [vmem:[%s2660_s3] ss:$0 sm:$0xff] }
  0x53   :  { %v2140_v43 = vld [vmem:[%s2662_s5] ss:$0 sm:$0xff] }
  0x55   :  { %1685 = vmatpush3.bf16.xpose.msra.mxu1 %v350_v8  ;;  %1641 = vmatpush3.bf16.xpose.msra.mxu0 %v154_v9 }
  0x56   :  { %1686 = vmatprep.subr.msk.bf16.mxu0 %vm146_vm1, %v1703_v1 }
  0x5c   :  { %1663 = vmatmul.mubr.msk.bf16.vlgmr.msra.gmra.mrb[0].mxu1 %vm146_vm1, %v102_v10  ;;  %1643 = vmatmul.mubr.msk.bf16.vlgmr.msra.gmra.mrb[0].mxu0 %vm146_vm1, %v1708_v13 }
  0x5d   :  { %1666 = vmatprep.mubr.msk.bf16.mxu1 %vm146_vm1, %v104_v11  ;;  %1647 = vmatpush3.bf16.xpose.msra.mxu0 %v347_v3 }
  0x5e   :  { %1650 = vmatprep.mubr.msk.bf16.mxu0 %vm146_vm1, %v88_v12  ;;  %1688 = vmatprep.subr.msk.bf16.mxu0 %vm146_vm1, %v1705_v4 }
  0x64   :  { %1667 = vmatmul.mubr.msk.bf16.gmra.mrb[4].mxu1 %vm146_vm1, %v106_v14 }
  0x65   :  { %1670 = vmatprep.mubr.msk.bf16.mxu1 %vm146_vm1, %v108_v15  ;;  %1649 = vmatpush3.bf16.xpose.msra.mxu0 %v350_v8 }
  0x6c   :  { %1671 = vmatmul.mubr.msk.bf16.gmra.mrb[8].mxu1 %vm146_vm1, %v110_v16  ;;  %1651 = vmatmul.mubr.msk.bf16.vlgmr.msra.gmra.mrb[4].mxu0 %vm146_vm1, %v90_v17 }
  0x6d   :  { %1674 = vmatprep.mubr.msk.bf16.mxu1 %vm146_vm1, %v112_v18  ;;  %1654 = vmatprep.mubr.msk.bf16.mxu0 %vm146_vm1, %v92_v19 }
  0x74   :  { %1675 = vmatmul.mubr.msk.bf16.gmra.mrb[12].mxu1 %vm146_vm1, %v114_v20  ;;  %1655 = vmatmul.mubr.msk.bf16.gmra.mrb[8].mxu0 %vm146_vm1, %v94_v21 }
  0x75   :  { %1678 = vmatprep.mubr.msk.bf16.mxu1 %vm146_vm1, %v116_v22  ;;  %1658 = vmatprep.mubr.msk.bf16.mxu0 %vm146_vm1, %v96_v23 }
  0x7c   :  { %1679 = vmatmul.mubr.msk.bf16.gmra.mrb[16].mxu1 %vm146_vm1, %v118_v24  ;;  %1659 = vmatmul.mubr.msk.bf16.gmra.mrb[12].mxu0 %vm146_vm1, %v98_v25 }
 0x12f   :  { %v1664_v33 = vpop.f32.mrb[0].mxu1  ;;  %v190_v34 = vpop.f32.mrb[0].mxu0 }
 0x130   :  { %v434_v35 = vpop.f32.mrb[1].mxu1  ;;  %v191_v36 = vadd.f32 %v1576_v31, %v190_v34  ;;  %v1644_v37 = vpop.f32.mrb[1].mxu0  ;;  %v443_v49 = vadd.f32 %v1664_v33, %v2140_v43 }
 0x131   :  { %v1665_v38 = vpop.f32.mrb[2].mxu1  ;;  %v193_v39 = vpop.f32.mrb[2].mxu0  ;;  %v435_v54 = vadd.f32 %v2140_v43, %v434_v35 }
 0x132   :  { %v437_v40 = vpop.f32.mrb[3].mxu1  ;;  %v515_v41 = vcombine.high %v191_v36, %v191_v36  ;;  %v522_v42 = vrot.slane %v191_v36, %v2134_v32  ;;  %v194_v44 = vadd.f32 %v1576_v31, %v193_v39  ;;  %v1645_v45 = vpop.f32.mrb[3].mxu0  ;;  %v446_v55 = vadd.f32 %v1665_v38, %v2140_v43 }
 0x133   :  { %v438_v60 = vadd.f32 %v2140_v43, %v437_v40 }
 0x134   :  { %v529_v46 = vrot.slane %v515_v41, %v2134_v32  ;;  %v564_v47 = vcombine.high %v194_v44, %v194_v44  ;;  %v530_v48 = vcombine.high %v522_v42, %v522_v42  ;;  %v571_v51 = vrot.slane %v194_v44, %v2134_v32 }
 0x135   :  { %v2154_v57 = vrot.slane %v522_v42, %v2134_v32 }
 0x136   :  { %v531_v52 = vcombine.high %v529_v46, %v529_v46  ;;  %v2149_v53 = vrot.slane %v529_v46, %v2134_v32  ;;  %v579_v58 = vcombine.high %v571_v51, %v571_v51  ;;  %v587_v59 = vrot.slane %v571_v51, %v2134_v32 }
 0x137   :  { %v1668_v56 = vpop.f32.mrb[4].mxu1  ;;  %v578_v0 = vrot.slane %v564_v47, %v2134_v32  ;;  %v2169_v7 = vrot.slane %v530_v48, %v2134_v32  ;;  %v616_v26 = vrot.slane %v2154_v57, %v2145_v50 }
 0x138   :  { %v450_v61 = vpop.f32.mrb[5].mxu1  ;;  %v2159_v62 = vrot.slane %v531_v52, %v2134_v32  ;;  %v561_v63 = vcombine.high %v2149_v53, %v2149_v53  ;;  %v601_v3 = vrot.slane %v579_v58, %v2134_v32  ;;  %v648_v4 = vrot.slane %v587_v59, %v2145_v50 }
 0x139   :  { %v451_v1 = vadd.f32 %v2140_v43, %v450_v61  ;;  %v1669_v2 = vpop.f32.mrb[6].mxu1  ;;  %v459_v10 = vadd.f32 %v1668_v56, %v2140_v43  ;;  %v609_v15 = vcombine.high %v587_v59, %v587_v59  ;;  %v580_v20 = vcombine.high %v578_v0, %v578_v0 }
 0x13a   :  { %v462_v5 = vadd.f32 %v1669_v2, %v2140_v43  ;;  %v453_v6 = vpop.f32.mrb[7].mxu1  ;;  %v563_v8 = vcombine.high %v2159_v62, %v2159_v62  ;;  %v640_v9 = vrot.slane %v561_v63, %v2145_v50  ;;  %v652_v12 = vrot.slane %v601_v3, %v2145_v50 }
 0x13b   :  { %v454_v11 = vadd.f32 %v2140_v43, %v453_v6  ;;  %v709_v13 = vadd.f32 %v648_v4, %v451_v1  ;;  %v611_v14 = vcombine.high %v601_v3, %v601_v3  ;;  %v620_v29 = vrot.slane %v2169_v7, %v2145_v50  ;;  %v2213_v1 = vld [vmem:[%s2663_s6] ss:$0 sm:$0xff]  ;;  %s1979_s6 = smov [#allocation11]  }
 0x13c   :  { %v644_v16 = vrot.slane %v563_v8, %v2145_v50  ;;  %v705_v17 = vadd.f32 %v640_v9, %v435_v54  ;;  %v706_v18 = vadd.f32 %v640_v9, %v438_v60  ;;  %v711_v21 = vadd.f32 %v652_v12, %v459_v10  ;;  %s1558_s11 = sshll.u32 %s1979_s6, 4  ;;  %s1559_s11 = int_to_ptr.vmem [resolvable:$true] %s1558_s11 }
 0x13d   :  { %v710_v19 = vadd.f32 %v648_v4, %v454_v11  ;;  %1740 = vtanh.f32 %v709_v13  ;;  %v712_v22 = vadd.f32 %v652_v12, %v462_v5  ;;  %v660_v33 = vrot.slane %v611_v14, %v2145_v50  ;;  %s1916_s12 = scalar_lea.vmem %s1559_s11, 256  ;;  %p1921_p5 = scmp.lt.s32.totalorder %s1559_s11, %s1559_s11 }
 0x13e   :  { %v707_v23 = vadd.f32 %v644_v16, %v443_v49  ;;  %v708_v24 = vadd.f32 %v644_v16, %v446_v55  ;;  %v562_v35 = vcombine.high %v2169_v7, %v2169_v7  ;;  %1742 = vtanh.f32 %v706_v18  ;;  %p1917_p4 = scmp.ne.s32.totalorder %s1559_s11, %s1916_s12  ;;  %p1922_p6 = scmp.lt.s32.totalorder %s1916_s12, %s1916_s12 }
 0x13f   :  { %v1672_v25 = vpop.f32.mrb[8].mxu1  ;;  %v1652_v27 = vpop.f32.mrb[4].mxu0  ;;  %v656_v39 = vrot.slane %v609_v15, %v2145_v50  ;;  %v2192_v47 = vrot.slane %v580_v20, %v2134_v32  ;;  %1744 = vtanh.f32 %v711_v21  ;;  %v560_v61 = vcombine.high %v2154_v57, %v2154_v57 }
 0x140   :  { %v475_v31 = vadd.f32 %v1672_v25, %v2140_v43  ;;  %v466_v34 = vpop.f32.mrb[9].mxu1  ;;  %v395_v36 = vadd.f32 %v1652_v27, %v2140_v43  ;;  %v386_v37 = vpop.f32.mrb[5].mxu0  ;;  %1746 = vtanh.f32 %v712_v22  ;;  %v594_v63 = vrot.slane %v578_v0, %v2134_v32  ;;  %p1923_p7 = por %p1922_p6, %p1921_p5 }
 0x141   :  { %v467_v38 = vadd.f32 %v2140_v43, %v466_v34  ;;  %v1673_v40 = vpop.f32.mrb[10].mxu1  ;;  %v387_v42 = vadd.f32 %v2140_v43, %v386_v37  ;;  %v1653_v44 = vpop.f32.mrb[6].mxu0  ;;  %1748 = vtanh.f32 %v705_v17  ;;  %v628_v6 = vrot.slane %v562_v35, %v2145_v50 }
 0x142   :  { %v715_v41 = vadd.f32 %v660_v33, %v475_v31  ;;  %v478_v45 = vadd.f32 %v1673_v40, %v2140_v43  ;;  %v469_v46 = vpop.f32.mrb[11].mxu1  ;;  %v695_v48 = vadd.f32 %v620_v29, %v395_v36  ;;  %v398_v51 = vadd.f32 %v1653_v44, %v2140_v43  ;;  %v389_v52 = vpop.f32.mrb[7].mxu0  ;;  %p1924_p8 = pnand %p1923_p7, %p1917_p4 }
 0x143   :  { %v2194_v49 = vadd.f32 %v656_v39, %v467_v38  ;;  %v2197_v54 = vadd.f32 %v616_v26, %v387_v42  ;;  %v390_v56 = vadd.f32 %v2140_v43, %v389_v52  ;;  %v470_v59 = vadd.f32 %v2140_v43, %v469_v46 }
 0x144   :  { %v2199_v55 = vadd.f32 %v660_v33, %v478_v45  ;;  %v2202_v58 = vadd.f32 %v620_v29, %v398_v51  ;;  %1750 = vtanh.f32 %v707_v23  ;;  %v668_v57 = vrot.slane %v2192_v47, %v2145_v50 }
 0x145   :  { %v2205_v60 = vadd.f32 %v616_v26, %v390_v56  ;;  %1752 = vtanh.f32 %v708_v24  ;;  %v2215_v2 = vadd.f32 %v656_v39, %v470_v59  ;;  %v664_v10 = vrot.slane %v594_v63, %v2145_v50 }
 0x146   :  { %1754 = vtanh.f32 %v710_v19  ;;  %v624_v15 = vrot.slane %v560_v61, %v2145_v50  ;;  %v612_v24 = vcombine.high %v2192_v47, %v2192_v47  ;;  %v610_v29 = vcombine.high %v594_v63, %v594_v63 }
 0x147   :  { %v1676_v3 = vpop.f32.mrb[12].mxu1  ;;  %v1741_v4 = vpop.eup %1740  ;;  %1756 = vtanh.f32 %v715_v41  ;;  %v636_v45 = vrot.slane %v2159_v62, %v2145_v50 }
 0x148   :  { %v1656_v5 = vpop.f32.mrb[8].mxu0  ;;  %v491_v7 = vadd.f32 %v1676_v3, %v2140_v43  ;;  %v482_v32 = vpop.f32.mrb[13].mxu1  ;;  %v780_v12 = vmul.f32 %v1741_v4, %v2213_v1  ;;  %1758 = vtanh.f32 %v695_v48  ;;  %v676_v41 = vrot.slane %v612_v24, %v2145_v50 }
 0x149   :  { %v411_v0 = vadd.f32 %v1656_v5, %v2140_v43  ;;  %v402_v8 = vpop.f32.mrb[9].mxu0  ;;  %v483_v9 = vadd.f32 %v2140_v43, %v482_v32  ;;  %v1677_v11 = vpop.f32.mrb[14].mxu1  ;;  %v672_v59 = vrot.slane %v610_v29, %v2145_v50  ;;  %1760 = vtanh.f32 %v2197_v54 }
 0x14a   :  { %v2225_v13 = vadd.f32 %v668_v57, %v491_v7  ;;  %v403_v14 = vadd.f32 %v2140_v43, %v402_v8  ;;  %v1657_v16 = vpop.f32.mrb[10].mxu0  ;;  %v494_v17 = vadd.f32 %v1677_v11, %v2140_v43  ;;  %v485_v18 = vpop.f32.mrb[15].mxu1  ;;  %v844_v35 = vsel %vm146_vm1, %v780_v12, 0.0 }
 0x14b   :  { %v1743_v19 = vpop.eup %1742  ;;  %v2230_v20 = vadd.f32 %v628_v6, %v411_v0  ;;  %v2232_v21 = vadd.f32 %v664_v10, %v483_v9  ;;  %v414_v22 = vadd.f32 %v1657_v16, %v2140_v43  ;;  %v405_v23 = vpop.f32.mrb[11].mxu0  ;;  %v486_v34 = vadd.f32 %v2140_v43, %v485_v18  ;;  %845 = vadd.xlane.f32.xlu0 %v844_v35 }
 0x14c   :  { %v2237_v25 = vadd.f32 %v624_v15, %v403_v14  ;;  %v2239_v26 = vadd.f32 %v668_v57, %v494_v17  ;;  %v406_v27 = vadd.f32 %v2140_v43, %v405_v23  ;;  %v1745_v31 = vpop.eup %1744  ;;  %v777_v62 = vmul.f32 %v1743_v19, %v2213_v1 }
 0x14d   :  { %v2242_v33 = vadd.f32 %v628_v6, %v414_v22  ;;  %v1747_v36 = vpop.eup %1746  ;;  %v782_v38 = vmul.f32 %v1745_v31, %v2213_v1  ;;  %v2249_v40 = vadd.f32 %v664_v10, %v486_v34  ;;  %v632_v10 = vrot.slane %v2149_v53, %v2145_v50 }
 0x14e   :  { %v2246_v37 = vadd.f32 %v624_v15, %v406_v27  ;;  %v1749_v39 = vpop.eup %1748  ;;  %v783_v42 = vmul.f32 %v1747_v36, %v2213_v1  ;;  %1762 = vtanh.f32 %v2202_v58  ;;  %v835_v15 = vsel %vm146_vm1, %v777_v62, 0.0 }
 0x14f   :  { %v1680_v44 = vpop.f32.mrb[16].mxu1  ;;  %v1751_v46 = vpop.eup %1750  ;;  %v850_v51 = vsel %vm146_vm1, %v782_v38, 0.0  ;;  %v776_v18 = vmul.f32 %v1749_v39, %v2213_v1  ;;  %1764 = vtanh.f32 %v2194_v49 }
 0x150   :  { %v507_v47 = vadd.f32 %v1680_v44, %v2140_v43  ;;  %v1660_v52 = vpop.f32.mrb[12].mxu0  ;;  %v498_v56 = vpop.f32.mrb[17].mxu1  ;;  %v853_v61 = vsel %vm146_vm1, %v783_v42, 0.0  ;;  %851 = vadd.xlane.f32.xlu0 %v850_v51  ;;  %1766 = vtanh.f32 %v2199_v55 }
 0x151   :  { %v1753_v48 = vpop.eup %1752  ;;  %v427_v63 = vadd.f32 %v1660_v52, %v2140_v43  ;;  %v499_v3 = vadd.f32 %v2140_v43, %v498_v56  ;;  %v418_v4 = vpop.f32.mrb[13].mxu0  ;;  %854 = vadd.xlane.f32.xlu1 %v853_v61  ;;  %v832_v23 = vsel %vm146_vm1, %v776_v18, 0.0  ;;  %1768 = vtanh.f32 %v2205_v60 }
 0x152   :  { %v1681_v5 = vpop.f32.mrb[18].mxu1  ;;  %v1755_v6 = vpop.eup %1754  ;;  %v2263_v7 = vadd.f32 %v676_v41, %v507_v47  ;;  %v419_v57 = vadd.f32 %v2140_v43, %v418_v4  ;;  %v779_v31 = vmul.f32 %v1753_v48, %v2213_v1 }
 0x153   :  { %v1661_v32 = vpop.f32.mrb[14].mxu0  ;;  %v501_v0 = vpop.f32.mrb[19].mxu1  ;;  %v2266_v8 = vadd.f32 %v636_v45, %v427_v63  ;;  %v2268_v9 = vadd.f32 %v672_v59, %v499_v3  ;;  %v510_v12 = vadd.f32 %v1681_v5, %v2140_v43  ;;  %v781_v24 = vmul.f32 %v1755_v6, %v2213_v1 }
 0x154   :  { %v421_v11 = vpop.f32.mrb[15].mxu0  ;;  %v430_v54 = vadd.f32 %v1661_v32, %v2140_v43  ;;  %v2277_v16 = vadd.f32 %v632_v10, %v419_v57  ;;  %v502_v17 = vadd.f32 %v2140_v43, %v501_v0  ;;  %v1757_v27 = vpop.eup %1756  ;;  %833 = vadd.xlane.f32.xlu0 %v832_v23  ;;  %v841_v55 = vsel %vm146_vm1, %v779_v31, 0.0 }
 0x155   :  { %v422_v14 = vadd.f32 %v2140_v43, %v421_v11  ;;  %836 = vadd.xlane.f32.xlu1 %v835_v15  ;;  %v724_v58 = vadd.f32 %v676_v41, %v510_v12  ;;  %v778_v43 = vmul.f32 %v1751_v46, %v2213_v1  ;;  %v1759_v29 = vpop.eup %1758  ;;  %v847_v49 = vsel %vm146_vm1, %v781_v24, 0.0 }
 0x156   :  { %v2282_v53 = vadd.f32 %v636_v45, %v430_v54  ;;  %v2286_v22 = vadd.f32 %v672_v59, %v502_v17  ;;  %v786_v35 = vmul.f32 %v1757_v27, %v2213_v1  ;;  %v1761_v36 = vpop.eup %1760  ;;  %v766_v38 = vmul.f32 %v1759_v29, %v2213_v1 }
 0x157   :  { %v2284_v19 = vadd.f32 %v632_v10, %v422_v14  ;;  %1770 = vtanh.f32 %v724_v58  ;;  %v838_v34 = vsel %vm146_vm1, %v778_v43, 0.0  ;;  %v764_v42 = vmul.f32 %v1761_v36, %v2213_v1 }
 0x158   :  { %1772 = vtanh.f32 %v2215_v2  ;;  %839 = vadd.xlane.f32.xlu0 %v838_v34  ;;  %v1763_v39 = vpop.eup %1762  ;;  %v862_v60 = vsel %vm146_vm1, %v786_v35, 0.0  ;;  %v802_v45 = vsel %vm146_vm1, %v766_v38, 0.0 }
 0x159   :  { %848 = vadd.xlane.f32.xlu1 %v847_v49  ;;  %1774 = vtanh.f32 %v2230_v20  ;;  %v1765_v44 = vpop.eup %1764  ;;  %v767_v2 = vmul.f32 %v1763_v39, %v2213_v1  ;;  %v796_v47 = vsel %vm146_vm1, %v764_v42, 0.0 }
 0x15a   :  { %1776 = vtanh.f32 %v2242_v33  ;;  %v1767_v46 = vpop.eup %1766  ;;  %v784_v20 = vmul.f32 %v1765_v44, %v2213_v1 }
 0x15b   :  { %1778 = vtanh.f32 %v2225_v13  ;;  %v1769_v41 = vpop.eup %1768  ;;  %v805_v33 = vsel %vm146_vm1, %v767_v2, 0.0  ;;  %v787_v52 = vmul.f32 %v1767_v46, %v2213_v1 }
 0x15c   :  { %863 = vadd.xlane.f32.xlu0 %v862_v60  ;;  %1780 = vtanh.f32 %v2239_v26  ;;  %v856_v59 = vsel %vm146_vm1, %v784_v20, 0.0  ;;  %v765_v48 = vmul.f32 %v1769_v41, %v2213_v1 }
 0x15d   :  { %842 = vadd.xlane.f32.xlu1 %v841_v55  ;;  %1782 = vtanh.f32 %v2237_v25  ;;  %v865_v26 = vsel %vm146_vm1, %v787_v52, 0.0 }
 0x15e   :  { %1784 = vtanh.f32 %v2246_v37  ;;  %v799_v25 = vsel %vm146_vm1, %v765_v48, 0.0 }
 0x15f   :  { %1786 = vtanh.f32 %v2232_v21 }
 0x160   :  { %797 = vadd.xlane.f32.xlu0 %v796_v47  ;;  %1788 = vtanh.f32 %v2249_v40 }
 0x161   :  { %803 = vadd.xlane.f32.xlu1 %v802_v45  ;;  %v1771_v51 = vpop.eup %1770  ;;  %1790 = vtanh.f32 %v2266_v8 }
 0x162   :  { %v1773_v56 = vpop.eup %1772  ;;  %v2314_v13 = vmul.f32 %v1771_v51, %v2213_v1  ;;  %1792 = vtanh.f32 %v2282_v53 }
 0x163   :  { %v1775_v61 = vpop.eup %1774  ;;  %v785_v63 = vmul.f32 %v1773_v56, %v2213_v1  ;;  %1794 = vtanh.f32 %v2277_v16 }
 0x164   :  { %857 = vadd.xlane.f32.xlu0 %v856_v59  ;;  %v1777_v3 = vpop.eup %1776  ;;  %v770_v62 = vmul.f32 %v1775_v61, %v2213_v1  ;;  %1796 = vtanh.f32 %v2284_v19  ;;  %v889_v46 = vsel %vm146_vm1, %v2314_v13, 0.0 }
 0x165   :  { %806 = vadd.xlane.f32.xlu1 %v805_v33  ;;  %v1779_v4 = vpop.eup %1778  ;;  %v859_v5 = vsel %vm146_vm1, %v785_v63, 0.0  ;;  %v771_v37 = vmul.f32 %v1777_v3, %v2213_v1  ;;  %1798 = vtanh.f32 %v2268_v9 }
 0x166   :  { %v1781_v6 = vpop.eup %1780  ;;  %v814_v57 = vsel %vm146_vm1, %v770_v62, 0.0  ;;  %v790_v21 = vmul.f32 %v1779_v4, %v2213_v1  ;;  %1800 = vtanh.f32 %v2286_v22 }
 0x167   :  { %v1783_v32 = vpop.eup %1782  ;;  %v817_v0 = vsel %vm146_vm1, %v771_v37, 0.0  ;;  %v791_v40 = vmul.f32 %v1781_v6, %v2213_v1  ;;  %1802 = vtanh.f32 %v2263_v7 }
 0x168   :  { %800 = vadd.xlane.f32.xlu0 %v799_v25  ;;  %v1785_v10 = vpop.eup %1784  ;;  %v874_v11 = vsel %vm146_vm1, %v790_v21, 0.0  ;;  %v768_v8 = vmul.f32 %v1783_v32, %v2213_v1 }
 0x169   :  { %866 = vadd.xlane.f32.xlu1 %v865_v26  ;;  %v1787_v54 = vpop.eup %1786  ;;  %v877_v12 = vsel %vm146_vm1, %v791_v40, 0.0  ;;  %v769_v14 = vmul.f32 %v1785_v10, %v2213_v1 }
 0x16a   :  { %v1789_v15 = vpop.eup %1788  ;;  %v808_v17 = vsel %vm146_vm1, %v768_v8, 0.0  ;;  %v788_v16 = vmul.f32 %v1787_v54, %v2213_v1 }
 0x16b   :  { %v1791_v18 = vpop.eup %1790  ;;  %v811_v53 = vsel %vm146_vm1, %v769_v14, 0.0  ;;  %v789_v58 = vmul.f32 %v1789_v15, %v2213_v1 }
 0x16c   :  { %815 = vadd.xlane.f32.xlu0 %v814_v57  ;;  %v1793_v19 = vpop.eup %1792  ;;  %v868_v23 = vsel %vm146_vm1, %v788_v16, 0.0  ;;  %v774_v9 = vmul.f32 %v1791_v18, %v2213_v1 }
 0x16d   :  { %860 = vadd.xlane.f32.xlu1 %v859_v5  ;;  %v1795_v24 = vpop.eup %1794  ;;  %v871_v27 = vsel %vm146_vm1, %v789_v58, 0.0  ;;  %v775_v43 = vmul.f32 %v1793_v19, %v2213_v1  ;;  %v2383_v5 = vand.u32 127, %v519_v28 }
 0x16e   :  { %v1797_v22 = vpop.eup %1796  ;;  %v826_v29 = vsel %vm146_vm1, %v774_v9, 0.0  ;;  %v772_v49 = vmul.f32 %v1795_v24, %v2213_v1 }
 0x16f   :  { %v1799_v31 = vpop.eup %1798  ;;  %v829_v7 = vsel %vm146_vm1, %v775_v43, 0.0  ;;  %v773_v34 = vmul.f32 %v1797_v22, %v2213_v1  ;;  %v931_v57 = vadd.s32 4294967288, %v2383_v5  ;;  %v2395_v10 = vsub.s32 %v2383_v5, %v2128_v30 }
 0x170   :  { %875 = vadd.xlane.f32.xlu0 %v874_v11  ;;  %v1801_v35 = vpop.eup %1800  ;;  %v820_v36 = vsel %vm146_vm1, %v772_v49, 0.0  ;;  %v792_v55 = vmul.f32 %v1799_v31, %v2213_v1  ;;  %vm894_vm10 = vcmp.lt.s32.totalorder %v2383_v5, 8 }
 0x171   :  { %818 = vadd.xlane.f32.xlu1 %v817_v0  ;;  %v1803_v38 = vpop.eup %1802  ;;  %v823_v39 = vsel %vm146_vm1, %v773_v34, 0.0  ;;  %v793_v60 = vmul.f32 %v1801_v35, %v2213_v1  ;;  %v2391_v0 = vsub.s32 %v931_v57, %v2128_v30 }
 0x172   :  { %v880_v42 = vsel %vm146_vm1, %v792_v55, 0.0  ;;  %v794_v44 = vmul.f32 %v1803_v38, %v2213_v1 }
 0x173   :  { %v883_v45 = vsel %vm146_vm1, %v793_v60, 0.0 }
 0x174   :  { %809 = vadd.xlane.f32.xlu0 %v808_v17  ;;  %v886_v2 = vsel %vm146_vm1, %v794_v44, 0.0 }
 0x175   :  { %878 = vadd.xlane.f32.xlu1 %v877_v12 }
 0x178   :  { %869 = vadd.xlane.f32.xlu0 %v868_v23 }
 0x179   :  { %812 = vadd.xlane.f32.xlu1 %v811_v53 }
 0x17c   :  { %827 = vadd.xlane.f32.xlu0 %v826_v29 }
 0x17d   :  { %872 = vadd.xlane.f32.xlu1 %v871_v27 }
 0x180   :  { %821 = vadd.xlane.f32.xlu0 %v820_v36 }
 0x181   :  { %830 = vadd.xlane.f32.xlu1 %v829_v7 }
 0x184   :  { %881 = vadd.xlane.f32.xlu0 %v880_v42 }
 0x185   :  { %824 = vadd.xlane.f32.xlu1 %v823_v39 }
 0x188   :  { %887 = vadd.xlane.f32.xlu0 %v886_v2 }
 0x189   :  { %884 = vadd.xlane.f32.xlu1 %v883_v45 }
 0x18d   :  { %890 = vadd.xlane.f32.xlu1 %v889_v46 }
 0x1d8   :  { %v846_v47 = vpop.xlane.xlu0 %845 }
 0x1d9   :  { %v1004_v16 = vrot.slane %v846_v47, %v2395_v10 }
 0x1dd   :  { %v2366_v41 = vpop.xlane.xlu0 %851 }
 0x1de   :  { %v2364_v20 = vpop.xlane.xlu1 %854  ;;  %v1013_v58 = vrot.slane %v2366_v41, %v2395_v10 }
 0x1df   :  { %v1017_v18 = vrot.slane %v2364_v20, %v2391_v0 }
 0x1e1   :  { %v2370_v33 = vpop.xlane.xlu0 %833  ;;  %v1018_v46 = vsel %vm936_vm2, %v1017_v18, %v1013_v58 }
 0x1e2   :  { %v2368_v51 = vpop.xlane.xlu1 %836  ;;  %v986_v27 = vrot.slane %v2370_v33, %v2395_v10 }
 0x1e3   :  { %v990_v19 = vrot.slane %v2368_v51, %v2391_v0 }
 0x1e5   :  { %v2372_v52 = vpop.xlane.xlu0 %839  ;;  %v991_v47 = vsel %vm936_vm2, %v990_v19, %v986_v27 }
 0x1e6   :  { %v849_v1 = vpop.xlane.xlu1 %848  ;;  %v995_v33 = vrot.slane %v2372_v52, %v2395_v10 }
 0x1e7   :  { %v1008_v8 = vrot.slane %v849_v1, %v2391_v0 }
 0x1e9   :  { %v2376_v59 = vpop.xlane.xlu0 %863  ;;  %v1009_v43 = vsel %vm936_vm2, %v1008_v8, %v1004_v16 }
 0x1ea   :  { %v2374_v56 = vpop.xlane.xlu1 %842  ;;  %v1031_v20 = vrot.slane %v2376_v59, %v2395_v10  ;;  %v1087_v51 = vsel %vm1073_vm3, %v1018_v46, %v1009_v43  ;;  %v1156_v46 = vsub.s32 3, %v2128_v30 }
 0x1eb   :  { %v999_v1 = vrot.slane %v2374_v56, %v2391_v0 }
 0x1ed   :  { %v798_v61 = vpop.xlane.xlu0 %797 }
 0x1ee   :  { %v804_v48 = vpop.xlane.xlu1 %803  ;;  %v930_v14 = vrot.slane %v798_v61, %v2395_v10 }
 0x1ef   :  { %v941_v23 = vrot.slane %v804_v48, %v2395_v10 }
 0x1f1   :  { %v858_v26 = vpop.xlane.xlu0 %857 }
 0x1f2   :  { %v807_v13 = vpop.xlane.xlu1 %806  ;;  %v1022_v22 = vrot.slane %v858_v26, %v2395_v10 }
 0x1f3   :  { %v945_v15 = vrot.slane %v807_v13, %v2391_v0 }
 0x1f5   :  { %v801_v3 = vpop.xlane.xlu0 %800  ;;  %v946_v49 = vsel %vm936_vm2, %v945_v15, %v941_v23 }
 0x1f6   :  { %v2378_v63 = vpop.xlane.xlu1 %866  ;;  %v935_v28 = vrot.slane %v801_v3, %v2391_v0 }
 0x1f7   :  { %v1035_v31 = vrot.slane %v2378_v63, %v2391_v0 }
 0x1f8   :  { %v937_v9 = vsel %vm936_vm2, %v935_v28, %v930_v14 }
 0x1f9   :  { %v2380_v62 = vpop.xlane.xlu0 %815  ;;  %v1074_v36 = vsel %vm1073_vm3, %v946_v49, %v937_v9  ;;  %v1036_v13 = vsel %vm936_vm2, %v1035_v31, %v1031_v20  ;;  %v1167_v20 = vsub.s32 4, %v2128_v30 }
 0x1fa   :  { %v861_v25 = vpop.xlane.xlu1 %860  ;;  %v959_v7 = vrot.slane %v2380_v62, %v2395_v10 }
 0x1fb   :  { %v1026_v53 = vrot.slane %v861_v25, %v2391_v0 }
 0x1fd   :  { %v2385_v37 = vpop.xlane.xlu0 %875  ;;  %v1027_v55 = vsel %vm936_vm2, %v1026_v53, %v1022_v22 }
 0x1fe   :  { %v819_v4 = vpop.xlane.xlu1 %818  ;;  %v1088_v26 = vsel %vm1075_vm4, %v1027_v55, %v1087_v51  ;;  %v1178_v51 = vsub.s32 5, %v2128_v30 }
 0x1ff   :  { %v963_v34 = vrot.slane %v819_v4, %v2391_v0  ;;  %v1049_v4 = vrot.slane %v2385_v37, %v2395_v10 }
 0x201   :  { %v810_v21 = vpop.xlane.xlu0 %809  ;;  %v964_v48 = vsel %vm936_vm2, %v963_v34, %v959_v7 }
 0x202   :  { %v2387_v6 = vpop.xlane.xlu1 %878  ;;  %v950_v54 = vrot.slane %v810_v21, %v2395_v10 }
 0x203   :  { %v1053_v57 = vrot.slane %v2387_v6, %v2391_v0 }
 0x205   :  { %v870_v40 = vpop.xlane.xlu0 %869 }
 0x206   :  { %v813_v32 = vpop.xlane.xlu1 %812  ;;  %v1040_v38 = vrot.slane %v870_v40, %v2395_v10  ;;  %v1089_v40 = vsel %vm1077_vm5, %v1036_v13, %v1088_v26 }
 0x207   :  { %v954_v12 = vrot.slane %v813_v32, %v2391_v0 }
 0x209   :  { %v828_v17 = vpop.xlane.xlu0 %827  ;;  %v955_v29 = vsel %vm936_vm2, %v954_v12, %v950_v54 }
 0x20a   :  { %v873_v11 = vpop.xlane.xlu1 %872  ;;  %v1076_v60 = vsel %vm1075_vm4, %v955_v29, %v1074_v36  ;;  %v977_v44 = vrot.slane %v828_v17, %v2395_v10  ;;  %v1054_v17 = vsel %vm936_vm2, %v1053_v57, %v1049_v4 }
 0x20b   :  { %v1044_v42 = vrot.slane %v873_v11, %v2391_v0  ;;  %v1078_v59 = vsel %vm1077_vm5, %v964_v48, %v1076_v60  ;;  %v1000_v11 = vsel %vm936_vm2, %v999_v1, %v995_v33  ;;  %v1189_v1 = vsub.s32 6, %v2128_v30 }
 0x20d   :  { %v822_v35 = vpop.xlane.xlu0 %821  ;;  %v1045_v3 = vsel %vm936_vm2, %v1044_v42, %v1040_v38  ;;  %v1134_v42 = vsub.s32 1, %v2128_v30 }
 0x20e   :  { %v831_v24 = vpop.xlane.xlu1 %830  ;;  %v968_v39 = vrot.slane %v822_v35, %v2395_v10  ;;  %v1090_v54 = vsel %vm1079_vm6, %v1045_v3, %v1089_v40 }
 0x20f   :  { %v981_v45 = vrot.slane %v831_v24, %v2391_v0  ;;  %v1091_v53 = vsel %vm1081_vm8, %v1054_v17, %v1090_v54 }
 0x211   :  { %v882_v61 = vpop.xlane.xlu0 %881  ;;  %v982_v25 = vsel %vm936_vm2, %v981_v45, %v977_v44  ;;  %v1145_v45 = vsub.s32 2, %v2128_v30 }
 0x212   :  { %v825_v2 = vpop.xlane.xlu1 %824  ;;  %v1058_v62 = vrot.slane %v882_v61, %v2395_v10 }
 0x213   :  { %v972_v41 = vrot.slane %v825_v2, %v2391_v0 }
 0x215   :  { %v973_v63 = vsel %vm936_vm2, %v972_v41, %v968_v39  ;;  %v888_v28 = vpop.xlane.xlu0 %887 }
 0x216   :  { %v1080_v52 = vsel %vm1079_vm6, %v973_v63, %v1078_v59  ;;  %v885_v56 = vpop.xlane.xlu1 %884  ;;  %v1067_v12 = vrot.slane %v888_v28, %v2395_v10 }
 0x217   :  { %v1062_v21 = vrot.slane %v885_v56, %v2391_v0  ;;  %v1082_v32 = vsel %vm1081_vm8, %v982_v25, %v1080_v52  ;;  %v1200_v52 = vsub.s32 7, %v2128_v30 }
 0x218   :  { %v1084_v8 = vsel %vm1083_vm7, %v991_v47, %v1082_v32 }
 0x219   :  { %v1086_v37 = vsel %vm1085_vm9, %v1000_v11, %v1084_v8  ;;  %v1063_v6 = vsel %vm936_vm2, %v1062_v21, %v1058_v62 }
 0x21a   :  { %v891_v14 = vpop.xlane.xlu1 %890  ;;  %v1096_v15 = vsel %vm894_vm10, %v1086_v37, -inf  ;;  %v1092_v10 = vsel %vm1083_vm7, %v1063_v6, %v1091_v53 }
 0x21b   :  { %v1071_v16 = vrot.slane %v891_v14, %v2391_v0  ;;  %v1099_v18 = vsel %vm1098_vm11, %v1096_v15, -inf }
 0x21c   :  { %1100 = vmax.xlane.f32.xlu0 %v1099_v18 }
 0x21d   :  { %v1072_v58 = vsel %vm936_vm2, %v1071_v16, %v1067_v12 }
 0x21e   :  { %v1093_v19 = vsel %vm1085_vm9, %v1072_v58, %v1092_v10 }
 0x21f   :  { %v1097_v23 = vsel %vm894_vm10, %v1093_v19, -inf }
 0x220   :  { %v1102_v9 = vsel %vm1098_vm11, %v1097_v23, -inf }
 0x221   :  { %1103 = vmax.xlane.f32.xlu1 %v1102_v9 }
 0x2a9   :  { %v1101_v24 = vpop.xlane.xlu0 %1100 }
 0x2aa   :  { %v1105_v27 = vsub.f32 %v1096_v15, %v1101_v24 }
 0x2ac   :  { %v1107_v0 = vmul.f32 1.442695, %v1105_v27 }
 0x2ae   :  { %1804 = vpow2.f32 %v1107_v0  ;;  %v1104_v43 = vpop.xlane.xlu1 %1103 }
 0x2af   :  { %v1106_v22 = vsub.f32 %v1097_v23, %v1104_v43 }
 0x2b1   :  { %v1109_v29 = vmul.f32 1.442695, %v1106_v22 }
 0x2b3   :  { %1806 = vpow2.f32 %v1109_v29 }
 0x2b8   :  { %v1805_v49 = vpop.eup %1804 }
 0x2b9   :  { %v1111_v31 = vsel %vm1098_vm11, %v1805_v49, 0.0 }
 0x2ba   :  { %1112 = vadd.xlane.f32.xlu0 %v1111_v31 }
 0x2bd   :  { %v1807_v7 = vpop.eup %1806 }
 0x2be   :  { %v1114_v34 = vsel %vm1098_vm11, %v1807_v7, 0.0 }
 0x2bf   :  { %1115 = vadd.xlane.f32.xlu1 %v1114_v34 }
 0x347   :  { %v1113_v5 = vpop.xlane.xlu0 %1112 }
 0x348   :  { %1808 = vrcp.f32 %v1113_v5 }
 0x34c   :  { %v1116_v35 = vpop.xlane.xlu1 %1115 }
 0x34d   :  { %1810 = vrcp.f32 %v1116_v35 }
 0x352   :  { %v1809_v36 = vpop.eup %1808 }
 0x353   :  { %v1118_v55 = vmul.f32 %v1809_v36, %v1805_v49 }
 0x355   :  { %1539 = vst.msk [vmem:[#allocation11] sm:$0xff] %vm1098_vm11, %v1118_v55  ;;  %v1124_v61 = vrot.slane %v1118_v55, %v2145_v50  ;;  %v1135_v13 = vrot.slane %v1118_v55, %v1134_v42  ;;  %v1146_v26 = vrot.slane %v1118_v55, %v1145_v45  ;;  %v1157_v63 = vrot.slane %v1118_v55, %v1156_v46 }
 0x356   :  { %v1168_v59 = vrot.slane %v1118_v55, %v1167_v20  ;;  %v1179_v3 = vrot.slane %v1118_v55, %v1178_v51  ;;  %v1190_v25 = vrot.slane %v1118_v55, %v1189_v1 }
 0x357   :  { %v1811_v38 = vpop.eup %1810 }
 0x358   :  { %v1120_v39 = vmul.f32 %v1811_v38, %v1807_v7 }
 0x35a   :  { %1540 = vst.msk [vmem:[#allocation11 + $0x8] sm:$0xff] %vm1098_vm11, %v1120_v39  ;;  %v1212_v60 = vrot.slane %v1120_v39, %v2145_v50  ;;  %v1223_v44 = vrot.slane %v1120_v39, %v1134_v42  ;;  %v1234_v2 = vrot.slane %v1120_v39, %v1145_v45  ;;  %v1245_v47 = vrot.slane %v1120_v39, %v1156_v46 }
 0x35b   :  { %v1256_v41 = vrot.slane %v1120_v39, %v1167_v20  ;;  %v1267_v33 = vrot.slane %v1120_v39, %v1178_v51  ;;  %v1278_v48 = vrot.slane %v1120_v39, %v1189_v1  ;;  %v1201_v50 = vrot.slane %v1118_v55, %v1200_v52 }
 0x35c   :  { %1218 = vbcast.lane.b32.xlu1 %v1212_v60, 264  ;;  %1214 = vbcast.lane.b32.xlu0 %v1212_v60, 256  ;;  %v1289_v62 = vrot.slane %v1120_v39, %v1200_v52 }
 0x360   :  { %1229 = vbcast.lane.b32.xlu1 %v1223_v44, 264  ;;  %1225 = vbcast.lane.b32.xlu0 %v1223_v44, 256 }
 0x364   :  { %1240 = vbcast.lane.b32.xlu1 %v1234_v2, 264  ;;  %1236 = vbcast.lane.b32.xlu0 %v1234_v2, 256 }
 0x368   :  { %1251 = vbcast.lane.b32.xlu1 %v1245_v47, 264  ;;  %1247 = vbcast.lane.b32.xlu0 %v1245_v47, 256 }
 0x36c   :  { %1262 = vbcast.lane.b32.xlu1 %v1256_v41, 264  ;;  %1258 = vbcast.lane.b32.xlu0 %v1256_v41, 256 }
 0x370   :  { %1273 = vbcast.lane.b32.xlu1 %v1267_v33, 264  ;;  %1269 = vbcast.lane.b32.xlu0 %v1267_v33, 256 }
 0x374   :  { %1284 = vbcast.lane.b32.xlu1 %v1278_v48, 264  ;;  %1280 = vbcast.lane.b32.xlu0 %v1278_v48, 256 }
 0x378   :  { %1130 = vbcast.lane.b32.xlu1 %v1124_v61, 264  ;;  %1126 = vbcast.lane.b32.xlu0 %v1124_v61, 256 }
 0x37c   :  { %1137 = vbcast.lane.b32.xlu1 %v1135_v13, 256  ;;  %1148 = vbcast.lane.b32.xlu0 %v1146_v26, 256 }
 0x380   :  { %1141 = vbcast.lane.b32.xlu1 %v1135_v13, 264  ;;  %1159 = vbcast.lane.b32.xlu0 %v1157_v63, 256 }
 0x384   :  { %1152 = vbcast.lane.b32.xlu1 %v1146_v26, 264  ;;  %1170 = vbcast.lane.b32.xlu0 %v1168_v59, 256 }
 0x388   :  { %1163 = vbcast.lane.b32.xlu1 %v1157_v63, 264  ;;  %1181 = vbcast.lane.b32.xlu0 %v1179_v3, 256 }
 0x38c   :  { %1174 = vbcast.lane.b32.xlu1 %v1168_v59, 264  ;;  %1192 = vbcast.lane.b32.xlu0 %v1190_v25, 256 }
 0x390   :  { %1185 = vbcast.lane.b32.xlu1 %v1179_v3, 264  ;;  %1203 = vbcast.lane.b32.xlu0 %v1201_v50, 256 }
 0x394   :  { %1196 = vbcast.lane.b32.xlu1 %v1190_v25, 264  ;;  %1291 = vbcast.lane.b32.xlu0 %v1289_v62, 256 }
 0x398   :  { %1207 = vbcast.lane.b32.xlu1 %v1201_v50, 264 }
 0x39c   :  { %1295 = vbcast.lane.b32.xlu1 %v1289_v62, 264 }
 0x39d   :  { %1927 = shalt.err (!%p1924_p8)
}
 0x39e   :  { %s1928_s15 = scalar_lea.hbm %s2665_s8, 256 }
 0x39f   :  { %p1929_p9 = scmp.ne.s32.totalorder %s2665_s8, %s1928_s15  ;;  %p1932_p10 = scmp.lt.u32.totalorder %s1928_s15, %s2665_s8 }
 0x3a1   :  { %p1934_p11 = pnand %p1932_p10, %p1929_p9 }
 0x3a3   :  { %1937 = shalt.err (!%p1934_p11)
}
 0x3a4   :  { %s1980_s0 = smov 128   ;;  %s1981_s30 = smov 8   ;;  %v1812_v40 = vld [vmem:[#allocation5 + $0x40] sm:$0xff]   ;;  %v1813_v16 = vld [vmem:[#allocation5 + $0x48] sm:$0xff]   ;;  %v1814_v24 = vld [vmem:[#allocation5 + $0x50] sm:$0xff]  }
 0x3a5   :  { %1564 = dma.vmem_to_hbm [thread:$0]  %s1559_s11, 256, %s2665_s8, [#allocation12], %s1980_s0, %s1980_s0, %s1981_s30   ;;  %v1314_v28 = vunpack.c.h.bf16 %v1812_v40  ;;  %v1313_v11 = vunpack.c.l.bf16 %v1812_v40  ;;  %v1316_v18 = vunpack.c.h.bf16 %v1813_v16  ;;  %v1315_v53 = vunpack.c.l.bf16 %v1813_v16  ;;  %v1815_v5 = vld [vmem:[#allocation5 + $0x58] sm:$0xff]   ;;  %v1816_v60 = vld [vmem:[#allocation5 + $0x60] sm:$0xff]   ;;  %v2521_v45 = vld [vmem:[#allocation5 + $0x68] sm:$0xff]  }
 0x3a6   :  { %v1318_v27 = vunpack.c.h.bf16 %v1814_v24  ;;  %v1317_v0 = vunpack.c.l.bf16 %v1814_v24  ;;  %v1320_v35 = vunpack.c.h.bf16 %v1815_v5  ;;  %v1319_v36 = vunpack.c.l.bf16 %v1815_v5  ;;  %v2525_v20 = vld [vmem:[#allocation5 + $0x70] sm:$0xff]   ;;  %v1819_v33 = vld [vmem:[#allocation5] sm:$0xff]   ;;  %v1820_v61 = vld [vmem:[#allocation5 + $0x8] sm:$0xff]   ;;  %s1982_s8 = smov [#allocation10]  }
 0x3a7   :  { %v1322_v42 = vunpack.c.h.bf16 %v1816_v60  ;;  %v1321_v44 = vunpack.c.l.bf16 %v1816_v60  ;;  %v1324_v2 = vunpack.c.h.bf16 %v2521_v45  ;;  %v1323_v47 = vunpack.c.l.bf16 %v2521_v45  ;;  %v1821_v26 = vld [vmem:[#allocation5 + $0x10] sm:$0xff]   ;;  %v2531_v40 = vld [vmem:[#allocation5 + $0x20] sm:$0xff]   ;;  %s1546_s24 = sshll.u32 %s1982_s8, 4  ;;  %s1547_s24 = int_to_ptr.vmem [resolvable:$true] %s1546_s24 }
 0x3a8   :  { %v1326_v41 = vunpack.c.h.bf16 %v2525_v20  ;;  %v1325_v51 = vunpack.c.l.bf16 %v2525_v20  ;;  %v1298_v1 = vunpack.c.h.bf16 %v1819_v33  ;;  %v1297_v48 = vunpack.c.l.bf16 %v1819_v33  ;;  %s1938_s25 = scalar_lea.vmem %s1547_s24, 256  ;;  %p1943_p13 = scmp.lt.s32.totalorder %s1547_s24, %s1547_s24 }
 0x3a9   :  { %v1299_v13 = vunpack.c.l.bf16 %v1820_v61  ;;  %v1301_v63 = vunpack.c.l.bf16 %v1821_v26  ;;  %p1939_p12 = scmp.ne.s32.totalorder %s1547_s24, %s1938_s25  ;;  %p1944_p0 = scmp.lt.s32.totalorder %s1938_s25, %s1938_s25 }
 0x3ab   :  { %p1945_p1 = por %p1944_p0, %p1943_p13 }
 0x3ad   :  { %p1946_p2 = pnand %p1945_p1, %p1939_p12 }
 0x3ce   :  { %v1219_v30 = vpop.permute.xlu1 %1218  ;;  %v1215_v56 = vpop.permute.xlu0 %1214 }
 0x3cf   :  { %v1346_v12 = vmul.f32 %v1314_v28, %v1219_v30  ;;  %v1345_v37 = vmul.f32 %v1313_v11, %v1215_v56  ;;  %v1300_v56 = vunpack.c.h.bf16 %v1820_v61  ;;  %v1305_v28 = vunpack.c.l.bf16 %v2531_v40 }
 0x3d1   :  { %v1434_v15 = vsel %vm146_vm1, %v1346_v12, 0.0  ;;  %v1433_v17 = vsel %vm146_vm1, %v1345_v37, 0.0  ;;  %v2534_v12 = vld [vmem:[#allocation5 + $0x28] sm:$0xff]  }
 0x3d2   :  { %v1230_v4 = vpop.permute.xlu1 %1229  ;;  %v1226_v57 = vpop.permute.xlu0 %1225  ;;  %v1435_v19 = vadd.f32 %v1434_v15, %v1433_v17  ;;  %v1307_v37 = vunpack.c.l.bf16 %v2534_v12  ;;  %v1308_v16 = vunpack.c.h.bf16 %v2534_v12 }
 0x3d3   :  { %v1348_v23 = vmul.f32 %v1316_v18, %v1230_v4  ;;  %v1347_v9 = vmul.f32 %v1315_v53, %v1226_v57  ;;  %v1822_v4 = vld [vmem:[#allocation5 + $0x18] sm:$0xff]  }
 0x3d4   :  { %v1436_v29 = vrot.slane %v1435_v19, 4  ;;  %v1303_v57 = vunpack.c.l.bf16 %v1822_v4  ;;  %v1304_v11 = vunpack.c.h.bf16 %v1822_v4 }
 0x3d5   :  { %v1443_v49 = vsel %vm146_vm1, %v1348_v23, 0.0  ;;  %v1442_v31 = vsel %vm146_vm1, %v1347_v9, 0.0  ;;  %v2544_v9 = vld [vmem:[#allocation5 + $0x38] sm:$0xff]  }
 0x3d6   :  { %v1241_v21 = vpop.permute.xlu1 %1240  ;;  %v1237_v32 = vpop.permute.xlu0 %1236  ;;  %v1437_v39 = vadd.f32 %v1436_v29, %v1435_v19  ;;  %v1444_v46 = vadd.f32 %v1443_v49, %v1442_v31  ;;  %v1311_v24 = vunpack.c.l.bf16 %v2544_v9  ;;  %v2548_v31 = vld [vmem:[#allocation5 + $0x78] sm:$0xff]  }
 0x3d7   :  { %v1350_v7 = vmul.f32 %v1318_v27, %v1241_v21  ;;  %v1349_v34 = vmul.f32 %v1317_v0, %v1237_v32  ;;  %v1302_v21 = vunpack.c.h.bf16 %v1821_v26  ;;  %v1328_v61 = vunpack.c.h.bf16 %v2548_v31 }
 0x3d8   :  { %v1438_v30 = vrot.slane %v1437_v39, 2  ;;  %v1445_v32 = vrot.slane %v1444_v46, 4 }
 0x3d9   :  { %v1452_v59 = vsel %vm146_vm1, %v1350_v7, 0.0  ;;  %v1451_v3 = vsel %vm146_vm1, %v1349_v34, 0.0  ;;  %v1327_v7 = vunpack.c.l.bf16 %v2548_v31 }
 0x3da   :  { %v1252_v8 = vpop.permute.xlu1 %1251  ;;  %v1248_v54 = vpop.permute.xlu0 %1247  ;;  %v1453_v15 = vadd.f32 %v1452_v59, %v1451_v3  ;;  %v1439_v0 = vadd.f32 %v1438_v30, %v1437_v39  ;;  %v1446_v34 = vadd.f32 %v1445_v32, %v1444_v46 }
 0x3db   :  { %v1352_v25 = vmul.f32 %v1320_v35, %v1252_v8  ;;  %v1351_v52 = vmul.f32 %v1319_v36, %v1248_v54  ;;  %v1306_v8 = vunpack.c.h.bf16 %v2531_v40  ;;  %v2538_v54 = vld [vmem:[#allocation5 + $0x30] sm:$0xff]   ;;  %v1312_v36 = vunpack.c.h.bf16 %v2544_v9 }
 0x3dc   :  { %v1309_v17 = vunpack.c.l.bf16 %v2538_v54  ;;  %v1310_v27 = vunpack.c.h.bf16 %v2538_v54  ;;  %v1454_v60 = vrot.slane %v1453_v15, 4  ;;  %v1440_v46 = vrot.slane %v1439_v0, 1 }
 0x3dd   :  { %v1461_v18 = vsel %vm146_vm1, %v1352_v25, 0.0  ;;  %v1460_v53 = vsel %vm146_vm1, %v1351_v52, 0.0 }
 0x3de   :  { %v2505_v6 = vpop.permute.xlu1 %1262  ;;  %v2507_v14 = vpop.permute.xlu0 %1258  ;;  %v1462_v45 = vadd.f32 %v1461_v18, %v1460_v53 }
 0x3df   :  { %v1354_v26 = vmul.f32 %v1322_v42, %v2505_v6  ;;  %v1353_v39 = vmul.f32 %v1321_v44, %v2507_v14  ;;  %v1455_v6 = vadd.f32 %v1454_v60, %v1453_v15  ;;  %v2567_v15 = vadd.f32 %v1440_v46, %v1439_v0 }
 0x3e0   :  { %v1463_v42 = vrot.slane %v1462_v45, 4 }
 0x3e1   :  { %v1470_v44 = vsel %vm146_vm1, %v1354_v26, 0.0 }
 0x3e2   :  { %v2511_v58 = vpop.permute.xlu1 %1273  ;;  %v2513_v10 = vpop.permute.xlu0 %1269 }
 0x3e6   :  { %v2515_v43 = vpop.permute.xlu1 %1284  ;;  %v2517_v22 = vpop.permute.xlu0 %1280 }
 0x3e7   :  { %v1357_v18 = vmul.f32 %v1325_v51, %v2517_v22 }
 0x3e9   :  { %v1487_v26 = vsel %vm146_vm1, %v1357_v18, 0.0 }
 0x3ea   :  { %v1131_v55 = vpop.permute.xlu1 %1130  ;;  %v1127_v38 = vpop.permute.xlu0 %1126 }
 0x3eb   :  { %v1330_v5 = vmul.f32 %v1298_v1, %v1131_v55  ;;  %v1329_v35 = vmul.f32 %v1297_v48, %v1127_v38  ;;  %v1355_v55 = vmul.f32 %v1323_v47, %v2513_v10  ;;  %v1447_v48 = vrot.slane %v1446_v34, 2 }
 0x3ed   :  { %v1362_v52 = vsel %vm146_vm1, %v1330_v5, 0.0 }
 0x3ee   :  { %v1138_v50 = vpop.permute.xlu1 %1137  ;;  %v1149_v62 = vpop.permute.xlu0 %1148 }
 0x3ef   :  { %v1331_v29 = vmul.f32 %v1299_v13, %v1138_v50  ;;  %v1356_v13 = vmul.f32 %v1324_v2, %v2511_v58  ;;  %v1333_v59 = vmul.f32 %v1301_v63, %v1149_v62  ;;  %v1361_v50 = vsel %vm146_vm1, %v1329_v35, 0.0 }
 0x3f0   :  { %v1469_v2 = vsel %vm146_vm1, %v1353_v39, 0.0  ;;  %v1363_v4 = vadd.f32 %v1362_v52, %v1361_v50 }
 0x3f1   :  { %v1370_v38 = vsel %vm146_vm1, %v1331_v29, 0.0  ;;  %v1479_v10 = vsel %vm146_vm1, %v1356_v13, 0.0  ;;  %v1379_v47 = vsel %vm146_vm1, %v1333_v59, 0.0  ;;  %v1471_v0 = vadd.f32 %v1470_v44, %v1469_v2 }
 0x3f2   :  { %v1142_v19 = vpop.permute.xlu1 %1141  ;;  %v1160_v23 = vpop.permute.xlu0 %1159 }
 0x3f3   :  { %v1332_v49 = vmul.f32 %v1300_v56, %v1142_v19  ;;  %v1335_v14 = vmul.f32 %v1303_v57, %v1160_v23  ;;  %v1478_v56 = vsel %vm146_vm1, %v1355_v55, 0.0  ;;  %v1358_v57 = vmul.f32 %v1326_v41, %v2515_v43 }
 0x3f4   :  { %v1456_v19 = vrot.slane %v1455_v6, 2  ;;  %v1480_v5 = vadd.f32 %v1479_v10, %v1478_v56  ;;  %v1464_v41 = vadd.f32 %v1463_v42, %v1462_v45 }
 0x3f5   :  { %v1371_v33 = vsel %vm146_vm1, %v1332_v49, 0.0  ;;  %v1388_v23 = vsel %vm146_vm1, %v1335_v14, 0.0  ;;  %v1488_v51 = vsel %vm146_vm1, %v1358_v57, 0.0 }
 0x3f6   :  { %v1153_v3 = vpop.permute.xlu1 %1152  ;;  %v1171_v25 = vpop.permute.xlu0 %1170  ;;  %v1372_v30 = vadd.f32 %v1371_v33, %v1370_v38  ;;  %v1364_v33 = vrot.slane %v1363_v4, 4  ;;  %v2585_v13 = vadd.f32 %v1456_v19, %v1455_v6  ;;  %v1481_v40 = vrot.slane %v1480_v5, 4 }
 0x3f7   :  { %v1334_v1 = vmul.f32 %v1302_v21, %v1153_v3  ;;  %v1337_v29 = vmul.f32 %v1305_v28, %v1171_v25  ;;  %v1472_v25 = vrot.slane %v1471_v0, 4  ;;  %v1489_v55 = vadd.f32 %v1488_v51, %v1487_v26 }
 0x3f8   :  { %v1373_v53 = vrot.slane %v1372_v30, 4  ;;  %v1365_v38 = vadd.f32 %v1364_v33, %v1363_v4  ;;  %v1465_v52 = vrot.slane %v1464_v41, 2  ;;  %v1482_v10 = vadd.f32 %v1481_v40, %v1480_v5 }
 0x3f9   :  { %v1380_v58 = vsel %vm146_vm1, %v1334_v1, 0.0  ;;  %v1473_v2 = vadd.f32 %v1472_v25, %v1471_v0 }
 0x3fa   :  { %v1164_v63 = vpop.permute.xlu1 %1163  ;;  %v1182_v62 = vpop.permute.xlu0 %1181  ;;  %v1381_v21 = vadd.f32 %v1380_v58, %v1379_v47  ;;  %v1374_v28 = vadd.f32 %v1373_v53, %v1372_v30 }
 0x3fb   :  { %v1336_v32 = vmul.f32 %v1304_v11, %v1164_v63  ;;  %v2579_v11 = vadd.f32 %v1447_v48, %v1446_v34  ;;  %v1397_v34 = vsel %vm146_vm1, %v1337_v29, 0.0  ;;  %v1339_v59 = vmul.f32 %v1307_v37, %v1182_v62 }
 0x3fc   :  { %v1382_v20 = vrot.slane %v1381_v21, 4  ;;  %v1375_v50 = vrot.slane %v1374_v28, 2  ;;  %v1458_v37 = vrot.slane %v2585_v13, 1  ;;  %v1366_v62 = vrot.slane %v1365_v38, 2 }
 0x3fd   :  { %v1389_v49 = vsel %vm146_vm1, %v1336_v32, 0.0  ;;  %v1449_v3 = vrot.slane %v2579_v11, 1  ;;  %v1406_v14 = vsel %vm146_vm1, %v1339_v59, 0.0  ;;  %v1474_v29 = vrot.slane %v1473_v2, 2 }
 0x3fe   :  { %v1390_v35 = vadd.f32 %v1389_v49, %v1388_v23  ;;  %v1175_v60 = vpop.permute.xlu1 %1174  ;;  %v1193_v43 = vpop.permute.xlu0 %1192  ;;  %v1383_v1 = vadd.f32 %v1382_v20, %v1381_v21  ;;  %v2601_v21 = vadd.f32 %v1465_v52, %v1464_v41  ;;  %v1376_v32 = vadd.f32 %v1375_v50, %v1374_v28 }
 0x3ff   :  { %v1338_v22 = vmul.f32 %v1306_v8, %v1175_v60  ;;  %v1341_v58 = vmul.f32 %v1309_v17, %v1193_v43  ;;  %v1483_v49 = vrot.slane %v1482_v10, 2  ;;  %v1367_v60 = vadd.f32 %v1366_v62, %v1365_v38 }
 0x400   :  { %v1391_v39 = vrot.slane %v1390_v35, 4  ;;  %v1384_v56 = vrot.slane %v1383_v1, 2  ;;  %v1377_v33 = vrot.slane %v1376_v32, 1 }
 0x401   :  { %v1398_v45 = vsel %vm146_vm1, %v1338_v22, 0.0  ;;  %v1415_v17 = vsel %vm146_vm1, %v1341_v58, 0.0  ;;  %v1368_v9 = vrot.slane %v1367_v60, 1 }
 0x402   :  { %v1399_v8 = vadd.f32 %v1398_v45, %v1397_v34  ;;  %v1186_v46 = vpop.permute.xlu1 %1185  ;;  %v1392_v30 = vadd.f32 %v1391_v39, %v1390_v35  ;;  %v1204_v42 = vpop.permute.xlu0 %1203  ;;  %v1385_v43 = vadd.f32 %v1384_v56, %v1383_v1  ;;  %v1475_v34 = vadd.f32 %v1474_v29, %v1473_v2 }
 0x403   :  { %v1340_v48 = vmul.f32 %v1308_v16, %v1186_v46  ;;  %v1490_v16 = vrot.slane %v1489_v55, 4  ;;  %v1343_v19 = vmul.f32 %v1311_v24, %v1204_v42  ;;  %v1378_v52 = vadd.f32 %v1377_v33, %v1376_v32 }
 0x404   :  { %v1400_v6 = vrot.slane %v1399_v8, 4  ;;  %v1393_v57 = vrot.slane %v1392_v30, 2  ;;  %v1476_v62 = vrot.slane %v1475_v34, 1 }
 0x405   :  { %v1407_v44 = vsel %vm146_vm1, %v1340_v48, 0.0  ;;  %v1424_v24 = vsel %vm146_vm1, %v1343_v19, 0.0 }
 0x406   :  { %v1401_v47 = vadd.f32 %v1400_v6, %v1399_v8  ;;  %v1408_v63 = vadd.f32 %v1407_v44, %v1406_v14  ;;  %v1197_v12 = vpop.permute.xlu1 %1196  ;;  %v1292_v35 = vpop.permute.xlu0 %1291  ;;  %v1394_v20 = vadd.f32 %v1393_v57, %v1392_v30  ;;  %v1467_v44 = vrot.slane %v2601_v21, 1 }
 0x407   :  { %v1342_v4 = vmul.f32 %v1310_v27, %v1197_v12  ;;  %v1491_v27 = vadd.f32 %v1490_v16, %v1489_v55  ;;  %v1359_v28 = vmul.f32 %v1327_v7, %v1292_v35  ;;  %v1484_v55 = vadd.f32 %v1483_v49, %v1482_v10 }
 0x408   :  { %v1409_v18 = vrot.slane %v1408_v63, 4  ;;  %v1402_v53 = vrot.slane %v1401_v47, 2  ;;  %v1395_v38 = vrot.slane %v1394_v20, 1  ;;  %v1450_v16 = vadd.f32 %v1449_v3, %v2579_v11 }
 0x409   :  { %v1416_v23 = vsel %vm146_vm1, %v1342_v4, 0.0  ;;  %v1492_v8 = vrot.slane %v1491_v27, 2  ;;  %v1496_v7 = vsel %vm146_vm1, %v1359_v28, 0.0  ;;  %v1485_v56 = vrot.slane %v1484_v55, 1 }
 0x40a   :  { %v1410_v0 = vadd.f32 %v1409_v18, %v1408_v63  ;;  %v1417_v5 = vadd.f32 %v1416_v23, %v1415_v17  ;;  %v1208_v54 = vpop.permute.xlu1 %1207  ;;  %v1403_v26 = vadd.f32 %v1402_v53, %v1401_v47  ;;  %v1369_v47 = vadd.f32 %v1368_v9, %v1367_v60 }
 0x40b   :  { %v1344_v41 = vmul.f32 %v1312_v36, %v1208_v54  ;;  %v1386_v36 = vrot.slane %v1385_v43, 1  ;;  %v1493_v2 = vadd.f32 %v1492_v8, %v1491_v27  ;;  %v1459_v17 = vadd.f32 %v1458_v37, %v2585_v13 }
 0x40c   :  { %v1411_v22 = vrot.slane %v1410_v0, 2  ;;  %v1418_v51 = vrot.slane %v1417_v5, 4  ;;  %v1404_v50 = vrot.slane %v1403_v26, 1  ;;  %v1521_v32 = vsel %vm1073_vm3, %v1378_v52, %v1369_v47 }
 0x40d   :  { %v1425_v39 = vsel %vm146_vm1, %v1344_v41, 0.0  ;;  %v1387_v31 = vadd.f32 %v1386_v36, %v1385_v43  ;;  %v1494_v19 = vrot.slane %v1493_v2, 1  ;;  %v1468_v49 = vadd.f32 %v1467_v44, %v2601_v21 }
 0x40e   :  { %v1412_v59 = vadd.f32 %v1411_v22, %v1410_v0  ;;  %v1419_v45 = vadd.f32 %v1418_v51, %v1417_v5  ;;  %v1426_v25 = vadd.f32 %v1425_v39, %v1424_v24  ;;  %v1296_v40 = vpop.permute.xlu1 %1295  ;;  %v1405_v4 = vadd.f32 %v1404_v50, %v1403_v26 }
 0x40f   :  { %v1360_v46 = vmul.f32 %v1328_v61, %v1296_v40  ;;  %v1396_v61 = vadd.f32 %v1395_v38, %v1394_v20  ;;  %v1522_v23 = vsel %vm1075_vm4, %v1387_v31, %v1521_v32  ;;  %v1528_v5 = vsel %vm1073_vm3, %v1450_v16, %v2567_v15 }
 0x410   :  { %v1420_v1 = vrot.slane %v1419_v45, 2  ;;  %v1427_v48 = vrot.slane %v1426_v25, 4  ;;  %v1413_v6 = vrot.slane %v1412_v59, 1  ;;  %v1477_v35 = vadd.f32 %v1476_v62, %v1475_v34 }
 0x411   :  { %v1497_v30 = vsel %vm146_vm1, %v1360_v46, 0.0  ;;  %v1523_v11 = vsel %vm1077_vm5, %v1396_v61, %v1522_v23  ;;  %v1486_v27 = vadd.f32 %v1485_v56, %v1484_v55  ;;  %v1529_v43 = vsel %vm1075_vm4, %v1459_v17, %v1528_v5 }
 0x412   :  { %v1421_v42 = vadd.f32 %v1420_v1, %v1419_v45  ;;  %v1428_v14 = vadd.f32 %v1427_v48, %v1426_v25  ;;  %v1498_v58 = vadd.f32 %v1497_v30, %v1496_v7  ;;  %v1414_v57 = vadd.f32 %v1413_v6, %v1412_v59 }
 0x413   :  { %v1524_v54 = vsel %vm1079_vm6, %v1405_v4, %v1523_v11  ;;  %v1495_v41 = vadd.f32 %v1494_v19, %v1493_v2  ;;  %v1530_v33 = vsel %vm1077_vm5, %v1468_v49, %v1529_v43 }
 0x414   :  { %v1422_v10 = vrot.slane %v1421_v42, 1  ;;  %v1429_v63 = vrot.slane %v1428_v14, 2  ;;  %v1499_v12 = vrot.slane %v1498_v58, 4  ;;  %v1525_v60 = vsel %vm1081_vm8, %v1414_v57, %v1524_v54 }
 0x415   :  { %v1531_v15 = vsel %vm1079_vm6, %v1477_v35, %v1530_v33 }
 0x416   :  { %v1430_v18 = vadd.f32 %v1429_v63, %v1428_v14  ;;  %v1500_v53 = vadd.f32 %v1499_v12, %v1498_v58  ;;  %v1423_v29 = vadd.f32 %v1422_v10, %v1421_v42  ;;  %v1532_v51 = vsel %vm1081_vm8, %v1486_v27, %v1531_v15 }
 0x417   :  { %v1533_v24 = vsel %vm1083_vm7, %v1495_v41, %v1532_v51 }
 0x418   :  { %v1431_v3 = vrot.slane %v1430_v18, 1  ;;  %v1501_v0 = vrot.slane %v1500_v53, 2  ;;  %v1526_v21 = vsel %vm1083_vm7, %v1423_v29, %v1525_v60 }
 0x41a   :  { %v1432_v13 = vadd.f32 %v1431_v3, %v1430_v18  ;;  %v1502_v37 = vadd.f32 %v1501_v0, %v1500_v53 }
 0x41c   :  { %v1503_v20 = vrot.slane %v1502_v37, 1  ;;  %v1527_v22 = vsel %vm1085_vm9, %v1432_v13, %v1526_v21 }
 0x41d   :  { %1537 = vst.msk [vmem:[#allocation10] sm:$0xff] %vm146_vm1, %v1527_v22 }
 0x41e   :  { %v1504_v26 = vadd.f32 %v1503_v20, %v1502_v37 }
 0x420   :  { %v1534_v28 = vsel %vm1085_vm9, %v1504_v26, %v1533_v24 }
 0x421   :  { %1538 = vst.msk [vmem:[#allocation10 + $0x8] sm:$0xff] %vm146_vm1, %v1534_v28 }
 0x422   :  { %1949 = shalt.err (!%p1946_p2)
}
 0x423   :  { %s1950_s29 = scalar_lea.hbm %s2664_s7, 256 }
 0x424   :  { %p1951_p3 = scmp.ne.s32.totalorder %s2664_s7, %s1950_s29  ;;  %p1954_p4 = scmp.lt.u32.totalorder %s1950_s29, %s2664_s7 }
 0x426   :  { %p1956_p5 = pnand %p1954_p4, %p1951_p3 }
 0x428   :  { %1959 = shalt.err (!%p1956_p5)
}
 0x429   :  { %1552 = dma.vmem_to_hbm [thread:$0]  %s1547_s24, 256, %s2664_s7, [#allocation4], %s1980_s0, %s1980_s0, %s1981_s30  }
 0x42a   :  { %1966 = dma.done.wait [#allocation4], 256  }
 0x42b   :  { %1967 = vsyncadd [#allocation4], 4294967040 }
 0x42c   :  { %1968 = dma.done.wait [#allocation12], 256  }
 0x42d   :  { %1969 = vsyncadd [#allocation12], 4294967040 }
 0x42e   :  { %1571 = vsyncpa [#allocation3], 1 }
 0x42f   :  { %1572 = vsyncpa [#allocation6], 1 }
 0x430   :  { %1573 = vsyncpa [#allocation9], 1 }
 0x431   :  { %1574 = vsyncpa [#allocation4], 1 }
 0x432   :  { %1575 = vsyncpa [#allocation12], 1 }

</bundles_post_ra>
